<compile_context>
chip_gen: v6e
topology: v6e:2x2x1
jax: 0.10.0
libtpu: 0.0.40
codegen_flags: <defaults>
</compile_context>

<pallas_src>
import functools
import math

import jax
import jax.numpy as jnp
from jax import lax
from jax.experimental import pallas as pl
from jax.experimental.pallas import tpu as pltpu

# Above the scoped defaults on v5e (16 MiB) / v6e (32 MiB), below v7x's 64 MiB physical.
VMEM_LIMIT_BYTES = 48 * 1024 * 1024
# Per-step working-set target used when picking tiles (leaves headroom under the limit).
VMEM_TILE_BUDGET = 26 * 1024 * 1024


# --------------------------------------------------------------------------
# Tiling helper
# --------------------------------------------------------------------------
def _pick_tile(dim, max_tile, aligns=(256, 128)):
    """Largest tile <= max_tile that divides `dim`, preferring larger alignments.

    Falls back to the full dim (callers validate the resulting VMEM estimate)."""
    if dim <= max_tile:
        return dim
    for align in aligns:
        t = (max_tile // align) * align
        while t >= align:
            if dim % t == 0:
                return t
            t -= align
    return dim


# --------------------------------------------------------------------------
# Tiled linear:  y = x @ w + b
# --------------------------------------------------------------------------
def _linear_kernel(x_ref, w_ref, b_ref, o_ref, acc_ref):
    @pl.when(pl.program_id(2) == 0)
    def _init():
        acc_ref[...] = jnp.zeros_like(acc_ref)

    acc_ref[...] += jnp.dot(x_ref[...], w_ref[...],
                            preferred_element_type=jnp.float32)

    @pl.when(pl.program_id(2) == pl.num_programs(2) - 1)
    def _finalize():
        o_ref[...] = (acc_ref[...] + b_ref[...].astype(jnp.float32)).astype(o_ref.dtype)


def pallas_linear(x2d, w, b, *, tm_max=512, tn_max=512, tk_max=512):
    """y = x2d @ w + b, tiled over (M, N, K) with an fp32 VMEM accumulator."""
    M, K = x2d.shape
    K2, N = w.shape
    assert K2 == K
    # Prefer 256-aligned N/K tiles (full-width passes on v6e/v7x 256x256 MXUs),
    # fall back to 128; M tiles only need sublane (8/16) alignment.
    tm = _pick_tile(M, tm_max, (256, 128, 16, 8))
    tn = _pick_tile(N, tn_max, (256, 128))
    tk = _pick_tile(K, tk_max, (256, 128))

    itemsize = jnp.dtype(x2d.dtype).itemsize
    est = 2 * itemsize * (tm * tk + tk * tn + tm * tn) + 4 * tm * tn
    if est > VMEM_TILE_BUDGET:
        raise ValueError(
            f"pallas_linear tiles ({tm},{tn},{tk}) need ~{est>>20} MiB VMEM; "
            f"pad M/N/K to sizes with 128/256-aligned divisors.")

    grid = (M // tm, N // tn, K // tk)
    cost = pl.CostEstimate(
        flops=int(2 * M * N * K),
        transcendentals=0,
        bytes_accessed=int(itemsize * (M * K + K * N + M * N + N)),
    )

    return pl.pallas_call(
        _linear_kernel,
        out_shape=jax.ShapeDtypeStruct((M, N), x2d.dtype),
        grid_spec=pltpu.PrefetchScalarGridSpec(
            num_scalar_prefetch=0,
            grid=grid,
            in_specs=[
                pl.BlockSpec((tm, tk), lambda i, j, k: (i, k)),
                pl.BlockSpec((tk, tn), lambda i, j, k: (k, j)),
                pl.BlockSpec((1, tn), lambda i, j, k: (0, j)),
            ],
            out_specs=pl.BlockSpec((tm, tn), lambda i, j, k: (i, j)),
            scratch_shapes=[pltpu.VMEM((tm, tn), jnp.float32)],
        ),
        compiler_params=pltpu.CompilerParams(
            dimension_semantics=("parallel", "parallel", "arbitrary"),
            vmem_limit_bytes=VMEM_LIMIT_BYTES),
        cost_estimate=cost,
    )(x2d, w, b.reshape(1, N))


# --------------------------------------------------------------------------
# Flash-style causal attention (all heads fused per block)
# --------------------------------------------------------------------------
def _flash_causal_attn_kernel(q_ref, k_ref, v_ref, o_ref,
                              m_ref, l_ref, acc_ref,
                              *, scale, n_head, head_dim, block_q, block_k):
    qi = pl.program_id(1)
    ki = pl.program_id(2)
    q_start = qi * block_q
    k_start = ki * block_k
    # Last kv block this q block needs (causal); ki beyond it is dead work
    # (its k/v DMAs are already skipped by the clamped index_maps).
    last_k = (q_start + block_q - 1) // block_k

    @pl.when(ki == 0)
    def _init():
        m_ref[...] = jnp.full_like(m_ref, -jnp.inf)
        l_ref[...] = jnp.zeros_like(l_ref)
        acc_ref[...] = jnp.zeros_like(acc_ref)

    @pl.when(ki <= last_k)
    def _compute():
        # Global-index causal mask: computed once per grid step, branch-free.
        # On fully-below-diagonal kv blocks the where() is a logical no-op.
        row = q_start + lax.broadcasted_iota(jnp.int32, (block_q, block_k), 0)
        col = k_start + lax.broadcasted_iota(jnp.int32, (block_q, block_k), 1)
        causal = col <= row

        pv_parts = []
        alpha_parts = []
        for h in range(n_head):
            lo = h * head_dim
            hi = lo + head_dim

            # scale q (O(tq*D)) instead of scaling the (tq, tk) score matrix
            q_h = q_ref[0, :, lo:hi] * scale
            k_h = k_ref[0, :, lo:hi]
            v_h = v_ref[0, :, lo:hi]

            # q @ k^T: contract head_dim directly (no in-kernel transpose)
            s = lax.dot_general(q_h, k_h, (((1,), (1,)), ((), ())),
                                preferred_element_type=jnp.float32)  # (tq, tk) f32
            s = jnp.where(causal, s, jnp.float32(-1e30))

            m_prev = m_ref[h]                                        # (tq, 1) f32
            m_new = jnp.maximum(m_prev, jnp.max(s, axis=-1, keepdims=True))
            alpha = jnp.exp(m_prev - m_new)
            p = jnp.exp(s - m_new)                                   # (tq, tk) f32
            l_ref[h] = alpha * l_ref[h] + jnp.sum(p, axis=-1, keepdims=True)
            m_ref[h] = m_new

            pv_parts.append(jnp.dot(p.astype(v_h.dtype), v_h,
                                    preferred_element_type=jnp.float32))  # (tq, D) f32
            alpha_parts.append(jnp.broadcast_to(alpha, (block_q, head_dim)))

        # Single lane-dense (tq, C) accumulator update per kv step — no per-head
        # masked sub-128-lane read-modify-writes.
        pv_full = jnp.concatenate(pv_parts, axis=-1)
        alpha_full = jnp.concatenate(alpha_parts, axis=-1)
        acc_ref[...] = alpha_full * acc_ref[...] + pv_full

    # The diagonal block is the last kv block this q block needs.
    @pl.when(ki == last_k)
    def _finalize():
        inv_parts = []
        for h in range(n_head):
            l_h = l_ref[h]
            inv = pl.reciprocal(l_h, approx=True)       # EUP slot (nearly free)
            inv = inv * (2.0 - l_h * inv)               # one Newton step -> ~f32 exact
            inv_parts.append(jnp.broadcast_to(inv, (block_q, head_dim)))
        inv_full = jnp.concatenate(inv_parts, axis=-1)
        # single lane-dense (tq, C) store
        o_ref[0] = (acc_ref[...] * inv_full).astype(o_ref.dtype)


def pallas_flash_causal_attention(qkv, n_head, *, block_q_max=256, block_k_max=512):
    """Causal SDPA over all heads.

    qkv: (B, T, 3C) fused projection output.  Returns (B, T, C)."""
    B, T, C3 = qkv.shape
    C = C3 // 3
    assert C % n_head == 0
    D = C // n_head
    scale = 1.0 / math.sqrt(D)
    itemsize = jnp.dtype(qkv.dtype).itemsize

    tq = _pick_tile(T, block_q_max, (256, 128, 16, 8))
    tk = _pick_tile(T, block_k_max, (256, 128, 16, 8))

    def vmem_estimate(tq_, tk_):
        io = 2 * itemsize * (2 * tq_ * C + 2 * tk_ * C)      # dbl-buffered q/out + k/v blocks
        state = 4 * (tq_ * C + 2 * n_head * tq_)             # fp32 acc + m/l scratch
        tmp = 4 * 3 * tq_ * tk_                              # live score/prob temporaries
        return io + state + tmp

    # Shrink kv block first, then q block, until the estimate fits the budget.
    while vmem_estimate(tq, tk) > VMEM_TILE_BUDGET:
        if tk > 128:
            tk //= 2
        elif tq > 128:
            tq //= 2
        else:
            break
    if vmem_estimate(tq, tk) > VMEM_TILE_BUDGET:
        raise ValueError(
            f"attention tiles (tq={tq}, tk={tk}, C={C}) need "
            f"~{vmem_estimate(tq, tk)>>20} MiB VMEM; pad T / reduce C.")

    grid = (B, T // tq, T // tk)

    def kv_block(qi, ki):
        # Clamp to the last causally-needed kv block: steps above the diagonal
        # reuse the previous block index, so their k/v DMAs are elided.
        return jnp.minimum(ki, ((qi + 1) * tq - 1) // tk)

    if C % 128 == 0:
        # Read q/k/v straight out of the fused (B, T, 3C) slab: the last-axis
        # block index (0/1/2) selects the q/k/v columns, no wrapper split needed.
        q_arr = k_arr = v_arr = qkv
        q_spec = pl.BlockSpec((1, tq, C), lambda b, qi, ki: (b, qi, 0))
        k_spec = pl.BlockSpec((1, tk, C), lambda b, qi, ki: (b, kv_block(qi, ki), 1))
        v_spec = pl.BlockSpec((1, tk, C), lambda b, qi, ki: (b, kv_block(qi, ki), 2))
    else:
        # TODO(synk): pad C to a multiple of 128 at the model level; this fallback
        # materializes three extra (B, T, C) slices in HBM.
        q_arr = qkv[:, :, :C]
        k_arr = qkv[:, :, C:2 * C]
        v_arr = qkv[:, :, 2 * C:]
        q_spec = pl.BlockSpec((1, tq, C), lambda b, qi, ki: (b, qi, 0))
        k_spec = pl.BlockSpec((1, tk, C), lambda b, qi, ki: (b, kv_block(qi, ki), 0))
        v_spec = pl.BlockSpec((1, tk, C), lambda b, qi, ki: (b, kv_block(qi, ki), 0))

    kernel = functools.partial(
        _flash_causal_attn_kernel, scale=scale, n_head=n_head, head_dim=D,
        block_q=tq, block_k=tk)

    cost = pl.CostEstimate(
        flops=int(2 * B * n_head * T * T * D),            # QK + PV over the lower triangle
        transcendentals=int(B * n_head * T * T // 2),     # exp
        bytes_accessed=int(itemsize * (B * T * 3 * C + B * T * C)),
    )

    # TODO(synk): on v6e, pipeline_mode=pl.Buffered(3) on k_spec/v_spec hides more
    # HBM latency once blocks are enlarged; kept at the default depth here.
    return pl.pallas_call(
        kernel,
        out_shape=jax.ShapeDtypeStruct((B, T, C), qkv.dtype),
        grid_spec=pltpu.PrefetchScalarGridSpec(
            num_scalar_prefetch=0,
            grid=grid,
            in_specs=[q_spec, k_spec, v_spec],
            out_specs=pl.BlockSpec((1, tq, C), lambda b, qi, ki: (b, qi, 0)),
            scratch_shapes=[
                pltpu.VMEM((n_head, tq, 1), jnp.float32),   # running max
                pltpu.VMEM((n_head, tq, 1), jnp.float32),   # running denominator
                pltpu.VMEM((tq, C), jnp.float32),           # fp32 output accumulator
            ],
        ),
        compiler_params=pltpu.CompilerParams(
            dimension_semantics=("parallel", "parallel", "arbitrary"),
            vmem_limit_bytes=VMEM_LIMIT_BYTES),
        cost_estimate=cost,
    )(q_arr, k_arr, v_arr)


# --------------------------------------------------------------------------
# Module wrapper (forward pass)
# --------------------------------------------------------------------------
def causal_self_attention_forward(x, params, n_head, *,
                                  attn_block_q=256, attn_block_k=512):
    """Replicates CausalSelfAttention.forward(x, past_kv=None).

    Returns (y, (key, value)) with key/value shaped (B, H, T, D)."""
    B, T, C = x.shape
    D = C // n_head
    w_attn, b_attn, w_proj, b_proj = params

    # qkv = self.c_attention(x)
    qkv = pallas_linear(x.reshape(B * T, C), w_attn, b_attn).reshape(B, T, 3 * C)

    # F.scaled_dot_product_attention(..., is_causal=True); all heads fused,
    # output already in (B, T, C) layout -> no transpose before c_proj.
    y_attn = pallas_flash_causal_attention(qkv, n_head,
                                           block_q_max=attn_block_q,
                                           block_k_max=attn_block_k)

    # y = self.c_proj(y)
    y = pallas_linear(y_attn.reshape(B * T, C), w_proj, b_proj).reshape(B, T, C)

    # new_kv in torch layout (B, H, T, D) — cache-only glue (not on the hot path).
    k = qkv[:, :, C:2 * C].reshape(B, T, n_head, D).transpose(0, 2, 1, 3)
    v = qkv[:, :, 2 * C:].reshape(B, T, n_head, D).transpose(0, 2, 1, 3)
    # TODO(synk): past_kv concatenation path (decode-time KV cache) not implemented;
    # the module is exercised with past_kv=None, matching the training forward.
    return y, (k, v)


# --------------------------------------------------------------------------
# Pure-JAX reference (for correctness check)
# --------------------------------------------------------------------------
def reference_forward(x, params, n_head):
    B, T, C = x.shape
    D = C // n_head
    w_attn, b_attn, w_proj, b_proj = params
    qkv = x @ w_attn + b_attn
    q, k, v = jnp.split(qkv, 3, axis=2)
    q = q.reshape(B, T, n_head, D).transpose(0, 2, 1, 3)
    k = k.reshape(B, T, n_head, D).transpose(0, 2, 1, 3)
    v = v.reshape(B, T, n_head, D).transpose(0, 2, 1, 3)
    s = jnp.einsum("bhqd,bhkd->bhqk", q, k) / jnp.sqrt(jnp.float32(D))
    mask = jnp.tril(jnp.ones((T, T), dtype=bool))
    s = jnp.where(mask[None, None], s, -jnp.inf)
    p = jax.nn.softmax(s, axis=-1)
    o = jnp.einsum("bhqk,bhkd->bhqd", p, v)
    y = o.transpose(0, 2, 1, 3).reshape(B, T, C)
    y = y @ w_proj + b_proj
    return y, (k, v)


# --------------------------------------------------------------------------
if __name__ == "__main__":
    # Module config (n_embed=384, n_head=6, head_dim=64) at the training
    # block_size T=512, batch 2 — small, lane-dense (C % 128 == 0).
    B, T = 2, 512
    n_head = 6
    n_embed = 384

    key = jax.random.PRNGKey(0)
    k_x, k_w1, k_b1, k_w2, k_b2 = jax.random.split(key, 5)

    x = jax.random.normal(k_x, (B, T, n_embed), dtype=jnp.float32)

    # Parameters stored as (in, out) so forward is x @ W + b (== torch x @ W.T + b).
    w_attn = jax.random.normal(k_w1, (n_embed, 3 * n_embed), jnp.float32) * 0.02
    b_attn = jax.random.normal(k_b1, (3 * n_embed,), jnp.float32) * 0.02
    w_proj = jax.random.normal(k_w2, (n_embed, n_embed), jnp.float32) * 0.02
    b_proj = jax.random.normal(k_b2, (n_embed,), jnp.float32) * 0.02
    params = (w_attn, b_attn, w_proj, b_proj)

    y_ref, (k_ref_, v_ref_) = reference_forward(x, params, n_head)

    # ---- fp32, default (large) attention tiles: tq=256, tk=512 ----
    y, (k_out, v_out) = causal_self_attention_forward(x, params, n_head)
    jax.block_until_ready((y, k_out, v_out))
    assert y.shape == (B, T, n_embed)
    assert k_out.shape == (B, n_head, T, n_embed // n_head)
    assert jnp.allclose(y, y_ref, atol=1e-3, rtol=1e-3)
    assert jnp.allclose(k_out, k_ref_, atol=1e-3, rtol=1e-3)
    assert jnp.allclose(v_out, v_ref_, atol=1e-3, rtol=1e-3)

    # ---- fp32, small tiles: exercises clamped-DMA (skipped), off-diagonal and
    #      diagonal kv blocks of the causal grid ----
    y_small, _ = causal_self_attention_forward(x, params, n_head,
                                               attn_block_q=128, attn_block_k=128)
    jax.block_until_ready(y_small)
    assert jnp.allclose(y_small, y_ref, atol=1e-3, rtol=1e-3)

    # ---- bf16 activations/weights (MXU-native) with fp32 accumulation ----
    # Note: softmax probabilities are cast to bf16 before the PV matmul (standard
    # flash practice) — a deliberate precision trade-off, hence the loose tolerance.
    xb = x.astype(jnp.bfloat16)
    params_b = tuple(p.astype(jnp.bfloat16) for p in params)
    yb, _ = causal_self_attention_forward(xb, params_b, n_head)
    jax.block_until_ready(yb)
    assert jnp.allclose(yb.astype(jnp.float32), y_ref, atol=6e-2, rtol=6e-2)

    print("KERNEL_OK")
</pallas_src>

<mosaic_0001>
module attributes {stable_mosaic.version = 11 : i64} {
  func.func @_linear_kernel(%arg0: i32, %arg1: i32, %arg2: i32, %arg3: memref<512x384xf32, #tpu.memory_space<vmem>>, %arg4: memref<384x384xf32, #tpu.memory_space<vmem>>, %arg5: memref<1x384xf32, #tpu.memory_space<vmem>>, %arg6: memref<512x384xf32, #tpu.memory_space<vmem>>, %arg7: memref<512x384xf32, #tpu.memory_space<vmem>>) attributes {dimension_semantics = [#tpu.dimension_semantics<parallel>, #tpu.dimension_semantics<parallel>, #tpu.dimension_semantics<arbitrary>], iteration_bounds = array<i64: 2, 3, 1>, scalar_prefetch = 0 : i64, scratch_operands = 1 : i64, tpu.core_type = #tpu.core_type<tc>, window_params = [{transform_indices = @transform_0, window_bounds = array<i64: 512, 384>}, {transform_indices = @transform_1, window_bounds = array<i64: 384, 384>}, {transform_indices = @transform_2, window_bounds = array<i64: 1, 384>}, {transform_indices = @transform_3, window_bounds = array<i64: 512, 384>}]} {
    %c0_i32 = arith.constant 0 : i32
    %0 = arith.cmpi eq, %arg2, %c0_i32 : i32
    %1 = arith.extui %0 : i1 to i32
    %c0_i32_0 = arith.constant 0 : i32
    %2 = arith.cmpi ne, %1, %c0_i32_0 : i32
    scf.if %2 {
      %cst_10 = arith.constant 0.000000e+00 : f32
      %12 = vector.broadcast %cst_10 : f32 to vector<512x384xf32>
      %c0_11 = arith.constant 0 : index
      %c0_12 = arith.constant 0 : index
      %13 = vector.load %arg7[%c0_11, %c0_12] : memref<512x384xf32, #tpu.memory_space<vmem>>, vector<512x384xf32>
      tpu.vector_store %arg7[%c0_11, %c0_12], %12 {strides = array<i32>} : memref<512x384xf32, #tpu.memory_space<vmem>>, vector<512x384xf32>,
    } else {
    }
    %c0 = arith.constant 0 : index
    %c0_1 = arith.constant 0 : index
    %3 = vector.load %arg7[%c0, %c0_1] : memref<512x384xf32, #tpu.memory_space<vmem>>, vector<512x384xf32>
    %c0_2 = arith.constant 0 : index
    %c0_3 = arith.constant 0 : index
    %4 = vector.load %arg3[%c0_2, %c0_3] : memref<512x384xf32, #tpu.memory_space<vmem>>, vector<512x384xf32>
    %c0_4 = arith.constant 0 : index
    %c0_5 = arith.constant 0 : index
    %5 = vector.load %arg4[%c0_4, %c0_5] : memref<384x384xf32, #tpu.memory_space<vmem>>, vector<384x384xf32>
    %cst = arith.constant dense<0.000000e+00> : vector<512x384xf32>
    %6 = tpu.matmul %4, %5, %cst {dimension_numbers = #tpu.dot_dimension_numbers<[1], [0], [0], [1], [0, 0, 1, 1], [], []>} : vector<512x384xf32>, vector<384x384xf32>, vector<512x384xf32> -> vector<512x384xf32>
    %7 = arith.addf %3, %6 : vector<512x384xf32>
    %c0_6 = arith.constant 0 : index
    %c0_7 = arith.constant 0 : index
    %8 = vector.load %arg7[%c0_6, %c0_7] : memref<512x384xf32, #tpu.memory_space<vmem>>, vector<512x384xf32>
    tpu.vector_store %arg7[%c0_6, %c0_7], %7 {strides = array<i32>} : memref<512x384xf32, #tpu.memory_space<vmem>>, vector<512x384xf32>,
    %c0_i32_8 = arith.constant 0 : i32
    %9 = arith.cmpi eq, %arg2, %c0_i32_8 : i32
    %10 = arith.extui %9 : i1 to i32
    %c0_i32_9 = arith.constant 0 : i32
    %11 = arith.cmpi ne, %10, %c0_i32_9 : i32
    scf.if %11 {
      %c0_10 = arith.constant 0 : index
      %c0_11 = arith.constant 0 : index
      %12 = vector.load %arg7[%c0_10, %c0_11] : memref<512x384xf32, #tpu.memory_space<vmem>>, vector<512x384xf32>
      %c0_12 = arith.constant 0 : index
      %c0_13 = arith.constant 0 : index
      %13 = vector.load %arg5[%c0_12, %c0_13] : memref<1x384xf32, #tpu.memory_space<vmem>>, vector<1x384xf32>
      %14 = vector.broadcast %13 : vector<1x384xf32> to vector<512x384xf32>
      %15 = arith.addf %12, %14 : vector<512x384xf32>
      %c0_14 = arith.constant 0 : index
      %c0_15 = arith.constant 0 : index
      %16 = vector.load %arg6[%c0_14, %c0_15] : memref<512x384xf32, #tpu.memory_space<vmem>>, vector<512x384xf32>
      tpu.vector_store %arg6[%c0_14, %c0_15], %15 {strides = array<i32>} : memref<512x384xf32, #tpu.memory_space<vmem>>, vector<512x384xf32>,
    } else {
    }
    return
  }
  func.func @transform_0(%arg0: i32, %arg1: i32, %arg2: i32) -> (i32, i32) {
    %c0_i32 = arith.constant 0 : i32
    return %arg0, %arg2 : i32, i32
  }
  func.func @transform_1(%arg0: i32, %arg1: i32, %arg2: i32) -> (i32, i32) {
    %c0_i32 = arith.constant 0 : i32
    return %arg2, %arg1 : i32, i32
  }
  func.func @transform_2(%arg0: i32, %arg1: i32, %arg2: i32) -> (i32, i32) {
    %c0_i32 = arith.constant 0 : i32
    %c0_i32_0 = arith.constant 0 : i32
    return %c0_i32, %arg1 : i32, i32
  }
  func.func @transform_3(%arg0: i32, %arg1: i32, %arg2: i32) -> (i32, i32) {
    %c0_i32 = arith.constant 0 : i32
    return %arg0, %arg1 : i32, i32
  }
}

</mosaic_0001>

<bundles_post_ra>
// kernel: tpu_custom_call.1
= control target key start
LH: loop header
LB: loop body
LE: loop exit
PB: predicated region body
PF: predicated region fallthrough
CT: control target
= control target key end

     0   :  { %s6870_s0 = inlined_call_operand.hbm [shape: f32[1024,384], index: 0, kind: input, shape index: {}]   ;;  %s6871_s1 = inlined_call_operand.hbm [shape: f32[384,1152], index: 1, kind: input, shape index: {}]   ;;  %s6872_s2 = inlined_call_operand.hbm [shape: f32[1,1152], index: 2, kind: input, shape index: {}]   ;;  %s6873_s3 = inlined_call_operand.hbm [shape: f32[1024,1152], index: 3, kind: output, shape index: {}]  }
   0x1   :  { %6903 = sst [smem:[#allocation66_spill]] %s6870_s0 }
   0x2   :  { %6904 = sst [smem:[#allocation67_spill]] %s6871_s1 }
   0x3   :  { %6905 = sst [smem:[#allocation68_spill]] %s6873_s3 }
   0x4   :  { %8 = vsyncpa [#allocation4], 0 }
   0x5   :  { %10 = vsyncpa [#allocation4 + $0x1], 0 }
   0x6   :  { %11 = vsyncpa [#allocation7], 0 }
   0x7   :  { %13 = vsyncpa [#allocation7 + $0x1], 0 }
   0x8   :  { %14 = vsyncpa [#allocation5], 0 }
   0x9   :  { %16 = vsyncpa [#allocation5 + $0x1], 0  ;;  %s4626_s12 = smov 0   ;;  %s4628_s13 = smov 0  }
   0xa   :  { %s4630_s14 = smov 0   ;;  %s4632_s15 = smov 0  }
   0xb   :  { %s4634_s16 = smov 0   ;;  %s4636_s17 = smov 0  }
   0xc   :  { %s4638_s18 = smov 0   ;;  %s4640_s19 = smov 0  }
   0xd   :  { %s4642_s20 = smov 0   ;;  %s4644_s21 = smov 0  }
   0xe   :  { %s4646_s22 = smov 0   ;;  %s4648_s23 = smov 0  }
   0xf   :  { %s4650_s24 = smov 0   ;;  %s4652_s25 = smov 0  }
  0x10 LB: > { %6906 = sst [smem:[#allocation13_spill]] %s4549_s14  ;;  %s6875_s26 = sadd.s32 1, %s4585_s23  ;;  %s4593_s25 = sphi %s4652_s25, %s22_s25   ;;  %s4589_s24 = sphi %s4650_s24, %s7033_s24   ;;  %s4585_s23 = sphi %s4648_s23, %s7042_s23   ;;  %s4581_s22 = sphi %s4646_s22, %s7031_s22   ;;  %s4577_s21 = sphi %s4644_s21, %s7041_s21   ;;  %s4573_s20 = sphi %s4642_s20, %s7030_s20   ;;  %s4569_s19 = sphi %s4640_s19, %s7040_s19   ;;  %s4565_s18 = sphi %s4638_s18, %s7039_s18   ;;  %s4561_s17 = sphi %s4636_s17, %s7038_s17   ;;  %s4557_s16 = sphi %s4634_s16, %s7037_s16   ;;  %s4553_s15 = sphi %s4632_s15, %s7036_s15   ;;  %s4549_s14 = sphi %s4630_s14, %s7027_s14   ;;  %s4545_s13 = sphi %s4628_s13, %s7035_s13   ;;  %s4541_s12 = sphi %s4626_s12, %s7034_s12  }
  0x11   : > { %6907 = sst [smem:[#allocation14_spill]] %s4573_s20  ;;  %p58_p0 = scmp.eq.s32.totalorder %s4593_s25, 0 }
  0x12   : > { %6908 = sst [smem:[#allocation15_spill]] %s4577_s21  ;;  %p4700_p1 = scmp.ge.s32.totalorder %s6875_s26, 3 }
  0x13   : > { %6909 = sst [smem:[#allocation16_spill]] %s4581_s22  ;;  %p85_p2 = scmp.ne.s32.totalorder %s4561_s17, %s4557_s16 }
  0x14   : > { %6910 = sst [smem:[#allocation17_spill]] %s4589_s24  ;;  %p91_p3 = scmp.ne.s32.totalorder %s4557_s16, %s4553_s15 }
  0x15   : > { %p6884_p4 = scmp.lt.s32.totalorder %s4593_s25, 6  ;;  %p87_p5 = por %p85_p2, %p58_p0 }
  0x16   : > { %s193_s29 = sand.u32 1, %s4593_s25   ;;  %s6874_s30 = sand.u32 1, %s4561_s17  }
  0x17   : > { %s4089_s4 = smul.u32 1152, %s6874_s30  ;;  %p4718_p6 = pnand %p6884_p4, %p87_p5 }
  0x18   : > { %s3845_s6 = smul.u32 384, %s4585_s23  ;;  %s6913_s1 = sld [smem:[#allocation67_spill]] }
  0x19   : > { %s197_s10 = scalar_lea.vmem [#allocation6], %s4089_s4  ;;  %p3839_p7 = scmp.ge.s32.totalorder %s4593_s25, 1 }
  0x1a   : > { %s207_s11 = sshll.u32 %s197_s10, 4  ;;  %s4727_s28 = scalar_lea.sflag [#allocation7], %s193_s29  ;;  %s208_s11 = int_to_ptr.vmem [resolvable:$true] %s207_s11 }
  0x1b   : > { %p6881_p8 = pneg %p4718_p6  ;;  %s4374_s30 = scalar_lea.vmem %s208_s11, 18432 }
  0x1c   : > { %p4375_p9 = scmp.ne.s32.totalorder %s208_s11, %s4374_s30  ;;  %s4595_s26 = smov [#allocation6]  }
  0x1d   : > { %s4379_s3 = sshll.u32 %s4595_s26, 4  ;;  %s4380_s3 = int_to_ptr.vmem [resolvable:$false] %s4379_s3 }
  0x1e   : > { %s206_s9 = scalar_lea.hbm %s6913_s1, %s3845_s6  ;;  %p4377_p10 = pnand %p4375_p9, %p6881_p8 }
  0x1f   : > { %s4381_s22 = scalar_lea.vmem %s4380_s3, 36864  ;;  %p4382_p12 = scmp.lt.s32.totalorder %s208_s11, %s4380_s3 }
  0x20   : > { %p4378_p11 = pneg %p4377_p10  ;;  %p4383_p13 = scmp.lt.s32.totalorder %s4381_s22, %s4374_s30 }
  0x22   : > { %p4384_p2 = por %p4383_p13, %p4382_p12 }
  0x24   : > { %p4385_p5 = pnand %p4384_p2, %p4378_p11 }
  0x26   : > { %4388 = shalt.err (!%p4385_p5)
}
  0x27   : > { %s4596_s4 = smov 1152   ;;  %s6877_s3 = smov 384  }
  0x28   : > { %s6878_s22 = smov 24   ;;  %p234_p9 = scmp.lt.s32.totalorder %s4593_s25, 7 }
  0x29   : > { %4110 = dma.hbm_to_vmem [thread:$0]  (!%p4718_p6), %s206_s9, 18432, %s208_s11, %s4727_s28, %s4596_s4, %s6877_s3, %s6878_s22  }
  0x2a   : > { %p4742_p10 = pnand %p3839_p7, %p234_p9  ;;  %s4747_s29 = sadd.s32 4294967295, %s4593_s25  }
  0x2b   : > { %s3831_s30 = sadd.s32 4294967294, %s4593_s25   ;;  %s6915_s6 = sadd.s32 1, %s4585_s23 }
  0x2c   : > { %s7044_s6 = smov (%p4700_p1, %s6915_s6), 0  ;;  %s41_s7 = sadd.s32 1, %s4589_s24 }
  0x2d   : > { %6916 = sst [smem:[#allocation18_spill]] %s7044_s6  ;;  %s50_s8 = sadd.s32 1, %s4573_s20 }
  0x2e   : > { %s7046_s7 = smov (!%p4700_p1, %s41_s7), %s4589_s24  ;;  %p57_p7 = scmp.ne.s32.totalorder %s4573_s20, %s4569_s19 }
  0x2f   : > { %p63_p11 = scmp.ne.s32.totalorder %s4569_s19, %s4565_s18  ;;  %p43_p12 = scmp.ge.s32.totalorder %s7046_s7, 2 }
  0x30   : > { %p64_p13 = scmp.eq.s32.totalorder %s4747_s29, 0  ;;  %p4768_p2 = por %p58_p0, %p57_p7 }
  0x31   : > { %s74_s10 = ssub.s32 %s4585_s23, %s7044_s6  ;;  %s7048_s7 = smov (%p43_p12, %s7046_s7), 0 }
  0x32   : > { %6918 = sst [smem:[#allocation19_spill]] %s7048_s7  ;;  %p4776_p1 = por %p64_p13, %p63_p11 }
  0x33   : > { %p76_p5 = scmp.eq.s32.totalorder %s74_s10, 0  ;;  %s45_s18 = ssub.s32 %s4589_s24, %s7048_s7 }
  0x34   : > { %p4785_p9 = por %p91_p3, %p64_p13  ;;  %p48_p0 = scmp.eq.s32.totalorder %s45_s18, 0 }
  0x35   : > { %s129_s4 = sor.u32 %s74_s10, %s45_s18  ;;  %s6922_s3 = sadd.s32 1, %s4561_s17 }
  0x36   : > { %s6920_s11 = scalar_select %p4785_p9, 1, 0 }
  0x37   : > { %s4792_s22 = scalar_select %p76_p5, %s4561_s17, %s6922_s3  }
  0x38   : > { %6921 = sst [smem:[#allocation20_spill]] %s6920_s11  ;;  %p130_p7 = scmp.eq.s32.totalorder %s129_s4, 0 }
  0x39   : > { %6923 = sst [smem:[#allocation21_spill]] %s4792_s22  ;;  %s132_s6 = sadd.s32 1, %s4549_s14 }
  0x3a   : > { %s4795_s1 = scalar_select %p48_p0, %s4573_s20, %s50_s8  }
  0x3b   : > { %p142_p11 = scmp.ne.s32.totalorder %s4549_s14, %s4545_s13  ;;  %p143_p12 = scmp.eq.s32.totalorder %s4747_s29, 5 }
  0x3c   : > { %6924 = sst [smem:[#allocation22_spill]] %s4795_s1  ;;  %p148_p13 = scmp.ne.s32.totalorder %s4545_s13, %s4541_s12 }
  0x3d   : > { %s4802_s7 = scalar_select %p130_p7, %s4549_s14, %s132_s6  }
  0x3e   : > { %p4804_p3 = por %p143_p12, %p142_p11  ;;  %p149_p8 = scmp.eq.s32.totalorder %s3831_s30, 5 }
  0x3f   : > { %6925 = sst [smem:[#allocation23_spill]] %s4802_s7  ;;  %s169_s21 = sand.u32 1, %s4573_s20  }
  0x40   : > { %s4087_s11 = smul.u32 1536, %s169_s21  ;;  %p4811_p4 = por %p149_p8, %p148_p13 }
  0x41   : > { %s4088_s3 = smul.u32 24576, %s4589_s24  ;;  %p6928_p5 = scmp.lt.s32.totalorder %s4593_s25, 6 }
  0x42   : > { %s6927_s10 = scalar_select %p4811_p4, 1, 0 }
  0x43   : > { %p4820_p0 = pnand %p6928_p5, %p4768_p2  ;;  %s6930_s0 = sld [smem:[#allocation66_spill]] }
  0x44   : > { %s173_s1 = scalar_lea.vmem [#allocation3], %s4087_s11  ;;  %s170_s20 = scalar_lea.sflag [#allocation4], %s169_s21 }
  0x45   : > { %s183_s30 = sshll.u32 %s173_s1, 4  ;;  %p4391_p8 = pneg %p4820_p0  ;;  %s184_s30 = int_to_ptr.vmem [resolvable:$true] %s183_s30 }
  0x46   : > { %s4402_s22 = scalar_lea.vmem %s184_s30, 24576  ;;  %s4599_s9 = smov [#allocation3]  }
  0x47   : > { %p4403_p7 = scmp.ne.s32.totalorder %s184_s30, %s4402_s22  ;;  %s4407_s24 = sshll.u32 %s4599_s9, 4  ;;  %s4408_s24 = int_to_ptr.vmem [resolvable:$false] %s4407_s24 }
  0x48   : > { %s4409_s7 = scalar_lea.vmem %s4408_s24, 49152  ;;  %p4410_p2 = scmp.lt.s32.totalorder %s184_s30, %s4408_s24 }
  0x49   : > { %s182_s4 = scalar_lea.hbm %s6930_s0, %s4088_s3  ;;  %p4405_p11 = pnand %p4403_p7, %p4391_p8 }
  0x4a   : > { %p4411_p13 = scmp.lt.s32.totalorder %s4409_s7, %s4402_s22 }
  0x4b   : > { %p4406_p12 = pneg %p4405_p11 }
  0x4c   : > { %p4412_p5 = por %p4411_p13, %p4410_p2 }
  0x4e   : > { %p4413_p4 = pnand %p4412_p5, %p4406_p12 }
  0x50   : > { %4416 = shalt.err (!%p4413_p4)
}
  0x51   : > { %s6931_s1 = smov 24   ;;  %s6932_s11 = smov 384  }
  0x52   : > { %4107 = dma.hbm_to_vmem [thread:$0]  (!%p4820_p0), %s182_s4, 24576, %s184_s30, %s170_s20, %s6932_s11, %s6932_s11, %s6931_s1  }
  0x53   : > { %s6933_s21 = sand.u32 1, %s4561_s17   ;;  %s3846_s6 = smul.u32 48, %s4585_s23 }
  0x54   : > { %s4090_s3 = smul.u32 3, %s6933_s21  ;;  %p6934_p8 = pneg %p4718_p6 }
  0x55   : > { %s227_s24 = scalar_lea.hbm %s6872_s2, %s3846_s6  ;;  %s4600_s8 = smov [#allocation8]  }
  0x56   : > { %s221_s22 = scalar_lea.vmem [#allocation8], %s4090_s3  ;;  %s4435_s14 = sshll.u32 %s4600_s8, 4  ;;  %s4436_s14 = int_to_ptr.vmem [resolvable:$false] %s4435_s14 }
  0x57   : > { %s229_s7 = sshll.u32 %s221_s22, 4  ;;  %s4437_s20 = scalar_lea.vmem %s4436_s14, 96  ;;  %s230_s7 = int_to_ptr.vmem [resolvable:$true] %s229_s7 }
  0x58   : > { %s4430_s0 = scalar_lea.vmem %s230_s7, 48  ;;  %p4438_p0 = scmp.lt.s32.totalorder %s230_s7, %s4436_s14 }
  0x59   : > { %p4431_p4 = scmp.ne.s32.totalorder %s230_s7, %s4430_s0  ;;  %p4439_p12 = scmp.lt.s32.totalorder %s4437_s20, %s4430_s0 }
  0x5b   : > { %p4433_p7 = pnand %p4431_p4, %p6934_p8  ;;  %p4440_p2 = por %p4439_p12, %p4438_p0 }
  0x5d   : > { %p4434_p11 = pneg %p4433_p7 }
  0x5f   : > { %p4441_p13 = pnand %p4440_p2, %p4434_p11 }
  0x61   : > { %4444 = shalt.err (!%p4441_p13)
}
  0x62   : > { %4113 = dma.hbm_to_vmem [thread:$0]  (!%p4718_p6), %s227_s24, 48, %s230_s7, %s4727_s28  }
  0x63   : > { %238 = sbr.rel (%p4742_p10) target bundleno = 821 (0x335), region = 32 }
  0x68   : > { %s240_s4 = sand.u32 1, %s4569_s19  }
  0x69   : > { %s4091_s30 = smul.u32 1536, %s240_s4  ;;  %s241_s1 = scalar_lea.sflag [#allocation4], %s240_s4 }
  0x6b   : > { %s4849_s11 = scalar_lea.vmem [#allocation3], %s4091_s30 }
  0x6c   : > { %4528 = dma.done.wait (%p4776_p1), %s241_s1, 24576  }
  0x6d   : > { %4530 = vsyncadd (%p4776_p1), %s241_s1, 4294942720  ;;  %s249_s14 = sand.u32 1, %s4747_s29   ;;  %s251_s28 = sand.u32 1, %s4557_s16  }
  0x6e   : > { %s4092_s5 = smul.u32 1152, %s251_s28  ;;  %s250_s26 = scalar_lea.sflag [#allocation7], %s249_s14 }
  0x70   : > { %s4859_s21 = scalar_lea.vmem [#allocation6], %s4092_s5 }
  0x71   : > { %4532 = dma.done.wait (%p4785_p9), %s250_s26, 18480  }
  0x72   : > { %4534 = vsyncadd (%p4785_p9), %s250_s26, 4294948816  ;;  %v6899_v0 = vmov 0.0   ;;  %v928_v1 = vld [vmem:[%s4859_s21 + $0x170] sm:$0xff]  ;;  %v927_v2 = vld [vmem:[%s4859_s21 + $0x168] sm:$0xff]  ;;  %s5694_s29 = smul.u32 3, %s251_s28  ;;  %s292_s27 = sand.u32 1, %s4545_s13  }
  0x73   : > { %1611 = vmatprep.mubr.f32.mxu1 %v6899_v0  ;;  %v4869_v3 = vld [vmem:[%s4859_s21 + $0x470] sm:$0xff]  ;;  %1026 = vmatprep.subr.mxu0 %v928_v1  ;;  %v925_v4 = vld [vmem:[%s4859_s21 + $0x158] sm:$0xff]  ;;  %v4874_v5 = vld [vmem:[%s4859_s21 + $0x468] sm:$0xff]  ;;  %s4094_s6 = smul.u32 1536, %s292_s27  ;;  %s7021_s9 = sld [smem:[#allocation15_spill]] }
  0x74   : > { %4055 = vmatprep.subr.mxu1 %v4869_v3  ;;  %v924_v6 = vld [vmem:[%s4859_s21 + $0x150] sm:$0xff]  ;;  %1027 = vmatpush1.msra.mxu0 %v927_v2  ;;  %v4879_v7 = vld [vmem:[%s4859_s21 + $0x458] sm:$0xff]  ;;  %v922_v8 = vld [vmem:[%s4859_s21 + $0x140] sm:$0xff]  ;;  %s262_s3 = scalar_lea.vmem [#allocation8], %s5694_s29  ;;  %s7022_s24 = sld [smem:[#allocation16_spill]] }
  0x75   : > { %4071 = vmatpush1.msra.mxu1 %v4874_v5  ;;  %v4883_v9 = vld [vmem:[%s4859_s21 + $0x450] sm:$0xff]  ;;  %1028 = vmatprep.subr.mxu0 %v925_v4  ;;  %v921_v10 = vld [vmem:[%s4859_s21 + $0x138] sm:$0xff]  ;;  %v4888_v11 = vld [vmem:[%s4859_s21 + $0x440] sm:$0xff]  ;;  %s5751_s18 = scalar_lea.vmem [#allocation9], %s4094_s6  ;;  %s6795_s14 = scalar_lea.sflag [#allocation5], %s292_s27 }
  0x76   : > { %4056 = vmatprep.subr.mxu1 %v4879_v7  ;;  %1029 = vmatpush1.msra.mxu0 %v924_v6  ;;  %v919_v12 = vld [vmem:[%s4859_s21 + $0x128] sm:$0xff]  ;;  %v4893_v13 = vld [vmem:[%s4859_s21 + $0x438] sm:$0xff]  ;;  %v918_v15 = vld [vmem:[%s4859_s21 + $0x120] sm:$0xff]  ;;  %s3691_s4 = sshll.u32 %s5751_s18, 4  ;;  %s4602_s5 = smov [#allocation9]   ;;  %s6788_s4 = int_to_ptr.vmem [resolvable:$true] %s3691_s4 }
  0x77   : > { %4072 = vmatpush1.msra.mxu1 %v4883_v9  ;;  %v4896_v14 = vld [vmem:[%s4859_s21 + $0x428] sm:$0xff]  ;;  %1030 = vmatprep.subr.mxu0 %v922_v8  ;;  %v4901_v16 = vld [vmem:[%s4859_s21 + $0x420] sm:$0xff]  ;;  %v916_v17 = vld [vmem:[%s4859_s21 + $0x110] sm:$0xff]  ;;  %s4445_s28 = scalar_lea.vmem %s6788_s4, 24576  ;;  %s4449_s26 = sshll.u32 %s4602_s5, 4  ;;  %s4450_s26 = int_to_ptr.vmem [resolvable:$false] %s4449_s26 }
  0x78   : > { %4057 = vmatprep.subr.mxu1 %v4888_v11  ;;  %1031 = vmatpush1.msra.mxu0 %v921_v10  ;;  %v4906_v18 = vld [vmem:[%s4859_s21 + $0x410] sm:$0xff]  ;;  %v915_v19 = vld [vmem:[%s4859_s21 + $0x108] sm:$0xff]  ;;  %v913_v21 = vld [vmem:[%s4859_s21 + $0xf8] sm:$0xff]  ;;  %p4446_p6 = scmp.ne.s32.totalorder %s6788_s4, %s4445_s28  ;;  %p4452_p9 = scmp.lt.s32.totalorder %s6788_s4, %s4450_s26 }
  0x79   : > { %4073 = vmatpush1.msra.mxu1 %v4893_v13  ;;  %1032 = vmatprep.subr.mxu0 %v919_v12  ;;  %v4911_v20 = vld [vmem:[%s4859_s21 + $0x408] sm:$0xff]  ;;  %v4916_v22 = vld [vmem:[%s4859_s21 + $0x3f8] sm:$0xff]  ;;  %v912_v23 = vld [vmem:[%s4859_s21 + $0xf0] sm:$0xff]  ;;  %s3683_s22 = smul.u32 3, %s7021_s9 }
  0x7a   : > { %4058 = vmatprep.subr.mxu1 %v4896_v14  ;;  %1033 = vmatpush1.msra.mxu0 %v918_v15  ;;  %v4921_v24 = vld [vmem:[%s4859_s21 + $0x3f0] sm:$0xff]  ;;  %v910_v25 = vld [vmem:[%s4859_s21 + $0xe0] sm:$0xff]  ;;  %v909_v27 = vld [vmem:[%s4859_s21 + $0xd8] sm:$0xff]  ;;  %s4095_s7 = smul.u32 576, %s7022_s24  ;;  %p4447_p10 = pnand %p4446_p6, %p4804_p3 }
  0x7b   : > { %4074 = vmatpush1.msra.mxu1 %v4901_v16  ;;  %1034 = vmatprep.subr.mxu0 %v916_v17  ;;  %v4926_v26 = vld [vmem:[%s4859_s21 + $0x3e0] sm:$0xff]  ;;  %v4931_v28 = vld [vmem:[%s4859_s21 + $0x3d8] sm:$0xff]  ;;  %v907_v29 = vld [vmem:[%s4859_s21 + $0xc8] sm:$0xff] }
  0x7c   : > { %4059 = vmatprep.subr.mxu1 %v4906_v18  ;;  %1035 = vmatpush1.msra.mxu0 %v915_v19  ;;  %v4936_v30 = vld [vmem:[%s4859_s21 + $0x3c8] sm:$0xff]  ;;  %v906_v31 = vld [vmem:[%s4859_s21 + $0xc0] sm:$0xff]  ;;  %v904_v33 = vld [vmem:[%s4859_s21 + $0xb0] sm:$0xff]  ;;  %s3688_s8 = sadd.s32 %s4095_s7, %s3683_s22  ;;  %p4448_p1 = pneg %p4447_p10 }
  0x7d   : > { %4075 = vmatpush1.msra.mxu1 %v4911_v20  ;;  %1036 = vmatprep.subr.mxu0 %v913_v21  ;;  %v4941_v32 = vld [vmem:[%s4859_s21 + $0x3c0] sm:$0xff]  ;;  %v4946_v34 = vld [vmem:[%s4859_s21 + $0x3b0] sm:$0xff]  ;;  %v903_v35 = vld [vmem:[%s4859_s21 + $0xa8] sm:$0xff]  ;;  %s3842_s20 = sshll.u32 %s3688_s8, 7 }
  0x7e   : > { %4060 = vmatprep.subr.mxu1 %v4916_v22  ;;  %1037 = vmatpush1.msra.mxu0 %v912_v23  ;;  %v4951_v36 = vld [vmem:[%s4859_s21 + $0x3a8] sm:$0xff]  ;;  %v901_v37 = vld [vmem:[%s4859_s21 + $0x98] sm:$0xff]  ;;  %v900_v39 = vld [vmem:[%s4859_s21 + $0x90] sm:$0xff] }
  0x7f   : > { %4076 = vmatpush1.msra.mxu1 %v4921_v24  ;;  %1038 = vmatprep.subr.mxu0 %v910_v25  ;;  %v4956_v38 = vld [vmem:[%s4859_s21 + $0x398] sm:$0xff]  ;;  %v4961_v40 = vld [vmem:[%s4859_s21 + $0x390] sm:$0xff]  ;;  %v898_v41 = vld [vmem:[%s4859_s21 + $0x80] sm:$0xff] }
  0x80   : > { %4061 = vmatprep.subr.mxu1 %v4926_v26  ;;  %1039 = vmatpush1.msra.mxu0 %v909_v27  ;;  %v4966_v42 = vld [vmem:[%s4859_s21 + $0x380] sm:$0xff]  ;;  %v897_v43 = vld [vmem:[%s4859_s21 + $0x78] sm:$0xff]  ;;  %v895_v45 = vld [vmem:[%s4859_s21 + $0x68] sm:$0xff] }
  0x81   : > { %4077 = vmatpush1.msra.mxu1 %v4931_v28  ;;  %1040 = vmatprep.subr.mxu0 %v907_v29  ;;  %v4971_v44 = vld [vmem:[%s4859_s21 + $0x378] sm:$0xff]  ;;  %v4976_v46 = vld [vmem:[%s4859_s21 + $0x368] sm:$0xff]  ;;  %v894_v47 = vld [vmem:[%s4859_s21 + $0x60] sm:$0xff] }
  0x82   : > { %4062 = vmatprep.subr.mxu1 %v4936_v30  ;;  %1041 = vmatpush1.msra.mxu0 %v906_v31  ;;  %v4981_v48 = vld [vmem:[%s4859_s21 + $0x360] sm:$0xff]  ;;  %v892_v49 = vld [vmem:[%s4859_s21 + $0x50] sm:$0xff]  ;;  %v891_v51 = vld [vmem:[%s4859_s21 + $0x48] sm:$0xff] }
  0x83   : > { %4078 = vmatpush1.msra.mxu1 %v4941_v32  ;;  %1042 = vmatprep.subr.mxu0 %v904_v33  ;;  %v4986_v50 = vld [vmem:[%s4859_s21 + $0x350] sm:$0xff]  ;;  %v4991_v52 = vld [vmem:[%s4859_s21 + $0x348] sm:$0xff]  ;;  %v889_v53 = vld [vmem:[%s4859_s21 + $0x38] sm:$0xff] }
  0x84   : > { %4063 = vmatprep.subr.mxu1 %v4946_v34  ;;  %1043 = vmatpush1.msra.mxu0 %v903_v35  ;;  %v4996_v54 = vld [vmem:[%s4859_s21 + $0x338] sm:$0xff]  ;;  %v888_v55 = vld [vmem:[%s4859_s21 + $0x30] sm:$0xff]  ;;  %v886_v57 = vld [vmem:[%s4859_s21 + $0x20] sm:$0xff] }
  0x85   : > { %4079 = vmatpush1.msra.mxu1 %v4951_v36  ;;  %1044 = vmatprep.subr.mxu0 %v901_v37  ;;  %v5001_v56 = vld [vmem:[%s4859_s21 + $0x330] sm:$0xff]  ;;  %v5006_v58 = vld [vmem:[%s4859_s21 + $0x320] sm:$0xff]  ;;  %v885_v59 = vld [vmem:[%s4859_s21 + $0x18] sm:$0xff] }
  0x86   : > { %4064 = vmatprep.subr.mxu1 %v4956_v38  ;;  %1045 = vmatpush1.msra.mxu0 %v900_v39  ;;  %v5011_v60 = vld [vmem:[%s4859_s21 + $0x318] sm:$0xff]  ;;  %v883_v61 = vld [vmem:[%s4859_s21 + $0x8] sm:$0xff]  ;;  %v882_v63 = vld [vmem:[%s4859_s21] sm:$0xff] }
  0x87   : > { %4080 = vmatpush1.msra.mxu1 %v4961_v40  ;;  %1046 = vmatprep.subr.mxu0 %v898_v41  ;;  %v5016_v62 = vld [vmem:[%s4859_s21 + $0x308] sm:$0xff]  ;;  %v5021_v1 = vld [vmem:[%s4859_s21 + $0x300] sm:$0xff]  ;;  %v976_v2 = vld [vmem:[%s4859_s21 + $0x2f0] sm:$0xff] }
  0x88   : > { %4065 = vmatprep.subr.mxu1 %v4966_v42  ;;  %1047 = vmatpush1.msra.mxu0 %v897_v43  ;;  %v728_v4 = vld [vmem:[%s4849_s11 + $0x130] sm:$0xff]  ;;  %v975_v6 = vld [vmem:[%s4859_s21 + $0x2e8] sm:$0xff]  ;;  %v973_v8 = vld [vmem:[%s4859_s21 + $0x2d8] sm:$0xff] }
  0x89   : > { %4081 = vmatpush1.msra.mxu1 %v4971_v44  ;;  %1048 = vmatprep.subr.mxu0 %v895_v45  ;;  %v929_v10 = vld [vmem:[%s4859_s21 + $0x178] sm:$0xff]  ;;  %v972_v12 = vld [vmem:[%s4859_s21 + $0x2d0] sm:$0xff]  ;;  %v970_v15 = vld [vmem:[%s4859_s21 + $0x2c0] sm:$0xff] }
  0x8a   : > { %4066 = vmatprep.subr.mxu1 %v4976_v46  ;;  %1049 = vmatpush1.msra.mxu0 %v894_v47  ;;  %v731_v17 = vld [vmem:[%s4849_s11 + $0x148] sm:$0xff]  ;;  %v969_v19 = vld [vmem:[%s4859_s21 + $0x2b8] sm:$0xff]  ;;  %v966_v23 = vld [vmem:[%s4859_s21 + $0x2a0] sm:$0xff] }
  0x8b   : > { %4082 = vmatpush1.msra.mxu1 %v4981_v48  ;;  %1050 = vmatprep.subr.mxu0 %v892_v49  ;;  %v967_v21 = vld [vmem:[%s4859_s21 + $0x2a8] sm:$0xff]  ;;  %v926_v25 = vld [vmem:[%s4859_s21 + $0x160] sm:$0xff]  ;;  %v964_v27 = vld [vmem:[%s4859_s21 + $0x290] sm:$0xff] }
  0x8c   : > { %4067 = vmatprep.subr.mxu1 %v4986_v50  ;;  %1051 = vmatpush1.msra.mxu0 %v891_v51  ;;  %v734_v29 = vld [vmem:[%s4849_s11 + $0x160] sm:$0xff]  ;;  %v963_v31 = vld [vmem:[%s4859_s21 + $0x288] sm:$0xff]  ;;  %v961_v33 = vld [vmem:[%s4859_s21 + $0x278] sm:$0xff] }
  0x8d   : > { %4083 = vmatpush1.msra.mxu1 %v4991_v52  ;;  %1052 = vmatprep.subr.mxu0 %v889_v53  ;;  %v960_v35 = vld [vmem:[%s4859_s21 + $0x270] sm:$0xff]  ;;  %v923_v37 = vld [vmem:[%s4859_s21 + $0x148] sm:$0xff]  ;;  %v958_v39 = vld [vmem:[%s4859_s21 + $0x260] sm:$0xff] }
  0x8e   : > { %4068 = vmatprep.subr.mxu1 %v4996_v54  ;;  %1053 = vmatpush1.msra.mxu0 %v888_v55  ;;  %v737_v41 = vld [vmem:[%s4849_s11 + $0x178] sm:$0xff]  ;;  %v955_v45 = vld [vmem:[%s4859_s21 + $0x248] sm:$0xff]  ;;  %v954_v47 = vld [vmem:[%s4859_s21 + $0x240] sm:$0xff] }
  0x8f   : > { %4084 = vmatpush1.msra.mxu1 %v5001_v56  ;;  %1054 = vmatprep.subr.mxu0 %v886_v57  ;;  %v957_v43 = vld [vmem:[%s4859_s21 + $0x258] sm:$0xff]  ;;  %v920_v49 = vld [vmem:[%s4859_s21 + $0x130] sm:$0xff]  ;;  %v951_v55 = vld [vmem:[%s4859_s21 + $0x228] sm:$0xff] }
  0x90   : > { %4069 = vmatprep.subr.mxu1 %v5006_v58  ;;  %1055 = vmatpush1.msra.mxu0 %v885_v59  ;;  %v952_v51 = vld [vmem:[%s4859_s21 + $0x230] sm:$0xff]  ;;  %v949_v57 = vld [vmem:[%s4859_s21 + $0x218] sm:$0xff] }
  0x91   : > { %4085 = vmatpush1.msra.mxu1 %v5011_v60  ;;  %1056 = vmatprep.subr.mxu0 %v883_v61  ;;  %v740_v53 = vld [vmem:[%s4849_s11 + $0x190] sm:$0xff]  ;;  %v917_v61 = vld [vmem:[%s4859_s21 + $0x118] sm:$0xff] }
  0x92   : > { %4070 = vmatprep.subr.mxu1 %v5016_v62  ;;  %1057 = vmatpush1.msra.mxu0 %v882_v63  ;;  %v948_v59 = vld [vmem:[%s4859_s21 + $0x210] sm:$0xff]  ;;  %v946_v63 = vld [vmem:[%s4859_s21 + $0x200] sm:$0xff] }
  0x93   : > { %4086 = vmatpush1.msra.mxu1 %v5021_v1  ;;  %1058 = vmatprep.subr.mxu0 %v976_v2  ;;  %v743_v2 = vld [vmem:[%s4849_s11 + $0x1a8] sm:$0xff] }
  0x94   : > { %1612 = vmatmul.mubr.f32.vlgmr.msra.gmra.mxu1 %v728_v4  ;;  %1059 = vmatpush2.msra.mxu0 %v975_v6  ;;  %v945_v4 = vld [vmem:[%s4859_s21 + $0x1f8] sm:$0xff]  ;;  %v943_v6 = vld [vmem:[%s4859_s21 + $0x1e8] sm:$0xff] }
  0x95   : > { %1924 = vmatprep.subr.mxu1 %v6899_v0  ;;  %1060 = vmatprep.subr.mxu0 %v973_v8  ;;  %v5071_v8 = vld [vmem:[%s4849_s11 + $0x8] sm:$0xff] }
  0x96   : > { %1925 = vmatpush1.msra.mxu1 %v929_v10  ;;  %1061 = vmatpush2.msra.mxu0 %v972_v12  ;;  %v942_v10 = vld [vmem:[%s4859_s21 + $0x1e0] sm:$0xff]  ;;  %v940_v12 = vld [vmem:[%s4859_s21 + $0x1d0] sm:$0xff] }
  0x97   : > { %1617 = vmatprep.mubr.f32.mxu1 %v6899_v0  ;;  %1062 = vmatprep.subr.mxu0 %v970_v15  ;;  %v746_v15 = vld [vmem:[%s4849_s11 + $0x1c0] sm:$0xff] }
  0x98   : > { %1618 = vmatmul.mubr.f32.gmra.mxu1 %v731_v17  ;;  %1063 = vmatpush2.msra.mxu0 %v969_v19  ;;  %v939_v17 = vld [vmem:[%s4859_s21 + $0x1c8] sm:$0xff]  ;;  %v937_v19 = vld [vmem:[%s4859_s21 + $0x1b8] sm:$0xff] }
  0x99   : > { %1623 = vmatprep.mubr.f32.mxu1 %v6899_v0  ;;  %1064 = vmatprep.subr.mxu0 %v967_v21  ;;  %v914_v21 = vld [vmem:[%s4859_s21 + $0x100] sm:$0xff] }
  0x9a   : > { %1926 = vmatprep.subr.mxu1 %v6899_v0  ;;  %1065 = vmatpush2.msra.mxu0 %v966_v23  ;;  %v936_v23 = vld [vmem:[%s4859_s21 + $0x1b0] sm:$0xff] }
  0x9b   : > { %1927 = vmatpush1.msra.mxu1 %v926_v25  ;;  %1066 = vmatprep.subr.mxu0 %v964_v27  ;;  %v934_v25 = vld [vmem:[%s4859_s21 + $0x1a0] sm:$0xff]  ;;  %v749_v27 = vld [vmem:[%s4849_s11 + $0x1d8] sm:$0xff] }
  0x9c   : > { %1624 = vmatmul.mubr.f32.gmra.mxu1 %v734_v29  ;;  %1067 = vmatpush2.msra.mxu0 %v963_v31  ;;  %v933_v29 = vld [vmem:[%s4859_s21 + $0x198] sm:$0xff]  ;;  %v931_v31 = vld [vmem:[%s4859_s21 + $0x188] sm:$0xff] }
  0x9d   : > { %1629 = vmatprep.mubr.f32.mxu1 %v6899_v0  ;;  %1068 = vmatprep.subr.mxu0 %v961_v33  ;;  %v911_v33 = vld [vmem:[%s4859_s21 + $0xe8] sm:$0xff] }
  0x9e   : > { %1928 = vmatprep.subr.mxu1 %v6899_v0  ;;  %1069 = vmatpush2.msra.mxu0 %v960_v35  ;;  %v930_v35 = vld [vmem:[%s4859_s21 + $0x180] sm:$0xff] }
  0x9f   : > { %1929 = vmatpush1.msra.mxu1 %v923_v37  ;;  %1070 = vmatprep.subr.mxu0 %v958_v39  ;;  %v5092_v37 = vld [vmem:[%s4849_s11] sm:$0xff]  ;;  %v752_v39 = vld [vmem:[%s4849_s11 + $0x1f0] sm:$0xff] }
  0xa0   : > { %1630 = vmatmul.mubr.f32.gmra.mxu1 %v737_v41  ;;  %1071 = vmatpush2.msra.mxu0 %v957_v43  ;;  %v5097_v41 = vld [vmem:[%s4849_s11 + $0x20] sm:$0xff]  ;;  %v908_v43 = vld [vmem:[%s4859_s21 + $0xd0] sm:$0xff] }
  0xa1   : > { %1635 = vmatprep.mubr.f32.mxu1 %v6899_v0  ;;  %1072 = vmatprep.subr.mxu0 %v955_v45  ;;  %v5105_v45 = vld [vmem:[%s4849_s11 + $0x18] sm:$0xff] }
  0xa2   : > { %1930 = vmatprep.subr.mxu1 %v6899_v0  ;;  %1073 = vmatpush2.msra.mxu0 %v954_v47  ;;  %v755_v47 = vld [vmem:[%s4849_s11 + $0x208] sm:$0xff] }
  0xa3   : > { %1931 = vmatpush1.msra.mxu1 %v920_v49  ;;  %1074 = vmatprep.subr.mxu0 %v952_v51  ;;  %v5111_v49 = vld [vmem:[%s4849_s11 + $0x38] sm:$0xff]  ;;  %v758_v51 = vld [vmem:[%s4849_s11 + $0x220] sm:$0xff] }
  0xa4   : > { %1636 = vmatmul.mubr.f32.gmra.mxu1 %v740_v53  ;;  %1075 = vmatpush2.msra.mxu0 %v951_v55  ;;  %v5124_v53 = vld [vmem:[%s4849_s11 + $0x50] sm:$0xff]  ;;  %v5133_v55 = vld [vmem:[%s4849_s11 + $0x48] sm:$0xff] }
  0xa5   : > { %1641 = vmatprep.mubr.f32.mxu1 %v6899_v0  ;;  %1076 = vmatprep.subr.mxu0 %v949_v57  ;;  %v899_v57 = vld [vmem:[%s4859_s21 + $0x88] sm:$0xff] }
  0xa6   : > { %1932 = vmatprep.subr.mxu1 %v6899_v0  ;;  %1077 = vmatpush2.msra.mxu0 %v948_v59  ;;  %v5139_v59 = vld [vmem:[%s4849_s11 + $0x68] sm:$0xff] }
  0xa7   : > { %1933 = vmatpush1.msra.mxu1 %v917_v61  ;;  %1078 = vmatprep.subr.mxu0 %v946_v63  ;;  %v5147_v61 = vld [vmem:[%s4849_s11 + $0x60] sm:$0xff]  ;;  %v764_v63 = vld [vmem:[%s4849_s11 + $0x250] sm:$0xff] }
  0xa8   : > { %1642 = vmatmul.mubr.f32.gmra.mxu1 %v743_v2  ;;  %1079 = vmatpush2.msra.mxu0 %v945_v4  ;;  %v893_v2 = vld [vmem:[%s4859_s21 + $0x58] sm:$0xff] }
  0xa9   : > { %1647 = vmatprep.mubr.f32.mxu1 %v6899_v0  ;;  %1080 = vmatprep.subr.mxu0 %v943_v6  ;;  %v5161_v4 = vld [vmem:[%s4849_s11 + $0x78] sm:$0xff]  ;;  %v767_v6 = vld [vmem:[%s4849_s11 + $0x268] sm:$0xff] }
  0xaa   : > { %1090 = vmatprep.mubr.f32.mxu0 %v5071_v8  ;;  %1081 = vmatpush2.msra.mxu0 %v942_v10  ;;  %v5166_v10 = vld [vmem:[%s4849_s11 + $0x98] sm:$0xff] }
  0xab   : > { %1934 = vmatprep.subr.mxu1 %v6899_v0  ;;  %1082 = vmatprep.subr.mxu0 %v940_v12  ;;  %v5175_v12 = vld [vmem:[%s4849_s11 + $0x90] sm:$0xff] }
  0xac   : > { %1648 = vmatmul.mubr.f32.gmra.mxu1 %v746_v15  ;;  %1083 = vmatpush2.msra.mxu0 %v939_v17  ;;  %v887_v15 = vld [vmem:[%s4859_s21 + $0x28] sm:$0xff]  ;;  %v5181_v17 = vld [vmem:[%s4849_s11 + $0xb0] sm:$0xff] }
  0xad   : > { %1653 = vmatprep.mubr.f32.mxu1 %v6899_v0  ;;  %1084 = vmatprep.subr.mxu0 %v937_v19  ;;  %v5189_v19 = vld [vmem:[%s4849_s11 + $0xa8] sm:$0xff] }
  0xae   : > { %1935 = vmatpush1.msra.mxu1 %v914_v21  ;;  %1085 = vmatpush2.msra.mxu0 %v936_v23  ;;  %v773_v21 = vld [vmem:[%s4849_s11 + $0x298] sm:$0xff]  ;;  %v5194_v23 = vld [vmem:[%s4849_s11 + $0xc8] sm:$0xff] }
  0xaf   : > { %1936 = vmatprep.subr.mxu1 %v6899_v0  ;;  %1086 = vmatprep.subr.mxu0 %v934_v25  ;;  %v5203_v25 = vld [vmem:[%s4849_s11 + $0xc0] sm:$0xff] }
  0xb0   : > { %1654 = vmatmul.mubr.f32.gmra.mxu1 %v749_v27  ;;  %1087 = vmatpush2.msra.mxu0 %v933_v29  ;;  %v974_v27 = vld [vmem:[%s4859_s21 + $0x2e0] sm:$0xff]  ;;  %v776_v29 = vld [vmem:[%s4849_s11 + $0x2b0] sm:$0xff] }
  0xb1   : > { %1659 = vmatprep.mubr.f32.mxu1 %v6899_v0  ;;  %1088 = vmatprep.subr.mxu0 %v931_v31  ;;  %v5209_v31 = vld [vmem:[%s4849_s11 + $0xe0] sm:$0xff] }
  0xb2   : > { %1937 = vmatpush1.msra.mxu1 %v911_v33  ;;  %1089 = vmatpush2.msra.mxu0 %v930_v35  ;;  %v5217_v33 = vld [vmem:[%s4849_s11 + $0xd8] sm:$0xff]  ;;  %v779_v35 = vld [vmem:[%s4849_s11 + $0x2c8] sm:$0xff] }
  0xb3   : > { %1938 = vmatprep.subr.mxu1 %v6899_v0  ;;  %1091 = vmatmul.mubr.f32.vlgmr.msra.gmra.mxu0 %v5092_v37 }
  0xb4   : > { %1475 = vmatprep.subr.mxu0 %v4869_v3  ;;  %1660 = vmatmul.mubr.f32.gmra.mxu1 %v752_v39  ;;  %v905_v3 = vld [vmem:[%s4859_s21 + $0xb8] sm:$0xff] }
  0xb5   : > { %1476 = vmatpush1.msra.mxu0 %v4874_v5  ;;  %1096 = vmatprep.mubr.f32.mxu0 %v5097_v41  ;;  %v5119_v5 = vld [vmem:[%s4849_s11 + $0x30] sm:$0xff]  ;;  %v5222_v39 = vld [vmem:[%s4849_s11 + $0xf8] sm:$0xff] }
  0xb6   : > { %1665 = vmatprep.mubr.f32.mxu1 %v6899_v0  ;;  %1477 = vmatprep.subr.mxu0 %v4879_v7  ;;  %v902_v7 = vld [vmem:[%s4859_s21 + $0xa0] sm:$0xff] }
  0xb7   : > { %1939 = vmatpush1.msra.mxu1 %v908_v43  ;;  %1097 = vmatmul.mubr.f32.gmra.mxu0 %v5105_v45  ;;  %v5231_v43 = vld [vmem:[%s4849_s11 + $0xf0] sm:$0xff] }
  0xb8   : > { %1940 = vmatprep.subr.mxu1 %v6899_v0  ;;  %1666 = vmatmul.mubr.f32.gmra.mxu1 %v755_v47  ;;  %v965_v47 = vld [vmem:[%s4859_s21 + $0x298] sm:$0xff] }
  0xb9   : > { %1102 = vmatprep.mubr.f32.mxu0 %v5111_v49  ;;  %1671 = vmatprep.mubr.f32.mxu1 %v6899_v0 }
  0xba   : > { %1478 = vmatpush1.msra.mxu0 %v4883_v9  ;;  %1941 = vmatpush1.msra.mxu1 %v905_v3  ;;  %v761_v9 = vld [vmem:[%s4849_s11 + $0x238] sm:$0xff]  ;;  %v782_v3 = vld [vmem:[%s4849_s11 + $0x2e0] sm:$0xff] }
  0xbb   : > { %1479 = vmatprep.subr.mxu0 %v4888_v11  ;;  %1103 = vmatmul.mubr.f32.gmra.mxu0 %v5119_v5  ;;  %v896_v11 = vld [vmem:[%s4859_s21 + $0x70] sm:$0xff] }
  0xbc   : > { %1942 = vmatprep.subr.mxu1 %v6899_v0  ;;  %1672 = vmatmul.mubr.f32.gmra.mxu1 %v758_v51  ;;  %v5237_v51 = vld [vmem:[%s4849_s11 + $0x110] sm:$0xff] }
  0xbd   : > { %1108 = vmatprep.mubr.f32.mxu0 %v5124_v53  ;;  %1677 = vmatprep.mubr.f32.mxu1 %v6899_v0 }
  0xbe   : > { %1943 = vmatpush1.msra.mxu1 %v902_v7  ;;  %1480 = vmatpush1.msra.mxu0 %v4893_v13  ;;  %v5152_v13 = vld [vmem:[%s4849_s11 + $0x80] sm:$0xff]  ;;  %v5245_v7 = vld [vmem:[%s4849_s11 + $0x108] sm:$0xff] }
  0xbf   : > { %1944 = vmatprep.subr.mxu1 %v6899_v0  ;;  %1109 = vmatmul.mubr.f32.gmra.mxu0 %v5133_v55 }
  0xc0   : > { %1945 = vmatpush1.msra.mxu1 %v899_v57  ;;  %1114 = vmatprep.mubr.f32.mxu0 %v5139_v59  ;;  %v785_v57 = vld [vmem:[%s4849_s11 + $0x2f8] sm:$0xff] }
  0xc1   : > { %1678 = vmatmul.mubr.f32.gmra.mxu1 %v761_v9  ;;  %1946 = vmatprep.subr.mxu1 %v6899_v0  ;;  %v959_v9 = vld [vmem:[%s4859_s21 + $0x268] sm:$0xff] }
  0xc2   : > { %1683 = vmatprep.mubr.f32.mxu1 %v6899_v0  ;;  %1947 = vmatpush1.msra.mxu1 %v896_v11  ;;  %v5259_v11 = vld [vmem:[%s4849_s11 + $0x120] sm:$0xff] }
  0xc3   : > { %1481 = vmatprep.subr.mxu0 %v4896_v14  ;;  %1115 = vmatmul.mubr.f32.gmra.mxu0 %v5147_v61  ;;  %v890_v14 = vld [vmem:[%s4859_s21 + $0x40] sm:$0xff] }
  0xc4   : > { %1948 = vmatprep.subr.mxu1 %v6899_v0  ;;  %1120 = vmatprep.mubr.f32.mxu0 %v5152_v13 }
  0xc5   : > { %1684 = vmatmul.mubr.f32.gmra.mxu1 %v764_v63  ;;  %1482 = vmatpush1.msra.mxu0 %v4901_v16  ;;  %v770_v16 = vld [vmem:[%s4849_s11 + $0x280] sm:$0xff]  ;;  %v788_v63 = vld [vmem:[%s4849_s11 + $0x310] sm:$0xff] }
  0xc6   : > { %1689 = vmatprep.mubr.f32.mxu1 %v6899_v0  ;;  %1949 = vmatpush1.msra.mxu1 %v893_v2  ;;  %v5264_v2 = vld [vmem:[%s4849_s11 + $0x140] sm:$0xff] }
  0xc7   : > { %1483 = vmatprep.subr.mxu0 %v4906_v18  ;;  %1121 = vmatmul.mubr.f32.gmra.mxu0 %v5161_v4  ;;  %v884_v18 = vld [vmem:[%s4859_s21 + $0x10] sm:$0xff] }
  0xc8   : > { %1950 = vmatprep.subr.mxu1 %v6899_v0  ;;  %1126 = vmatprep.mubr.f32.mxu0 %v5166_v10 }
  0xc9   : > { %1690 = vmatmul.mubr.f32.gmra.mxu1 %v767_v6  ;;  %1484 = vmatpush1.msra.mxu0 %v4911_v20  ;;  %v977_v20 = vld [vmem:[%s4859_s21 + $0x2f8] sm:$0xff] }
  0xca   : > { %1695 = vmatprep.mubr.f32.mxu1 %v6899_v0  ;;  %1951 = vmatpush1.msra.mxu1 %v890_v14  ;;  %v5273_v6 = vld [vmem:[%s4849_s11 + $0x138] sm:$0xff] }
  0xcb   : > { %1952 = vmatprep.subr.mxu1 %v6899_v0  ;;  %1127 = vmatmul.mubr.f32.gmra.mxu0 %v5175_v12  ;;  %v953_v14 = vld [vmem:[%s4859_s21 + $0x238] sm:$0xff] }
  0xcc   : > { %1953 = vmatpush1.msra.mxu1 %v887_v15  ;;  %1132 = vmatprep.mubr.f32.mxu0 %v5181_v17  ;;  %v5279_v15 = vld [vmem:[%s4849_s11 + $0x158] sm:$0xff] }
  0xcd   : > { %1696 = vmatmul.mubr.f32.gmra.mxu1 %v770_v16  ;;  %1954 = vmatprep.subr.mxu1 %v6899_v0  ;;  %v5287_v16 = vld [vmem:[%s4849_s11 + $0x150] sm:$0xff] }
  0xce   : > { %1701 = vmatprep.mubr.f32.mxu1 %v6899_v0  ;;  %1955 = vmatpush1.msra.mxu1 %v884_v18  ;;  %v794_v18 = vld [vmem:[%s4849_s11 + $0x340] sm:$0xff] }
  0xcf   : > { %1485 = vmatprep.subr.mxu0 %v4916_v22  ;;  %1133 = vmatmul.mubr.f32.gmra.mxu0 %v5189_v19  ;;  %v971_v22 = vld [vmem:[%s4859_s21 + $0x2c8] sm:$0xff] }
  0xd0   : > { %1956 = vmatprep.subr.mxu1 %v6899_v0  ;;  %1138 = vmatprep.mubr.f32.mxu0 %v5194_v23 }
  0xd1   : > { %1702 = vmatmul.mubr.f32.gmra.mxu1 %v773_v21  ;;  %1486 = vmatpush1.msra.mxu0 %v4921_v24  ;;  %v968_v24 = vld [vmem:[%s4859_s21 + $0x2b0] sm:$0xff] }
  0xd2   : > { %1707 = vmatprep.mubr.f32.mxu1 %v6899_v0  ;;  %1957 = vmatpush2.msra.mxu1 %v977_v20  ;;  %v5292_v21 = vld [vmem:[%s4849_s11 + $0x170] sm:$0xff]  ;;  %v5301_v20 = vld [vmem:[%s4849_s11 + $0x168] sm:$0xff] }
  0xd3   : > { %1958 = vmatprep.subr.mxu1 %v6899_v0  ;;  %1139 = vmatmul.mubr.f32.gmra.mxu0 %v5203_v25 }
  0xd4   : > { %1959 = vmatpush2.msra.mxu1 %v974_v27  ;;  %1144 = vmatprep.mubr.f32.mxu0 %v5209_v31  ;;  %v944_v27 = vld [vmem:[%s4859_s21 + $0x1f0] sm:$0xff] }
  0xd5   : > { %1708 = vmatmul.mubr.f32.gmra.mxu1 %v776_v29  ;;  %1960 = vmatprep.subr.mxu1 %v6899_v0  ;;  %v797_v29 = vld [vmem:[%s4849_s11 + $0x358] sm:$0xff] }
  0xd6   : > { %1713 = vmatprep.mubr.f32.mxu1 %v6899_v0  ;;  %1961 = vmatpush2.msra.mxu1 %v971_v22  ;;  %v5307_v22 = vld [vmem:[%s4849_s11 + $0x188] sm:$0xff] }
  0xd7   : > { %1487 = vmatprep.subr.mxu0 %v4926_v26  ;;  %1145 = vmatmul.mubr.f32.gmra.mxu0 %v5217_v33  ;;  %v962_v26 = vld [vmem:[%s4859_s21 + $0x280] sm:$0xff] }
  0xd8   : > { %1962 = vmatprep.subr.mxu1 %v6899_v0  ;;  %1150 = vmatprep.mubr.f32.mxu0 %v5222_v39 }
  0xd9   : > { %1714 = vmatmul.mubr.f32.gmra.mxu1 %v779_v35  ;;  %1488 = vmatpush1.msra.mxu0 %v4931_v28  ;;  %v5250_v28 = vld [vmem:[%s4849_s11 + $0x128] sm:$0xff]  ;;  %v5315_v35 = vld [vmem:[%s4849_s11 + $0x180] sm:$0xff] }
  0xda   : > { %1719 = vmatprep.mubr.f32.mxu1 %v6899_v0  ;;  %1963 = vmatpush2.msra.mxu1 %v968_v24  ;;  %v800_v24 = vld [vmem:[%s4849_s11 + $0x370] sm:$0xff] }
  0xdb   : > { %1964 = vmatprep.subr.mxu1 %v6899_v0  ;;  %1151 = vmatmul.mubr.f32.gmra.mxu0 %v5231_v43 }
  0xdc   : > { %1965 = vmatpush2.msra.mxu1 %v965_v47  ;;  %1156 = vmatprep.mubr.f32.mxu0 %v5237_v51  ;;  %v5320_v47 = vld [vmem:[%s4849_s11 + $0x1a0] sm:$0xff] }
  0xdd   : > { %1720 = vmatmul.mubr.f32.gmra.mxu1 %v782_v3  ;;  %1966 = vmatprep.subr.mxu1 %v6899_v0  ;;  %v5329_v3 = vld [vmem:[%s4849_s11 + $0x198] sm:$0xff] }
  0xde   : > { %1725 = vmatprep.mubr.f32.mxu1 %v6899_v0  ;;  %1967 = vmatpush2.msra.mxu1 %v962_v26  ;;  %v935_v26 = vld [vmem:[%s4859_s21 + $0x1a8] sm:$0xff] }
  0xdf   : > { %1489 = vmatprep.subr.mxu0 %v4936_v30  ;;  %1157 = vmatmul.mubr.f32.gmra.mxu0 %v5245_v7  ;;  %v956_v30 = vld [vmem:[%s4859_s21 + $0x250] sm:$0xff] }
  0xe0   : > { %1968 = vmatprep.subr.mxu1 %v6899_v0  ;;  %1162 = vmatprep.mubr.f32.mxu0 %v5250_v28 }
  0xe1   : > { %1726 = vmatmul.mubr.f32.gmra.mxu1 %v785_v57  ;;  %1490 = vmatpush1.msra.mxu0 %v4941_v32  ;;  %v791_v32 = vld [vmem:[%s4849_s11 + $0x328] sm:$0xff] }
  0xe2   : > { %1731 = vmatprep.mubr.f32.mxu1 %v6899_v0  ;;  %1969 = vmatpush2.msra.mxu1 %v959_v9  ;;  %v803_v57 = vld [vmem:[%s4849_s11 + $0x388] sm:$0xff]  ;;  %v5335_v9 = vld [vmem:[%s4849_s11 + $0x1b8] sm:$0xff] }
  0xe3   : > { %1491 = vmatprep.subr.mxu0 %v4946_v34  ;;  %1163 = vmatmul.mubr.f32.gmra.mxu0 %v5259_v11  ;;  %v950_v34 = vld [vmem:[%s4859_s21 + $0x220] sm:$0xff] }
  0xe4   : > { %1970 = vmatprep.subr.mxu1 %v6899_v0  ;;  %1168 = vmatprep.mubr.f32.mxu0 %v5264_v2 }
  0xe5   : > { %1732 = vmatmul.mubr.f32.gmra.mxu1 %v788_v63  ;;  %1492 = vmatpush1.msra.mxu0 %v4951_v36  ;;  %v947_v36 = vld [vmem:[%s4859_s21 + $0x208] sm:$0xff]  ;;  %v5343_v63 = vld [vmem:[%s4849_s11 + $0x1b0] sm:$0xff] }
  0xe6   : > { %1737 = vmatprep.mubr.f32.mxu1 %v6899_v0  ;;  %1971 = vmatpush2.msra.mxu1 %v956_v30  ;;  %v806_v30 = vld [vmem:[%s4849_s11 + $0x3a0] sm:$0xff] }
  0xe7   : > { %1972 = vmatprep.subr.mxu1 %v6899_v0  ;;  %1169 = vmatmul.mubr.f32.gmra.mxu0 %v5273_v6 }
  0xe8   : > { %1973 = vmatpush2.msra.mxu1 %v953_v14  ;;  %1174 = vmatprep.mubr.f32.mxu0 %v5279_v15  ;;  %v5348_v14 = vld [vmem:[%s4849_s11 + $0x1d0] sm:$0xff] }
  0xe9   : > { %1738 = vmatmul.mubr.f32.gmra.mxu1 %v791_v32  ;;  %1974 = vmatprep.subr.mxu1 %v6899_v0  ;;  %v809_v32 = vld [vmem:[%s4849_s11 + $0x3b8] sm:$0xff] }
  0xea   : > { %1743 = vmatprep.mubr.f32.mxu1 %v6899_v0  ;;  %1975 = vmatpush2.msra.mxu1 %v950_v34  ;;  %v5360_v34 = vld [vmem:[%s4849_s11 + $0x1e8] sm:$0xff] }
  0xeb   : > { %1493 = vmatprep.subr.mxu0 %v4956_v38  ;;  %1175 = vmatmul.mubr.f32.gmra.mxu0 %v5287_v16  ;;  %v941_v38 = vld [vmem:[%s4859_s21 + $0x1d8] sm:$0xff] }
  0xec   : > { %1976 = vmatprep.subr.mxu1 %v6899_v0  ;;  %1180 = vmatprep.mubr.f32.mxu0 %v5292_v21 }
  0xed   : > { %1744 = vmatmul.mubr.f32.gmra.mxu1 %v794_v18  ;;  %1494 = vmatpush1.msra.mxu0 %v4961_v40  ;;  %v938_v40 = vld [vmem:[%s4859_s21 + $0x1c0] sm:$0xff]  ;;  %v812_v18 = vld [vmem:[%s4849_s11 + $0x3d0] sm:$0xff] }
  0xee   : > { %1749 = vmatprep.mubr.f32.mxu1 %v6899_v0  ;;  %1977 = vmatpush2.msra.mxu1 %v947_v36  ;;  %v5372_v36 = vld [vmem:[%s4849_s11 + $0x200] sm:$0xff] }
  0xef   : > { %1978 = vmatprep.subr.mxu1 %v6899_v0  ;;  %1181 = vmatmul.mubr.f32.gmra.mxu0 %v5301_v20 }
  0xf0   : > { %1979 = vmatpush2.msra.mxu1 %v944_v27  ;;  %1186 = vmatprep.mubr.f32.mxu0 %v5307_v22  ;;  %v5384_v27 = vld [vmem:[%s4849_s11 + $0x218] sm:$0xff] }
  0xf1   : > { %1750 = vmatmul.mubr.f32.gmra.mxu1 %v797_v29  ;;  %1980 = vmatprep.subr.mxu1 %v6899_v0  ;;  %v5396_v29 = vld [vmem:[%s4849_s11 + $0x230] sm:$0xff] }
  0xf2   : > { %1755 = vmatprep.mubr.f32.mxu1 %v6899_v0  ;;  %1981 = vmatpush2.msra.mxu1 %v941_v38  ;;  %v5408_v38 = vld [vmem:[%s4849_s11 + $0x248] sm:$0xff] }
  0xf3   : > { %1495 = vmatprep.subr.mxu0 %v4966_v42  ;;  %1187 = vmatmul.mubr.f32.gmra.mxu0 %v5315_v35  ;;  %v932_v42 = vld [vmem:[%s4859_s21 + $0x190] sm:$0xff]  ;;  %6937 = vst [vmem:[#allocation25_spill] sm:$0xff] %v5408_v38 }
  0xf4   : > { %1982 = vmatprep.subr.mxu1 %v6899_v0  ;;  %1192 = vmatprep.mubr.f32.mxu0 %v5320_v47 }
  0xf5   : > { %1756 = vmatmul.mubr.f32.gmra.mxu1 %v800_v24  ;;  %1496 = vmatpush1.msra.mxu0 %v4971_v44  ;;  %v5355_v44 = vld [vmem:[%s4849_s11 + $0x1c8] sm:$0xff]  ;;  %v5419_v24 = vld [vmem:[%s4849_s11 + $0x260] sm:$0xff] }
  0xf6   : > { %1761 = vmatprep.mubr.f32.mxu1 %v6899_v0  ;;  %1983 = vmatpush2.msra.mxu1 %v938_v40  ;;  %6939 = vst [vmem:[#allocation27_spill] sm:$0xff] %v5419_v24  ;;  %v827_v40 = vld [vmem:[%s4849_s11 + $0x448] sm:$0xff] }
  0xf7   : > { %1984 = vmatprep.subr.mxu1 %v6899_v0  ;;  %1193 = vmatmul.mubr.f32.gmra.mxu0 %v5329_v3 }
  0xf8   : > { %1985 = vmatpush2.msra.mxu1 %v935_v26  ;;  %1198 = vmatprep.mubr.f32.mxu0 %v5335_v9  ;;  %v5429_v26 = vld [vmem:[%s4849_s11 + $0x278] sm:$0xff] }
  0xf9   : > { %1762 = vmatmul.mubr.f32.gmra.mxu1 %v803_v57  ;;  %1986 = vmatprep.subr.mxu1 %v6899_v0  ;;  %6941 = vst [vmem:[#allocation29_spill] sm:$0xff] %v5429_v26  ;;  %v5434_v57 = vld [vmem:[%s4849_s11 + $0x270] sm:$0xff] }
  0xfa   : > { %1767 = vmatprep.mubr.f32.mxu1 %v6899_v0  ;;  %1987 = vmatpush2.msra.mxu1 %v932_v42  ;;  %6942 = vst [vmem:[#allocation30_spill] sm:$0xff] %v5434_v57  ;;  %v830_v42 = vld [vmem:[%s4849_s11 + $0x460] sm:$0xff] }
  0xfb   : > { %1497 = vmatprep.subr.mxu0 %v4976_v46  ;;  %1199 = vmatmul.mubr.f32.gmra.mxu0 %v5343_v63  ;;  %v5367_v46 = vld [vmem:[%s4849_s11 + $0x1e0] sm:$0xff] }
  0xfc   : > { %1204 = vmatprep.mubr.f32.mxu0 %v5348_v14  ;;  %1498 = vmatpush1.msra.mxu0 %v4981_v48  ;;  %v5379_v48 = vld [vmem:[%s4849_s11 + $0x1f8] sm:$0xff] }
  0xfd   : > { %1768 = vmatmul.mubr.f32.gmra.mxu1 %v806_v30  ;;  %1499 = vmatprep.subr.mxu0 %v4986_v50  ;;  %v815_v50 = vld [vmem:[%s4849_s11 + $0x3e8] sm:$0xff]  ;;  %v5439_v30 = vld [vmem:[%s4849_s11 + $0x290] sm:$0xff] }
  0xfe   : > { %1773 = vmatprep.mubr.f32.mxu1 %v6899_v0  ;;  %1500 = vmatpush1.msra.mxu0 %v4991_v52  ;;  %v5391_v52 = vld [vmem:[%s4849_s11 + $0x210] sm:$0xff]  ;;  %6943 = vst [vmem:[#allocation31_spill] sm:$0xff] %v5439_v30 }
  0xff   : > { %1205 = vmatmul.mubr.f32.gmra.mxu0 %v5355_v44  ;;  %1501 = vmatprep.subr.mxu0 %v4996_v54  ;;  %v818_v54 = vld [vmem:[%s4849_s11 + $0x400] sm:$0xff] }
 0x100   : > { %1210 = vmatprep.mubr.f32.mxu0 %v5360_v34  ;;  %1502 = vmatpush1.msra.mxu0 %v5001_v56  ;;  %v5403_v56 = vld [vmem:[%s4849_s11 + $0x228] sm:$0xff] }
 0x101   : > { %1774 = vmatmul.mubr.f32.gmra.mxu1 %v809_v32  ;;  %1503 = vmatprep.subr.mxu0 %v5006_v58  ;;  %6936 = vst [vmem:[#allocation24_spill] sm:$0xff] %v5403_v56  ;;  %v821_v58 = vld [vmem:[%s4849_s11 + $0x418] sm:$0xff]  ;;  %v5444_v32 = vld [vmem:[%s4849_s11 + $0x288] sm:$0xff] }
 0x102   : > { %1779 = vmatprep.mubr.f32.mxu1 %v6899_v0  ;;  %1504 = vmatpush1.msra.mxu0 %v5011_v60  ;;  %v5414_v60 = vld [vmem:[%s4849_s11 + $0x240] sm:$0xff]  ;;  %6944 = vst [vmem:[#allocation32_spill] sm:$0xff] %v5444_v32 }
 0x103   : > { %1211 = vmatmul.mubr.f32.gmra.mxu0 %v5367_v46  ;;  %1505 = vmatprep.subr.mxu0 %v5016_v62  ;;  %6938 = vst [vmem:[#allocation26_spill] sm:$0xff] %v5414_v60  ;;  %v824_v62 = vld [vmem:[%s4849_s11 + $0x430] sm:$0xff] }
 0x104   : > { %1216 = vmatprep.mubr.f32.mxu0 %v5372_v36  ;;  %1506 = vmatpush1.msra.mxu0 %v5021_v1  ;;  %v5424_v1 = vld [vmem:[%s4849_s11 + $0x258] sm:$0xff] }
 0x105   : > { %1780 = vmatmul.mubr.f32.gmra.mxu1 %v812_v18  ;;  %6940 = vst [vmem:[#allocation28_spill] sm:$0xff] %v5424_v1  ;;  %v833_v18 = vld [vmem:[%s4849_s11 + $0x478] sm:$0xff] }
 0x106   : > { %1785 = vmatprep.mubr.f32.mxu1 %v6899_v0 }
 0x107   : > { %1217 = vmatmul.mubr.f32.gmra.mxu0 %v5379_v48 }
 0x108   : > { %1222 = vmatprep.mubr.f32.mxu0 %v5384_v27 }
 0x109   : > { %1786 = vmatmul.mubr.f32.gmra.mxu1 %v815_v50  ;;  %v5449_v50 = vld [vmem:[%s4849_s11 + $0x2a8] sm:$0xff] }
 0x10a   : > { %1791 = vmatprep.mubr.f32.mxu1 %v6899_v0  ;;  %6945 = vst [vmem:[#allocation33_spill] sm:$0xff] %v5449_v50 }
 0x10b   : > { %1223 = vmatmul.mubr.f32.gmra.mxu0 %v5391_v52 }
 0x10c   : > { %1228 = vmatprep.mubr.f32.mxu0 %v5396_v29 }
 0x10d   : > { %1792 = vmatmul.mubr.f32.gmra.mxu1 %v818_v54  ;;  %v5454_v54 = vld [vmem:[%s4849_s11 + $0x2a0] sm:$0xff] }
 0x10e   : > { %1797 = vmatprep.mubr.f32.mxu1 %v6899_v0  ;;  %6946 = vst [vmem:[#allocation34_spill] sm:$0xff] %v5454_v54 }
 0x10f   : > { %1229 = vmatmul.mubr.f32.gmra.mxu0 %v5403_v56 }
 0x110   : > { %1234 = vmatprep.mubr.f32.mxu0 %v5408_v38 }
 0x111   : > { %1798 = vmatmul.mubr.f32.gmra.mxu1 %v821_v58  ;;  %v836_v58 = vld [vmem:[%s4849_s11 + $0x490] sm:$0xff] }
 0x112   : > { %1803 = vmatprep.mubr.f32.mxu1 %v6899_v0 }
 0x113   : > { %1235 = vmatmul.mubr.f32.gmra.mxu0 %v5414_v60 }
 0x114   : > { %1240 = vmatprep.mubr.f32.mxu0 %v5419_v24 }
 0x115   : > { %1804 = vmatmul.mubr.f32.gmra.mxu1 %v824_v62  ;;  %v5459_v62 = vld [vmem:[%s4849_s11 + $0x2c0] sm:$0xff] }
 0x116   : > { %1809 = vmatprep.mubr.f32.mxu1 %v6899_v0  ;;  %6947 = vst [vmem:[#allocation35_spill] sm:$0xff] %v5459_v62 }
 0x117   : > { %1241 = vmatmul.mubr.f32.gmra.mxu0 %v5424_v1 }
 0x118   : > { %1246 = vmatprep.mubr.f32.mxu0 %v5429_v26 }
 0x119   : > { %1810 = vmatmul.mubr.f32.gmra.mxu1 %v827_v40  ;;  %v777_v40 = vld [vmem:[%s4849_s11 + $0x2b8] sm:$0xff] }
 0x11a   : > { %1815 = vmatprep.mubr.f32.mxu1 %v6899_v0 }
 0x11b   : > { %1247 = vmatmul.mubr.f32.gmra.mxu0 %v5434_v57  ;;  %v814_v57 = vld [vmem:[%s4849_s11 + $0x3e0] sm:$0xff] }
 0x11c   : > { %1252 = vmatprep.mubr.f32.mxu0 %v5439_v30  ;;  %v869_v30 = vld [vmem:[%s4849_s11 + $0x598] sm:$0xff] }
 0x11d   : > { %1816 = vmatmul.mubr.f32.gmra.mxu1 %v830_v42  ;;  %v839_v42 = vld [vmem:[%s4849_s11 + $0x4a8] sm:$0xff] }
 0x11e   : > { %1821 = vmatprep.mubr.f32.mxu1 %v6899_v0 }
 0x11f   : > { %1253 = vmatmul.mubr.f32.gmra.mxu0 %v5444_v32  ;;  %v851_v32 = vld [vmem:[%s4849_s11 + $0x508] sm:$0xff] }
 0x120   : > { %1258 = vmatprep.mubr.f32.mxu0 %v5449_v50  ;;  %v780_v50 = vld [vmem:[%s4849_s11 + $0x2d0] sm:$0xff] }
 0x121   : > { %1822 = vmatmul.mubr.f32.gmra.mxu1 %v833_v18  ;;  %v781_v18 = vld [vmem:[%s4849_s11 + $0x2d8] sm:$0xff] }
 0x122   : > { %1827 = vmatprep.mubr.f32.mxu1 %v6899_v0 }
 0x123   : > { %1259 = vmatmul.mubr.f32.gmra.mxu0 %v5454_v54  ;;  %v784_v54 = vld [vmem:[%s4849_s11 + $0x2f0] sm:$0xff] }
 0x124   : > { %1264 = vmatprep.mubr.f32.mxu0 %v5459_v62  ;;  %v783_v62 = vld [vmem:[%s4849_s11 + $0x2e8] sm:$0xff] }
 0x125   : > { %1828 = vmatmul.mubr.f32.gmra.mxu1 %v836_v58  ;;  %v842_v58 = vld [vmem:[%s4849_s11 + $0x4c0] sm:$0xff] }
 0x126   : > { %1833 = vmatprep.mubr.f32.mxu1 %v6899_v0 }
 0x127   : > { %1265 = vmatmul.mubr.f32.gmra.mxu0 %v777_v40  ;;  %v845_v40 = vld [vmem:[%s4849_s11 + $0x4d8] sm:$0xff] }
 0x128   : > { %1270 = vmatprep.mubr.f32.mxu0 %v781_v18  ;;  %v786_v18 = vld [vmem:[%s4849_s11 + $0x300] sm:$0xff] }
 0x129   : > { %1834 = vmatmul.mubr.f32.gmra.mxu1 %v839_v42  ;;  %v787_v42 = vld [vmem:[%s4849_s11 + $0x308] sm:$0xff] }
 0x12a   : > { %1839 = vmatprep.mubr.f32.mxu1 %v6899_v0 }
 0x12b   : > { %1271 = vmatmul.mubr.f32.gmra.mxu0 %v780_v50  ;;  %v848_v50 = vld [vmem:[%s4849_s11 + $0x4f0] sm:$0xff] }
 0x12c   : > { %1276 = vmatprep.mubr.f32.mxu0 %v784_v54  ;;  %v789_v54 = vld [vmem:[%s4849_s11 + $0x318] sm:$0xff] }
 0x12d   : > { %1840 = vmatmul.mubr.f32.gmra.mxu1 %v842_v58  ;;  %v790_v58 = vld [vmem:[%s4849_s11 + $0x320] sm:$0xff] }
 0x12e   : > { %1845 = vmatprep.mubr.f32.mxu1 %v6899_v0 }
 0x12f   : > { %1277 = vmatmul.mubr.f32.gmra.mxu0 %v783_v62  ;;  %v793_v62 = vld [vmem:[%s4849_s11 + $0x338] sm:$0xff] }
 0x130   : > { %1282 = vmatprep.mubr.f32.mxu0 %v787_v42  ;;  %v5485_v42 = vld [vmem:[%s4859_s21 + $0x478] sm:$0xff] }
 0x131   : > { %1846 = vmatmul.mubr.f32.gmra.mxu1 %v845_v40  ;;  %v792_v40 = vld [vmem:[%s4849_s11 + $0x330] sm:$0xff]  ;;  %3927 = vmatprep.subr.mxu0 %v5485_v42 }
 0x132   : > { %1851 = vmatprep.mubr.f32.mxu1 %v6899_v0 }
 0x133   : > { %1283 = vmatmul.mubr.f32.gmra.mxu0 %v786_v18  ;;  %v854_v18 = vld [vmem:[%s4849_s11 + $0x520] sm:$0xff] }
 0x134   : > { %1288 = vmatprep.mubr.f32.mxu0 %v790_v58  ;;  %v795_v58 = vld [vmem:[%s4849_s11 + $0x348] sm:$0xff] }
 0x135   : > { %1852 = vmatmul.mubr.f32.gmra.mxu1 %v848_v50  ;;  %v796_v50 = vld [vmem:[%s4849_s11 + $0x350] sm:$0xff] }
 0x136   : > { %1857 = vmatprep.mubr.f32.mxu1 %v6899_v0 }
 0x137   : > { %1289 = vmatmul.mubr.f32.gmra.mxu0 %v789_v54  ;;  %v799_v54 = vld [vmem:[%s4849_s11 + $0x368] sm:$0xff] }
 0x138   : > { %1294 = vmatprep.mubr.f32.mxu0 %v793_v62  ;;  %v798_v62 = vld [vmem:[%s4849_s11 + $0x360] sm:$0xff] }
 0x139   : > { %1858 = vmatmul.mubr.f32.gmra.mxu1 %v851_v32  ;;  %v857_v32 = vld [vmem:[%s4849_s11 + $0x538] sm:$0xff] }
 0x13a   : > { %1863 = vmatprep.mubr.f32.mxu1 %v6899_v0 }
 0x13b   : > { %1295 = vmatmul.mubr.f32.gmra.mxu0 %v792_v40  ;;  %v860_v40 = vld [vmem:[%s4849_s11 + $0x550] sm:$0xff] }
 0x13c   : > { %1300 = vmatprep.mubr.f32.mxu0 %v796_v50  ;;  %v801_v50 = vld [vmem:[%s4849_s11 + $0x378] sm:$0xff] }
 0x13d   : > { %1864 = vmatmul.mubr.f32.gmra.mxu1 %v854_v18  ;;  %v802_v18 = vld [vmem:[%s4849_s11 + $0x380] sm:$0xff] }
 0x13e   : > { %1869 = vmatprep.mubr.f32.mxu1 %v6899_v0 }
 0x13f   : > { %1301 = vmatmul.mubr.f32.gmra.mxu0 %v795_v58  ;;  %v863_v58 = vld [vmem:[%s4849_s11 + $0x568] sm:$0xff] }
 0x140   : > { %1306 = vmatprep.mubr.f32.mxu0 %v799_v54  ;;  %v804_v54 = vld [vmem:[%s4849_s11 + $0x390] sm:$0xff] }
 0x141   : > { %1870 = vmatmul.mubr.f32.gmra.mxu1 %v857_v32  ;;  %v805_v32 = vld [vmem:[%s4849_s11 + $0x398] sm:$0xff] }
 0x142   : > { %1875 = vmatprep.mubr.f32.mxu1 %v6899_v0 }
 0x143   : > { %1307 = vmatmul.mubr.f32.gmra.mxu0 %v798_v62  ;;  %v866_v62 = vld [vmem:[%s4849_s11 + $0x580] sm:$0xff] }
 0x144   : > { %1312 = vmatprep.mubr.f32.mxu0 %v802_v18  ;;  %v807_v18 = vld [vmem:[%s4849_s11 + $0x3a8] sm:$0xff] }
 0x145   : > { %1876 = vmatmul.mubr.f32.gmra.mxu1 %v860_v40  ;;  %v808_v40 = vld [vmem:[%s4849_s11 + $0x3b0] sm:$0xff] }
 0x146   : > { %1881 = vmatprep.mubr.f32.mxu1 %v6899_v0 }
 0x147   : > { %1313 = vmatmul.mubr.f32.gmra.mxu0 %v801_v50  ;;  %v811_v50 = vld [vmem:[%s4849_s11 + $0x3c8] sm:$0xff] }
 0x148   : > { %1318 = vmatprep.mubr.f32.mxu0 %v805_v32  ;;  %v872_v32 = vld [vmem:[%s4849_s11 + $0x5b0] sm:$0xff] }
 0x149   : > { %1882 = vmatmul.mubr.f32.gmra.mxu1 %v863_v58  ;;  %v810_v58 = vld [vmem:[%s4849_s11 + $0x3c0] sm:$0xff] }
 0x14a   : > { %1887 = vmatprep.mubr.f32.mxu1 %v6899_v0 }
 0x14b   : > { %1319 = vmatmul.mubr.f32.gmra.mxu0 %v804_v54 }
 0x14c   : > { %1324 = vmatprep.mubr.f32.mxu0 %v808_v40 }
 0x14d   : > { %1888 = vmatmul.mubr.f32.gmra.mxu1 %v866_v62  ;;  %v813_v62 = vld [vmem:[%s4849_s11 + $0x3d8] sm:$0xff] }
 0x14e   : > { %1893 = vmatprep.mubr.f32.mxu1 %v6899_v0 }
 0x14f   : > { %1325 = vmatmul.mubr.f32.gmra.mxu0 %v807_v18  ;;  %v817_v18 = vld [vmem:[%s4849_s11 + $0x3f8] sm:$0xff] }
 0x150   : > { %1330 = vmatprep.mubr.f32.mxu0 %v811_v50 }
 0x151   : > { %1894 = vmatmul.mubr.f32.gmra.mxu1 %v869_v30  ;;  %v875_v30 = vld [vmem:[%s4849_s11 + $0x5c8] sm:$0xff] }
 0x152   : > { %1899 = vmatprep.mubr.f32.mxu1 %v6899_v0 }
 0x153   : > { %1331 = vmatmul.mubr.f32.gmra.mxu0 %v810_v58  ;;  %v816_v58 = vld [vmem:[%s4849_s11 + $0x3f0] sm:$0xff] }
 0x154   : > { %v5515_v54 = vpop.f32.mrf.mxu1  ;;  %1336 = vmatprep.mubr.f32.mxu0 %v814_v57  ;;  %v878_v57 = vld [vmem:[%s4849_s11 + $0x5e0] sm:$0xff] }
 0x155   : > { %1900 = vmatmul.mubr.f32.gmra.mxu1 %v872_v32  ;;  %v820_v32 = vld [vmem:[%s4849_s11 + $0x410] sm:$0xff] }
 0x156   : > { %v5518_v40 = vpop.f32.mrf.mxu1  ;;  %1905 = vmatprep.mubr.f32.mxu1 %v6899_v0 }
 0x157   : > { %1337 = vmatmul.mubr.f32.gmra.mxu0 %v813_v62  ;;  %v819_v62 = vld [vmem:[%s4849_s11 + $0x408] sm:$0xff] }
 0x158   : > { %v5523_v50 = vpop.f32.mrf.mxu1  ;;  %1342 = vmatprep.mubr.f32.mxu0 %v817_v18  ;;  %v823_v18 = vld [vmem:[%s4849_s11 + $0x428] sm:$0xff] }
 0x159   : > { %1906 = vmatmul.mubr.f32.gmra.mxu1 %v875_v30  ;;  %v881_v30 = vld [vmem:[%s4849_s11 + $0x5f8] sm:$0xff] }
 0x15a   : > { %v5526_v26 = vpop.f32.mrf.mxu1  ;;  %1911 = vmatprep.mubr.f32.mxu1 %v6899_v0 }
 0x15b   : > { %1343 = vmatmul.mubr.f32.gmra.mxu0 %v816_v58  ;;  %v822_v58 = vld [vmem:[%s4849_s11 + $0x420] sm:$0xff] }
 0x15c   : > { %v5531_v1 = vpop.f32.mrf.mxu1  ;;  %1348 = vmatprep.mubr.f32.mxu0 %v820_v32 }
 0x15d   : > { %1912 = vmatmul.mubr.f32.gmra.mxu1 %v878_v57  ;;  %v826_v57 = vld [vmem:[%s4849_s11 + $0x440] sm:$0xff] }
 0x15e   : > { %v5534_v24 = vpop.f32.mrf.mxu1  ;;  %1917 = vmatprep.mubr.f32.mxu1 %v6899_v0  ;;  %v825_v0 = vld [vmem:[%s4849_s11 + $0x438] sm:$0xff] }
 0x15f   : > { %1349 = vmatmul.mubr.f32.gmra.mxu0 %v819_v62 }
 0x160   : > { %v5539_v60 = vpop.f32.mrf.mxu1  ;;  %1354 = vmatprep.mubr.f32.mxu0 %v823_v18 }
 0x161   : > { %1918 = vmatmul.mubr.f32.gmra.mxu1 %v881_v30  ;;  %v829_v30 = vld [vmem:[%s4849_s11 + $0x458] sm:$0xff] }
 0x162   : > { %v5542_v38 = vpop.f32.mrf.mxu1  ;;  %1988 = vmatprep.mubr.f32.mxu1 %v5071_v8  ;;  %v828_v8 = vld [vmem:[%s4849_s11 + $0x450] sm:$0xff] }
 0x163   : > { %1355 = vmatmul.mubr.f32.gmra.mxu0 %v822_v58 }
 0x164   : > { %v5546_v32 = vpop.f32.mrf.mxu1  ;;  %1360 = vmatprep.mubr.f32.mxu0 %v826_v57 }
 0x165   : > { %1989 = vmatmul.mubr.f32.vlgmr.msra.gmra.mxu1 %v5092_v37  ;;  %v832_v37 = vld [vmem:[%s4849_s11 + $0x470] sm:$0xff] }
 0x166   : > { %v5550_v62 = vpop.f32.mrf.mxu1  ;;  %1993 = vmatprep.mubr.f32.mxu1 %v5097_v41 }
 0x167   : > { %1361 = vmatmul.mubr.f32.gmra.mxu0 %v825_v0  ;;  %v831_v0 = vld [vmem:[%s4849_s11 + $0x468] sm:$0xff] }
 0x168   : > { %v5554_v18 = vpop.f32.mrf.mxu1  ;;  %1366 = vmatprep.mubr.f32.mxu0 %v829_v30 }
 0x169   : > { %1994 = vmatmul.mubr.f32.gmra.mxu1 %v5105_v45  ;;  %v835_v45 = vld [vmem:[%s4849_s11 + $0x488] sm:$0xff] }
 0x16a   : > { %v5558_v58 = vpop.f32.mrf.mxu1  ;;  %1998 = vmatprep.mubr.f32.mxu1 %v5111_v49  ;;  %v834_v49 = vld [vmem:[%s4849_s11 + $0x480] sm:$0xff] }
 0x16b   : > { %1367 = vmatmul.mubr.f32.gmra.mxu0 %v828_v8 }
 0x16c   : > { %v5562_v57 = vpop.f32.mrf.mxu1  ;;  %1372 = vmatprep.mubr.f32.mxu0 %v832_v37 }
 0x16d   : > { %1999 = vmatmul.mubr.f32.gmra.mxu1 %v5119_v5  ;;  %v838_v5 = vld [vmem:[%s4849_s11 + $0x4a0] sm:$0xff] }
 0x16e   : > { %v5566_v41 = vpop.f32.mrf.mxu1  ;;  %2003 = vmatprep.mubr.f32.mxu1 %v5124_v53  ;;  %v837_v53 = vld [vmem:[%s4849_s11 + $0x498] sm:$0xff] }
 0x16f   : > { %1373 = vmatmul.mubr.f32.gmra.mxu0 %v831_v0 }
 0x170   : > { %v5570_v30 = vpop.f32.mrf.mxu1  ;;  %1378 = vmatprep.mubr.f32.mxu0 %v835_v45 }
 0x171   : > { %2004 = vmatmul.mubr.f32.gmra.mxu1 %v5133_v55  ;;  %v841_v55 = vld [vmem:[%s4849_s11 + $0x4b8] sm:$0xff] }
 0x172   : > { %v5574_v8 = vpop.f32.mrf.mxu1  ;;  %2008 = vmatprep.mubr.f32.mxu1 %v5139_v59 }
 0x173   : > { %v5578_v37 = vpop.f32.mrf.mxu0  ;;  %1379 = vmatmul.mubr.f32.gmra.mxu0 %v834_v49 }
 0x174   : > { %6948 = vst [vmem:[#allocation36_spill] sm:$0xff] %v5578_v37  ;;  %v5580_v56 = vpop.f32.mrf.mxu1  ;;  %1384 = vmatprep.mubr.f32.mxu0 %v838_v5  ;;  %v844_v5 = vld [vmem:[%s4849_s11 + $0x4d0] sm:$0xff] }
 0x175   : > { %2009 = vmatmul.mubr.f32.gmra.mxu1 %v5147_v61  ;;  %v5584_v0 = vpop.f32.mrf.mxu0  ;;  %v840_v61 = vld [vmem:[%s4849_s11 + $0x4b0] sm:$0xff] }
 0x176   : > { %6949 = vst [vmem:[#allocation37_spill] sm:$0xff] %v5584_v0  ;;  %2013 = vmatprep.mubr.f32.mxu1 %v5152_v13  ;;  %v5588_v45 = vpop.f32.mrf.mxu1 }
 0x177   : > { %v5590_v59 = vpop.f32.mrf.mxu0  ;;  %1385 = vmatmul.mubr.f32.gmra.mxu0 %v837_v53 }
 0x178   : > { %6950 = vst [vmem:[#allocation38_spill] sm:$0xff] %v5590_v59  ;;  %v5592_v37 = vpop.f32.mrf.mxu1  ;;  %1390 = vmatprep.mubr.f32.mxu0 %v841_v55  ;;  %v847_v55 = vld [vmem:[%s4849_s11 + $0x4e8] sm:$0xff] }
 0x179   : > { %2014 = vmatmul.mubr.f32.gmra.mxu1 %v5161_v4  ;;  %v5596_v49 = vpop.f32.mrf.mxu0  ;;  %v843_v4 = vld [vmem:[%s4849_s11 + $0x4c8] sm:$0xff] }
 0x17a   : > { %6951 = vst [vmem:[#allocation39_spill] sm:$0xff] %v5596_v49  ;;  %2018 = vmatprep.mubr.f32.mxu1 %v5166_v10  ;;  %v5600_v13 = vpop.f32.mrf.mxu1 }
 0x17b   : > { %v5602_v0 = vpop.f32.mrf.mxu0  ;;  %1391 = vmatmul.mubr.f32.gmra.mxu0 %v840_v61 }
 0x17c   : > { %6952 = vst [vmem:[#allocation40_spill] sm:$0xff] %v5602_v0  ;;  %v5604_v59 = vpop.f32.mrf.mxu1  ;;  %1396 = vmatprep.mubr.f32.mxu0 %v844_v5  ;;  %v850_v5 = vld [vmem:[%s4849_s11 + $0x500] sm:$0xff] }
 0x17d   : > { %2019 = vmatmul.mubr.f32.gmra.mxu1 %v5175_v12  ;;  %v5608_v53 = vpop.f32.mrf.mxu0  ;;  %v846_v12 = vld [vmem:[%s4849_s11 + $0x4e0] sm:$0xff] }
 0x17e   : > { %6953 = vst [vmem:[#allocation41_spill] sm:$0xff] %v5608_v53  ;;  %2023 = vmatprep.mubr.f32.mxu1 %v5181_v17  ;;  %v5612_v10 = vpop.f32.mrf.mxu1 }
 0x17f   : > { %v5614_v49 = vpop.f32.mrf.mxu0  ;;  %1397 = vmatmul.mubr.f32.gmra.mxu0 %v843_v4 }
 0x180   : > { %6954 = vst [vmem:[#allocation42_spill] sm:$0xff] %v5614_v49  ;;  %1402 = vmatprep.mubr.f32.mxu0 %v847_v55  ;;  %v853_v55 = vld [vmem:[%s4849_s11 + $0x518] sm:$0xff] }
 0x181   : > { %v5616_v0 = vpop.f32.mrf.mxu1  ;;  %2024 = vmatmul.mubr.f32.gmra.mxu1 %v5189_v19  ;;  %v5620_v61 = vpop.f32.mrf.mxu0  ;;  %v849_v19 = vld [vmem:[%s4849_s11 + $0x4f8] sm:$0xff] }
 0x182   : > { %6955 = vst [vmem:[#allocation43_spill] sm:$0xff] %v5620_v61  ;;  %2028 = vmatprep.mubr.f32.mxu1 %v5194_v23 }
 0x183   : > { %v5624_v17 = vpop.f32.mrf.mxu1  ;;  %v5626_v53 = vpop.f32.mrf.mxu0  ;;  %1403 = vmatmul.mubr.f32.gmra.mxu0 %v846_v12 }
 0x184   : > { %6956 = vst [vmem:[#allocation44_spill] sm:$0xff] %v5626_v53  ;;  %1408 = vmatprep.mubr.f32.mxu0 %v850_v5  ;;  %v856_v5 = vld [vmem:[%s4849_s11 + $0x530] sm:$0xff] }
 0x185   : > { %v5628_v49 = vpop.f32.mrf.mxu1  ;;  %2029 = vmatmul.mubr.f32.gmra.mxu1 %v5203_v25  ;;  %v5632_v4 = vpop.f32.mrf.mxu0  ;;  %v852_v25 = vld [vmem:[%s4849_s11 + $0x510] sm:$0xff] }
 0x186   : > { %6957 = vst [vmem:[#allocation45_spill] sm:$0xff] %v5632_v4  ;;  %2033 = vmatprep.mubr.f32.mxu1 %v5209_v31 }
 0x187   : > { %v5636_v23 = vpop.f32.mrf.mxu1  ;;  %v5638_v61 = vpop.f32.mrf.mxu0  ;;  %1409 = vmatmul.mubr.f32.gmra.mxu0 %v849_v19 }
 0x188   : > { %6958 = vst [vmem:[#allocation46_spill] sm:$0xff] %v5638_v61  ;;  %1414 = vmatprep.mubr.f32.mxu0 %v853_v55  ;;  %v859_v55 = vld [vmem:[%s4849_s11 + $0x548] sm:$0xff] }
 0x189   : > { %v5640_v53 = vpop.f32.mrf.mxu1  ;;  %2034 = vmatmul.mubr.f32.gmra.mxu1 %v5217_v33  ;;  %v5644_v12 = vpop.f32.mrf.mxu0  ;;  %v855_v33 = vld [vmem:[%s4849_s11 + $0x528] sm:$0xff] }
 0x18a   : > { %6959 = vst [vmem:[#allocation47_spill] sm:$0xff] %v5644_v12  ;;  %2038 = vmatprep.mubr.f32.mxu1 %v5222_v39 }
 0x18b   : > { %v5648_v31 = vpop.f32.mrf.mxu1  ;;  %v5650_v4 = vpop.f32.mrf.mxu0  ;;  %1415 = vmatmul.mubr.f32.gmra.mxu0 %v852_v25 }
 0x18c   : > { %6960 = vst [vmem:[#allocation48_spill] sm:$0xff] %v5650_v4  ;;  %1420 = vmatprep.mubr.f32.mxu0 %v856_v5  ;;  %v862_v5 = vld [vmem:[%s4849_s11 + $0x560] sm:$0xff] }
 0x18d   : > { %v5652_v61 = vpop.f32.mrf.mxu1  ;;  %2039 = vmatmul.mubr.f32.gmra.mxu1 %v5231_v43  ;;  %v5656_v19 = vpop.f32.mrf.mxu0  ;;  %v858_v43 = vld [vmem:[%s4849_s11 + $0x540] sm:$0xff] }
 0x18e   : > { %6961 = vst [vmem:[#allocation49_spill] sm:$0xff] %v5656_v19  ;;  %2043 = vmatprep.mubr.f32.mxu1 %v5237_v51 }
 0x18f   : > { %v5660_v39 = vpop.f32.mrf.mxu1  ;;  %v5662_v12 = vpop.f32.mrf.mxu0  ;;  %1421 = vmatmul.mubr.f32.gmra.mxu0 %v855_v33 }
 0x190   : > { %6962 = vst [vmem:[#allocation50_spill] sm:$0xff] %v5662_v12  ;;  %1426 = vmatprep.mubr.f32.mxu0 %v859_v55  ;;  %v3275_v12 = vlaneseq }
 0x191   : > { %v5664_v4 = vpop.f32.mrf.mxu1  ;;  %2044 = vmatmul.mubr.f32.gmra.mxu1 %v5245_v7  ;;  %v5668_v25 = vpop.f32.mrf.mxu0  ;;  %v861_v7 = vld [vmem:[%s4849_s11 + $0x558] sm:$0xff] }
 0x192   : > { %6963 = vst [vmem:[#allocation51_spill] sm:$0xff] %v5668_v25  ;;  %2048 = vmatprep.mubr.f32.mxu1 %v5250_v28  ;;  %v865_v28 = vld [vmem:[%s4849_s11 + $0x578] sm:$0xff] }
 0x193   : > { %v5672_v51 = vpop.f32.mrf.mxu1  ;;  %v5674_v19 = vpop.f32.mrf.mxu0  ;;  %1427 = vmatmul.mubr.f32.gmra.mxu0 %v858_v43 }
 0x194   : > { %6964 = vst [vmem:[#allocation52_spill] sm:$0xff] %v5672_v51  ;;  %6965 = vst [vmem:[#allocation53_spill] sm:$0xff] %v5674_v19  ;;  %1432 = vmatprep.mubr.f32.mxu0 %v862_v5  ;;  %v868_v5 = vld [vmem:[%s4849_s11 + $0x590] sm:$0xff] }
 0x195   : > { %v5676_v33 = vpop.f32.mrf.mxu1  ;;  %2049 = vmatmul.mubr.f32.gmra.mxu1 %v5259_v11  ;;  %v5680_v55 = vpop.f32.mrf.mxu0  ;;  %v864_v11 = vld [vmem:[%s4849_s11 + $0x570] sm:$0xff] }
 0x196   : > { %6966 = vst [vmem:[#allocation54_spill] sm:$0xff] %v5680_v55  ;;  %2053 = vmatprep.mubr.f32.mxu1 %v5264_v2 }
 0x197   : > { %v5684_v25 = vpop.f32.mrf.mxu1  ;;  %v5686_v51 = vpop.f32.mrf.mxu0  ;;  %1433 = vmatmul.mubr.f32.gmra.mxu0 %v861_v7  ;;  %v5702_v7 = vshrl.u32 %v3275_v12, 7 }
 0x198   : > { %6967 = vst [vmem:[#allocation55_spill] sm:$0xff] %v5686_v51  ;;  %1438 = vmatprep.mubr.f32.mxu0 %v865_v28  ;;  %v867_v28 = vld [vmem:[%s4849_s11 + $0x588] sm:$0xff] }
 0x199   : > { %v5688_v43 = vpop.f32.mrf.mxu1  ;;  %2054 = vmatmul.mubr.f32.gmra.mxu1 %v5273_v6  ;;  %v5696_v2 = vpop.f32.mrf.mxu0  ;;  %6969 = vst [vmem:[#allocation57_spill] sm:$0xff] %v5702_v7 }
 0x19a   : > { %6968 = vst [vmem:[#allocation56_spill] sm:$0xff] %v5696_v2  ;;  %2058 = vmatprep.mubr.f32.mxu1 %v5279_v15  ;;  %v871_v15 = vld [vmem:[%s4849_s11 + $0x5a8] sm:$0xff] }
 0x19b   : > { %v5700_v55 = vpop.f32.mrf.mxu1  ;;  %v5704_v51 = vpop.f32.mrf.mxu0  ;;  %1439 = vmatmul.mubr.f32.gmra.mxu0 %v864_v11 }
 0x19c   : > { %6970 = vst [vmem:[#allocation58_spill] sm:$0xff] %v5704_v51  ;;  %1444 = vmatprep.mubr.f32.mxu0 %v868_v5  ;;  %v3277_v51 = vsub.s32 0, %v5702_v7 }
 0x19d   : > { %v5706_v6 = vpop.f32.mrf.mxu1  ;;  %2059 = vmatmul.mubr.f32.gmra.mxu1 %v5287_v16  ;;  %v5710_v2 = vpop.f32.mrf.mxu0  ;;  %v3273_v16 = vld [vmem:[%s262_s3] sm:$0x7] }
 0x19e   : > { %6971 = vst [vmem:[#allocation59_spill] sm:$0xff] %v5706_v6  ;;  %6972 = vst [vmem:[#allocation60_spill] sm:$0xff] %v5710_v2  ;;  %2063 = vmatprep.mubr.f32.mxu1 %v5292_v21  ;;  %v870_v21 = vld [vmem:[%s4849_s11 + $0x5a0] sm:$0xff]  ;;  %v3281_v2 = vsub.s32 1, %v5702_v7 }
 0x19f   : > { %v5714_v12 = vpop.f32.mrf.mxu1  ;;  %v5718_v11 = vpop.f32.mrf.mxu0  ;;  %1445 = vmatmul.mubr.f32.gmra.mxu0 %v867_v28  ;;  %v874_v28 = vld [vmem:[%s4849_s11 + $0x5c0] sm:$0xff] }
 0x1a0   : > { %6973 = vst [vmem:[#allocation61_spill] sm:$0xff] %v5714_v12  ;;  %6974 = vst [vmem:[#allocation62_spill] sm:$0xff] %v5718_v11  ;;  %1450 = vmatprep.mubr.f32.mxu0 %v871_v15  ;;  %v5736_v12 = vrot.slane %v3273_v16, %v3277_v51  ;;  %v5742_v7 = vrot.slane %v3273_v16, %v3281_v2 }
 0x1a1   : > { %v5723_v5 = vpop.f32.mrf.mxu1  ;;  %2064 = vmatmul.mubr.f32.gmra.mxu1 %v5301_v20  ;;  %v5728_v19 = vpop.f32.mrf.mxu0 }
 0x1a2   : > { %6975 = vst [vmem:[#allocation63_spill] sm:$0xff] %v5723_v5  ;;  %6976 = vst [vmem:[#allocation64_spill] sm:$0xff] %v5728_v19  ;;  %2068 = vmatprep.mubr.f32.mxu1 %v5307_v22  ;;  %v873_v19 = vld [vmem:[%s4849_s11 + $0x5b8] sm:$0xff] }
 0x1a3   : > { %v5734_v11 = vpop.f32.mrf.mxu1  ;;  %v1164_v5 = vpop.f32.mrf.mxu0  ;;  %1451 = vmatmul.mubr.f32.gmra.mxu0 %v870_v21  ;;  %v877_v22 = vld [vmem:[%s4849_s11 + $0x5d8] sm:$0xff] }
 0x1a4   : > { %6977 = vst [vmem:[#allocation65_spill] sm:$0xff] %v5734_v11  ;;  %v1614_v20 = vadd.f32 %v5515_v54, %v1164_v5  ;;  %1456 = vmatprep.mubr.f32.mxu0 %v874_v28 }
 0x1a5   : > { %v5739_v15 = vpop.f32.mrf.mxu1  ;;  %2069 = vmatmul.mubr.f32.gmra.mxu1 %v5315_v35  ;;  %v1166_v6 = vpop.f32.mrf.mxu0 }
 0x1a6   : > { %2073 = vmatprep.mubr.f32.mxu1 %v5320_v47  ;;  %v3326_v51 = vadd.f32 %v5736_v12, %v1614_v20  ;;  %v1616_v21 = vadd.f32 %v5518_v40, %v1166_v6  ;;  %v876_v40 = vld [vmem:[%s4849_s11 + $0x5d0] sm:$0xff] }
 0x1a7   : > { %v5749_v11 = vpop.f32.mrf.mxu1  ;;  %v1170_v54 = vpop.f32.mrf.mxu0  ;;  %1457 = vmatmul.mubr.f32.gmra.mxu0 %v873_v19  ;;  %v880_v19 = vld [vmem:[%s4849_s11 + $0x5f0] sm:$0xff] }
 0x1a8   : > { %3518 = vst [vmem:[%s5751_s18 + $0x120] sm:$0xff] %v3326_v51  ;;  %v3327_v35 = vadd.f32 %v5742_v7, %v1616_v21  ;;  %v1620_v47 = vadd.f32 %v5523_v50, %v1170_v54  ;;  %1462 = vmatprep.mubr.f32.mxu0 %v877_v22 }
 0x1a9   : > { %v5756_v2 = vpop.f32.mrf.mxu1  ;;  %2074 = vmatmul.mubr.f32.gmra.mxu1 %v5329_v3  ;;  %v1172_v6 = vpop.f32.mrf.mxu0 }
 0x1aa   : > { %2078 = vmatprep.mubr.f32.mxu1 %v5335_v9  ;;  %3519 = vst [vmem:[%s5751_s18 + $0x128] sm:$0xff] %v3327_v35  ;;  %v3329_v16 = vadd.f32 %v5736_v12, %v1620_v47  ;;  %v1622_v5 = vadd.f32 %v5526_v26, %v1172_v6  ;;  %v879_v9 = vld [vmem:[%s4849_s11 + $0x5e8] sm:$0xff] }
 0x1ab   : > { %v5765_v28 = vpop.f32.mrf.mxu1  ;;  %v1176_v50 = vpop.f32.mrf.mxu0  ;;  %1463 = vmatmul.mubr.f32.gmra.mxu0 %v876_v40  ;;  %v5788_v40 = vld [vmem:[%s4849_s11 + $0x10] sm:$0xff] }
 0x1ac   : > { %3521 = vst [vmem:[%s5751_s18 + $0x138] sm:$0xff] %v3329_v16  ;;  %v3330_v3 = vadd.f32 %v5742_v7, %v1622_v5  ;;  %v1626_v20 = vadd.f32 %v5531_v1, %v1176_v50  ;;  %1468 = vmatprep.mubr.f32.mxu0 %v880_v19  ;;  %v1022_v16 = vld [vmem:[%s4859_s21 + $0x460] sm:$0xff] }
 0x1ad   : > { %v5770_v22 = vpop.f32.mrf.mxu1  ;;  %2079 = vmatmul.mubr.f32.gmra.mxu1 %v5343_v63  ;;  %v1178_v51 = vpop.f32.mrf.mxu0 }
 0x1ae   : > { %2083 = vmatprep.mubr.f32.mxu1 %v5348_v14  ;;  %3522 = vst [vmem:[%s5751_s18 + $0x140] sm:$0xff] %v3330_v3  ;;  %v3332_v26 = vadd.f32 %v5736_v12, %v1626_v20  ;;  %v1628_v21 = vadd.f32 %v5534_v24, %v1178_v51  ;;  %v6978_v14 = vmov 0.0  }
 0x1af   : > { %v5778_v54 = vpop.f32.mrf.mxu1  ;;  %v1182_v1 = vpop.f32.mrf.mxu0  ;;  %1469 = vmatmul.mubr.f32.gmra.mxu0 %v879_v9 }
 0x1b0   : > { %3524 = vst [vmem:[%s5751_s18 + $0x150] sm:$0xff] %v3332_v26  ;;  %v3333_v63 = vadd.f32 %v5742_v7, %v1628_v21  ;;  %v1632_v35 = vadd.f32 %v5539_v60, %v1182_v1  ;;  %1539 = vmatprep.mubr.f32.mxu0 %v6978_v14 }
 0x1b1   : > { %v5783_v47 = vpop.f32.mrf.mxu1  ;;  %2084 = vmatmul.mubr.f32.gmra.mxu1 %v5355_v44  ;;  %v1184_v24 = vpop.f32.mrf.mxu0 }
 0x1b2   : > { %2088 = vmatprep.mubr.f32.mxu1 %v5360_v34  ;;  %3525 = vst [vmem:[%s5751_s18 + $0x158] sm:$0xff] %v3333_v63  ;;  %v3335_v6 = vadd.f32 %v5736_v12, %v1632_v35  ;;  %v1634_v19 = vadd.f32 %v5542_v38, %v1184_v24  ;;  %v5806_v34 = vld [vmem:[%s4849_s11 + $0x28] sm:$0xff] }
 0x1b3   : > { %v5794_v60 = vpop.f32.mrf.mxu1  ;;  %v1188_v5 = vpop.f32.mrf.mxu0  ;;  %1540 = vmatmul.mubr.f32.vlgmr.msra.gmra.mxu0 %v5788_v40  ;;  %v1019_v38 = vld [vmem:[%s4859_s21 + $0x448] sm:$0xff] }
 0x1b4   : > { %3527 = vst [vmem:[%s5751_s18 + $0x168] sm:$0xff] %v3335_v6  ;;  %v3336_v44 = vadd.f32 %v5742_v7, %v1634_v19  ;;  %v1638_v50 = vadd.f32 %v5546_v32, %v1188_v5  ;;  %3928 = vmatpush3.msra.mxu0 %v5485_v42  ;;  %1545 = vmatprep.mubr.f32.mxu0 %v6978_v14  ;;  %v1016_v42 = vld [vmem:[%s4859_s21 + $0x430] sm:$0xff] }
 0x1b5   : > { %v5801_v3 = vpop.f32.mrf.mxu1  ;;  %2089 = vmatmul.mubr.f32.gmra.mxu1 %v5367_v46  ;;  %v1190_v20 = vpop.f32.mrf.mxu0  ;;  %3929 = vmatprep.subr.mxu0 %v1022_v16 }
 0x1b6   : > { %3528 = vst [vmem:[%s5751_s18 + $0x170] sm:$0xff] %v3336_v44  ;;  %v3338_v9 = vadd.f32 %v5736_v12, %v1638_v50  ;;  %v1640_v32 = vadd.f32 %v5550_v62, %v1190_v20  ;;  %2093 = vmatprep.mubr.f32.mxu1 %v5372_v36  ;;  %3930 = vmatpush3.msra.mxu0 %v1022_v16  ;;  %v5826_v36 = vld [vmem:[%s4849_s11 + $0x40] sm:$0xff] }
 0x1b7   : > { %v5813_v51 = vpop.f32.mrf.mxu1  ;;  %v1194_v46 = vpop.f32.mrf.mxu0  ;;  %1546 = vmatmul.mubr.f32.gmra.mxu0 %v5806_v34  ;;  %3931 = vmatprep.subr.mxu0 %v1019_v38 }
 0x1b8   : > { %3530 = vst [vmem:[%s5751_s18 + $0x180] sm:$0xff] %v3338_v9  ;;  %v3339_v26 = vadd.f32 %v5742_v7, %v1640_v32  ;;  %v1644_v21 = vadd.f32 %v5554_v18, %v1194_v46  ;;  %1551 = vmatprep.mubr.f32.mxu0 %v6978_v14  ;;  %3932 = vmatpush3.msra.mxu0 %v1019_v38  ;;  %v6979_v9 = vld [vmem:[#allocation24_spill] sm:$0xff] }
 0x1b9   : > { %v5821_v1 = vpop.f32.mrf.mxu1  ;;  %2094 = vmatmul.mubr.f32.gmra.mxu1 %v5379_v48  ;;  %v1196_v62 = vpop.f32.mrf.mxu0  ;;  %3933 = vmatprep.subr.mxu0 %v1016_v42  ;;  %v1013_v48 = vld [vmem:[%s4859_s21 + $0x418] sm:$0xff]  ;;  %v1007_v32 = vld [vmem:[%s4859_s21 + $0x3e8] sm:$0xff] }
 0x1ba   : > { %2098 = vmatprep.mubr.f32.mxu1 %v5384_v27  ;;  %3531 = vst [vmem:[%s5751_s18 + $0x188] sm:$0xff] %v3339_v26  ;;  %v3341_v63 = vadd.f32 %v5736_v12, %v1644_v21  ;;  %v1646_v35 = vadd.f32 %v5558_v58, %v1196_v62  ;;  %3934 = vmatpush3.msra.mxu0 %v1016_v42  ;;  %v5843_v58 = vld [vmem:[%s4849_s11 + $0x58] sm:$0xff]  ;;  %v6980_v21 = vld [vmem:[#allocation25_spill] sm:$0xff] }
 0x1bb   : > { %v5832_v18 = vpop.f32.mrf.mxu1  ;;  %v1200_v24 = vpop.f32.mrf.mxu0  ;;  %1552 = vmatmul.mubr.f32.gmra.mxu0 %v5826_v36  ;;  %3935 = vmatprep.subr.mxu0 %v1013_v48 }
 0x1bc   : > { %3533 = vst [vmem:[%s5751_s18 + $0x198] sm:$0xff] %v3341_v63  ;;  %v3342_v6 = vadd.f32 %v5742_v7, %v1646_v35  ;;  %v1650_v19 = vadd.f32 %v5562_v57, %v1200_v24  ;;  %1557 = vmatprep.mubr.f32.mxu0 %v6978_v14  ;;  %3936 = vmatpush3.msra.mxu0 %v1013_v48  ;;  %v1004_v63 = vld [vmem:[%s4859_s21 + $0x3d0] sm:$0xff] }
 0x1bd   : > { %v5839_v27 = vpop.f32.mrf.mxu1  ;;  %2099 = vmatmul.mubr.f32.gmra.mxu1 %v5391_v52  ;;  %v1202_v16 = vpop.f32.mrf.mxu0  ;;  %v1010_v52 = vld [vmem:[%s4859_s21 + $0x400] sm:$0xff] }
 0x1be   : > { %2103 = vmatprep.mubr.f32.mxu1 %v5396_v29  ;;  %3534 = vst [vmem:[%s5751_s18 + $0x1a0] sm:$0xff] %v3342_v6  ;;  %v3344_v5 = vadd.f32 %v5736_v12, %v1650_v19  ;;  %v1652_v57 = vadd.f32 %v5566_v41, %v1202_v16  ;;  %v5861_v41 = vld [vmem:[%s4849_s11 + $0x70] sm:$0xff]  ;;  %3937 = vmatprep.subr.mxu0 %v1010_v52  ;;  %v5881_v6 = vld [vmem:[%s4849_s11 + $0x88] sm:$0xff]  ;;  %v6982_v16 = vld [vmem:[#allocation27_spill] sm:$0xff] }
 0x1bf   : > { %v5850_v44 = vpop.f32.mrf.mxu1  ;;  %v1206_v50 = vpop.f32.mrf.mxu0  ;;  %1558 = vmatmul.mubr.f32.gmra.mxu0 %v5843_v58 }
 0x1c0   : > { %3536 = vst [vmem:[%s5751_s18 + $0x1b0] sm:$0xff] %v3344_v5  ;;  %v3345_v38 = vadd.f32 %v5742_v7, %v1652_v57  ;;  %v1656_v20 = vadd.f32 %v5570_v30, %v1206_v50  ;;  %1563 = vmatprep.mubr.f32.mxu0 %v6978_v14  ;;  %3938 = vmatpush3.msra.mxu0 %v1010_v52  ;;  %v1001_v50 = vld [vmem:[%s4859_s21 + $0x3b8] sm:$0xff] }
 0x1c1   : > { %v5857_v29 = vpop.f32.mrf.mxu1  ;;  %2104 = vmatmul.mubr.f32.gmra.mxu1 %v6979_v9  ;;  %v1208_v46 = vpop.f32.mrf.mxu0  ;;  %3939 = vmatprep.subr.mxu0 %v1007_v32 }
 0x1c2   : > { %3537 = vst [vmem:[%s5751_s18 + $0x1b8] sm:$0xff] %v3345_v38  ;;  %v3347_v42 = vadd.f32 %v5736_v12, %v1656_v20  ;;  %v1658_v30 = vadd.f32 %v5574_v8, %v1208_v46  ;;  %2108 = vmatprep.mubr.f32.mxu1 %v6980_v21  ;;  %v6981_v8 = vld [vmem:[#allocation26_spill] sm:$0xff]  ;;  %3940 = vmatpush3.msra.mxu0 %v1007_v32  ;;  %v6983_v32 = vld [vmem:[#allocation28_spill] sm:$0xff] }
 0x1c3   : > { %v5868_v26 = vpop.f32.mrf.mxu1  ;;  %v1212_v62 = vpop.f32.mrf.mxu0  ;;  %1564 = vmatmul.mubr.f32.gmra.mxu0 %v5861_v41  ;;  %3941 = vmatprep.subr.mxu0 %v1004_v63 }
 0x1c4   : > { %3539 = vst [vmem:[%s5751_s18 + $0x1c8] sm:$0xff] %v3347_v42  ;;  %v3348_v35 = vadd.f32 %v5742_v7, %v1658_v30  ;;  %v1662_v24 = vadd.f32 %v5580_v56, %v1212_v62  ;;  %1569 = vmatprep.mubr.f32.mxu0 %v6978_v14  ;;  %3942 = vmatpush3.msra.mxu0 %v1004_v63  ;;  %v6984_v42 = vld [vmem:[#allocation29_spill] sm:$0xff]  ;;  %v998_v62 = vld [vmem:[%s4859_s21 + $0x3a0] sm:$0xff] }
 0x1c5   : > { %v5876_v48 = vpop.f32.mrf.mxu1  ;;  %2109 = vmatmul.mubr.f32.gmra.mxu1 %v6981_v8  ;;  %v1214_v19 = vpop.f32.mrf.mxu0  ;;  %3943 = vmatprep.subr.mxu0 %v1001_v50 }
 0x1c6   : > { %2113 = vmatprep.mubr.f32.mxu1 %v6982_v16  ;;  %3540 = vst [vmem:[%s5751_s18 + $0x1d0] sm:$0xff] %v3348_v35  ;;  %v3350_v5 = vadd.f32 %v5736_v12, %v1662_v24  ;;  %v1664_v57 = vadd.f32 %v5588_v45, %v1214_v19  ;;  %v5898_v45 = vld [vmem:[%s4849_s11 + $0xa0] sm:$0xff]  ;;  %v6985_v19 = vld [vmem:[#allocation30_spill] sm:$0xff]  ;;  %3944 = vmatpush3.msra.mxu0 %v1001_v50  ;;  %v995_v16 = vld [vmem:[%s4859_s21 + $0x388] sm:$0xff] }
 0x1c7   : > { %v5887_v56 = vpop.f32.mrf.mxu1  ;;  %v1218_v52 = vpop.f32.mrf.mxu0  ;;  %1570 = vmatmul.mubr.f32.gmra.mxu0 %v5881_v6  ;;  %3945 = vmatprep.subr.mxu0 %v998_v62 }
 0x1c8   : > { %3542 = vst [vmem:[%s5751_s18 + $0x1e0] sm:$0xff] %v3350_v5  ;;  %v3351_v38 = vadd.f32 %v5742_v7, %v1664_v57  ;;  %v1668_v20 = vadd.f32 %v5592_v37, %v1218_v52  ;;  %1575 = vmatprep.mubr.f32.mxu0 %v6978_v14  ;;  %3946 = vmatpush3.msra.mxu0 %v998_v62  ;;  %v6988_v62 = vld [vmem:[#allocation33_spill] sm:$0xff] }
 0x1c9   : > { %v5894_v9 = vpop.f32.mrf.mxu1  ;;  %2114 = vmatmul.mubr.f32.gmra.mxu1 %v6983_v32  ;;  %v1220_v46 = vpop.f32.mrf.mxu0  ;;  %3947 = vmatprep.subr.mxu0 %v995_v16 }
 0x1ca   : > { %2118 = vmatprep.mubr.f32.mxu1 %v6984_v42  ;;  %3543 = vst [vmem:[%s5751_s18 + $0x1e8] sm:$0xff] %v3351_v38  ;;  %v3353_v30 = vadd.f32 %v5736_v12, %v1668_v20  ;;  %v1670_v37 = vadd.f32 %v5600_v13, %v1220_v46  ;;  %v5916_v13 = vld [vmem:[%s4849_s11 + $0xb8] sm:$0xff]  ;;  %v992_v20 = vld [vmem:[%s4859_s21 + $0x370] sm:$0xff]  ;;  %3948 = vmatpush3.msra.mxu0 %v995_v16 }
 0x1cb   : > { %v5905_v21 = vpop.f32.mrf.mxu1  ;;  %v1224_v63 = vpop.f32.mrf.mxu0  ;;  %1576 = vmatmul.mubr.f32.gmra.mxu0 %v5898_v45  ;;  %v6986_v38 = vld [vmem:[#allocation31_spill] sm:$0xff]  ;;  %3949 = vmatprep.subr.mxu0 %v992_v20 }
 0x1cc   : > { %3545 = vst [vmem:[%s5751_s18 + $0x1f8] sm:$0xff] %v3353_v30  ;;  %v3354_v35 = vadd.f32 %v5742_v7, %v1670_v37  ;;  %v1674_v24 = vadd.f32 %v5604_v59, %v1224_v63  ;;  %1581 = vmatprep.mubr.f32.mxu0 %v6978_v14  ;;  %v5936_v30 = vld [vmem:[%s4849_s11 + $0xd0] sm:$0xff]  ;;  %3950 = vmatpush3.msra.mxu0 %v992_v20  ;;  %v986_v20 = vld [vmem:[%s4859_s21 + $0x340] sm:$0xff] }
 0x1cd   : > { %v5912_v8 = vpop.f32.mrf.mxu1  ;;  %2119 = vmatmul.mubr.f32.gmra.mxu1 %v6985_v19  ;;  %v1226_v5 = vpop.f32.mrf.mxu0  ;;  %v989_v19 = vld [vmem:[%s4859_s21 + $0x358] sm:$0xff] }
 0x1ce   : > { %3546 = vst [vmem:[%s5751_s18 + $0x200] sm:$0xff] %v3354_v35  ;;  %v3356_v57 = vadd.f32 %v5736_v12, %v1674_v24  ;;  %v1676_v59 = vadd.f32 %v5612_v10, %v1226_v5  ;;  %2123 = vmatprep.mubr.f32.mxu1 %v6986_v38  ;;  %v6987_v10 = vld [vmem:[#allocation32_spill] sm:$0xff]  ;;  %3951 = vmatprep.subr.mxu0 %v989_v19 }
 0x1cf   : > { %v5923_v52 = vpop.f32.mrf.mxu1  ;;  %v1230_v50 = vpop.f32.mrf.mxu0  ;;  %1582 = vmatmul.mubr.f32.gmra.mxu0 %v5916_v13 }
 0x1d0   : > { %3548 = vst [vmem:[%s5751_s18 + $0x210] sm:$0xff] %v3356_v57  ;;  %v3357_v32 = vadd.f32 %v5742_v7, %v1676_v59  ;;  %v1680_v46 = vadd.f32 %v5616_v0, %v1230_v50  ;;  %1587 = vmatprep.mubr.f32.mxu0 %v6978_v14  ;;  %v6989_v59 = vld [vmem:[#allocation34_spill] sm:$0xff]  ;;  %v6990_v50 = vld [vmem:[#allocation35_spill] sm:$0xff]  ;;  %3952 = vmatpush3.msra.mxu0 %v989_v19 }
 0x1d1   : > { %v5931_v42 = vpop.f32.mrf.mxu1  ;;  %2124 = vmatmul.mubr.f32.gmra.mxu1 %v6987_v10  ;;  %v1232_v37 = vpop.f32.mrf.mxu0  ;;  %3953 = vmatprep.subr.mxu0 %v986_v20 }
 0x1d2   : > { %2128 = vmatprep.mubr.f32.mxu1 %v6988_v62  ;;  %3549 = vst [vmem:[%s5751_s18 + $0x218] sm:$0xff] %v3357_v32  ;;  %v3359_v63 = vadd.f32 %v5736_v12, %v1680_v46  ;;  %v1682_v35 = vadd.f32 %v5624_v17, %v1232_v37  ;;  %v5953_v17 = vld [vmem:[%s4849_s11 + $0xe8] sm:$0xff]  ;;  %3954 = vmatpush3.msra.mxu0 %v986_v20 }
 0x1d3   : > { %v5942_v0 = vpop.f32.mrf.mxu1  ;;  %v1236_v24 = vpop.f32.mrf.mxu0  ;;  %1588 = vmatmul.mubr.f32.gmra.mxu0 %v5936_v30 }
 0x1d4   : > { %3551 = vst [vmem:[%s5751_s18 + $0x228] sm:$0xff] %v3359_v63  ;;  %v3360_v16 = vadd.f32 %v5742_v7, %v1682_v35  ;;  %v1686_v5 = vadd.f32 %v5628_v49, %v1236_v24  ;;  %1593 = vmatprep.mubr.f32.mxu0 %v6978_v14  ;;  %v4239_v35 = vld [vmem:[%s4849_s11 + $0x2b8] sm:$0xff]  ;;  %v983_v24 = vld [vmem:[%s4859_s21 + $0x328] sm:$0xff] }
 0x1d5   : > { %v5949_v57 = vpop.f32.mrf.mxu1  ;;  %2129 = vmatmul.mubr.f32.gmra.mxu1 %v6989_v59  ;;  %v1238_v38 = vpop.f32.mrf.mxu0  ;;  %3955 = vmatprep.subr.mxu0 %v983_v24 }
 0x1d6   : > { %2133 = vmatprep.mubr.f32.mxu1 %v6990_v50  ;;  %3552 = vst [vmem:[%s5751_s18 + $0x230] sm:$0xff] %v3360_v16  ;;  %v3362_v32 = vadd.f32 %v5736_v12, %v1686_v5  ;;  %v1688_v49 = vadd.f32 %v5636_v23, %v1238_v38  ;;  %v5971_v23 = vld [vmem:[%s4849_s11 + $0x100] sm:$0xff]  ;;  %v4240_v38 = vld [vmem:[%s4849_s11 + $0x2d8] sm:$0xff]  ;;  %v980_v50 = vld [vmem:[%s4859_s21 + $0x310] sm:$0xff]  ;;  %3956 = vmatpush3.msra.mxu0 %v983_v24  ;;  %s4451_s21 = scalar_lea.vmem %s4450_s26, 49152 }
 0x1d7   : > { %v5960_v46 = vpop.f32.mrf.mxu1  ;;  %v1242_v10 = vpop.f32.mrf.mxu0  ;;  %1594 = vmatmul.mubr.f32.gmra.mxu0 %v5953_v17  ;;  %3957 = vmatprep.subr.mxu0 %v980_v50  ;;  %p4453_p5 = scmp.lt.s32.totalorder %s4451_s21, %s4445_s28 }
 0x1d8   : > { %3554 = vst [vmem:[%s5751_s18 + $0x240] sm:$0xff] %v3362_v32  ;;  %v3363_v37 = vadd.f32 %v5742_v7, %v1688_v49  ;;  %v1692_v62 = vadd.f32 %v5640_v53, %v1242_v10  ;;  %1599 = vmatprep.mubr.f32.mxu0 %v6978_v14  ;;  %3958 = vmatpush3.msra.mxu0 %v980_v50 }
 0x1d9   : > { %v5967_v63 = vpop.f32.mrf.mxu1  ;;  %2134 = vmatmul.mubr.f32.gmra.mxu1 %v4239_v35  ;;  %v1244_v16 = vpop.f32.mrf.mxu0  ;;  %p4454_p4 = por %p4453_p5, %p4452_p9 }
 0x1da   : > { %3555 = vst [vmem:[%s5751_s18 + $0x248] sm:$0xff] %v3363_v37  ;;  %v3365_v5 = vadd.f32 %v5736_v12, %v1692_v62  ;;  %v1694_v53 = vadd.f32 %v5648_v31, %v1244_v16  ;;  %2138 = vmatprep.mubr.f32.mxu1 %v4240_v38  ;;  %v4241_v31 = vld [vmem:[%s4849_s11 + $0x2d0] sm:$0xff]  ;;  %v5991_v37 = vld [vmem:[%s4849_s11 + $0x118] sm:$0xff]  ;;  %v4243_v38 = vld [vmem:[%s4849_s11 + $0x2e8] sm:$0xff] }
 0x1db   : > { %v5978_v59 = vpop.f32.mrf.mxu1  ;;  %v1248_v19 = vpop.f32.mrf.mxu0  ;;  %1600 = vmatmul.mubr.f32.gmra.mxu0 %v5971_v23  ;;  %v4242_v62 = vld [vmem:[%s4849_s11 + $0x2f0] sm:$0xff]  ;;  %p4455_p8 = pnand %p4454_p4, %p4448_p1 }
 0x1dc   : > { %3557 = vst [vmem:[%s5751_s18 + $0x258] sm:$0xff] %v3365_v5  ;;  %v3366_v32 = vadd.f32 %v5742_v7, %v1694_v53  ;;  %v1698_v49 = vadd.f32 %v5652_v61, %v1248_v19  ;;  %1605 = vmatprep.mubr.f32.mxu0 %v6978_v14  ;;  %v4244_v19 = vld [vmem:[%s4849_s11 + $0x308] sm:$0xff] }
 0x1dd   : > { %v5986_v10 = vpop.f32.mrf.mxu1  ;;  %2139 = vmatmul.mubr.f32.gmra.mxu1 %v4241_v31  ;;  %v1250_v20 = vpop.f32.mrf.mxu0 }
 0x1de   : > { %2143 = vmatprep.mubr.f32.mxu1 %v4242_v62  ;;  %3558 = vst [vmem:[%s5751_s18 + $0x260] sm:$0xff] %v3366_v32  ;;  %v3368_v35 = vadd.f32 %v5736_v12, %v1698_v49  ;;  %v1700_v61 = vadd.f32 %v5660_v39, %v1250_v20  ;;  %v6991_v49 = vld [vmem:[#allocation52_spill] sm:$0xff] }
 0x1df   : > { %v5997_v16 = vpop.f32.mrf.mxu1  ;;  %v1254_v5 = vpop.f32.mrf.mxu0  ;;  %1606 = vmatmul.mubr.f32.gmra.mxu0 %v5991_v37 }
 0x1e0   : > { %3560 = vst [vmem:[%s5751_s18 + $0x270] sm:$0xff] %v3368_v35  ;;  %v3369_v14 = vadd.f32 %v5742_v7, %v1700_v61  ;;  %v1704_v24 = vadd.f32 %v5664_v4, %v1254_v5  ;;  %3959 = vmatprep.mubr.f32.mxu0 %v5788_v40  ;;  %v4245_v35 = vld [vmem:[%s4849_s11 + $0x300] sm:$0xff] }
 0x1e1   : > { %v6003_v53 = vpop.f32.mrf.mxu1  ;;  %2144 = vmatmul.mubr.f32.gmra.mxu1 %v4243_v38  ;;  %v1256_v39 = vpop.f32.mrf.mxu0  ;;  %v4246_v5 = vld [vmem:[%s4849_s11 + $0x320] sm:$0xff] }
 0x1e2   : > { %2148 = vmatprep.mubr.f32.mxu1 %v4244_v19  ;;  %3561 = vst [vmem:[%s5751_s18 + $0x278] sm:$0xff] %v3369_v14  ;;  %v3371_v32 = vadd.f32 %v5736_v12, %v1704_v24  ;;  %v1706_v31 = vadd.f32 %v6991_v49, %v1256_v39  ;;  %v4247_v19 = vld [vmem:[%s4849_s11 + $0x318] sm:$0xff] }
 0x1e3   : > { %v6011_v20 = vpop.f32.mrf.mxu1  ;;  %v1260_v4 = vpop.f32.mrf.mxu0  ;;  %3960 = vmatmul.mubr.f32.vlgmr.msra.gmra.mxu0 %v5806_v34 }
 0x1e4   : > { %3563 = vst [vmem:[%s5751_s18 + $0x288] sm:$0xff] %v3371_v32  ;;  %v3372_v50 = vadd.f32 %v5742_v7, %v1706_v31  ;;  %v1710_v40 = vadd.f32 %v5676_v33, %v1260_v4  ;;  %3962 = vmatprep.mubr.f32.mxu0 %v5826_v36 }
 0x1e5   : > { %v6017_v62 = vpop.f32.mrf.mxu1  ;;  %2149 = vmatmul.mubr.f32.gmra.mxu1 %v4245_v35  ;;  %v1262_v61 = vpop.f32.mrf.mxu0  ;;  %v4249_v35 = vld [vmem:[%s4849_s11 + $0x330] sm:$0xff] }
 0x1e6   : > { %2153 = vmatprep.mubr.f32.mxu1 %v4246_v5  ;;  %3564 = vst [vmem:[%s5751_s18 + $0x290] sm:$0xff] %v3372_v50  ;;  %v3374_v34 = vadd.f32 %v5736_v12, %v1710_v40  ;;  %v1712_v14 = vadd.f32 %v5684_v25, %v1262_v61  ;;  %v4248_v25 = vld [vmem:[%s4849_s11 + $0x338] sm:$0xff]  ;;  %v6993_v5 = vld [vmem:[#allocation61_spill] sm:$0xff] }
 0x1e7   : > { %v6025_v24 = vpop.f32.mrf.mxu1  ;;  %v1266_v33 = vpop.f32.mrf.mxu0  ;;  %3963 = vmatmul.mubr.f32.gmra.mxu0 %v5843_v58 }
 0x1e8   : > { %3566 = vst [vmem:[%s5751_s18 + $0x2a0] sm:$0xff] %v3374_v34  ;;  %v3375_v38 = vadd.f32 %v5742_v7, %v1712_v14  ;;  %v1716_v36 = vadd.f32 %v5688_v43, %v1266_v33  ;;  %3965 = vmatprep.mubr.f32.mxu0 %v5861_v41  ;;  %v6992_v41 = vld [vmem:[#allocation59_spill] sm:$0xff] }
 0x1e9   : > { %v6031_v39 = vpop.f32.mrf.mxu1  ;;  %2154 = vmatmul.mubr.f32.gmra.mxu1 %v4247_v19  ;;  %v1268_v32 = vpop.f32.mrf.mxu0 }
 0x1ea   : > { %2158 = vmatprep.mubr.f32.mxu1 %v4248_v25  ;;  %3567 = vst [vmem:[%s5751_s18 + $0x2a8] sm:$0xff] %v3375_v38  ;;  %v3377_v58 = vadd.f32 %v5736_v12, %v1716_v36  ;;  %v1718_v49 = vadd.f32 %v5700_v55, %v1268_v32  ;;  %v4250_v55 = vld [vmem:[%s4849_s11 + $0x350] sm:$0xff]  ;;  %v4251_v32 = vld [vmem:[%s4849_s11 + $0x348] sm:$0xff] }
 0x1eb   : > { %v6039_v31 = vpop.f32.mrf.mxu1  ;;  %v1272_v43 = vpop.f32.mrf.mxu0  ;;  %3966 = vmatmul.mubr.f32.gmra.mxu0 %v5881_v6 }
 0x1ec   : > { %3569 = vst [vmem:[%s5751_s18 + $0x2b8] sm:$0xff] %v3377_v58  ;;  %v3378_v4 = vadd.f32 %v5742_v7, %v1718_v49  ;;  %v1722_v50 = vadd.f32 %v6992_v41, %v1272_v43  ;;  %3968 = vmatprep.mubr.f32.mxu0 %v5898_v45  ;;  %v6994_v45 = vld [vmem:[#allocation63_spill] sm:$0xff]  ;;  %v4252_v58 = vld [vmem:[%s4849_s11 + $0x368] sm:$0xff] }
 0x1ed   : > { %v6045_v40 = vpop.f32.mrf.mxu1  ;;  %2159 = vmatmul.mubr.f32.gmra.mxu1 %v4249_v35  ;;  %v1274_v61 = vpop.f32.mrf.mxu0  ;;  %v6995_v49 = vld [vmem:[#allocation65_spill] sm:$0xff] }
 0x1ee   : > { %2163 = vmatprep.mubr.f32.mxu1 %v4250_v55  ;;  %3570 = vst [vmem:[%s5751_s18 + $0x2c0] sm:$0xff] %v3378_v4  ;;  %v3380_v6 = vadd.f32 %v5736_v12, %v1722_v50  ;;  %v1724_v34 = vadd.f32 %v6993_v5, %v1274_v61  ;;  %v4253_v61 = vld [vmem:[%s4849_s11 + $0x360] sm:$0xff] }
 0x1ef   : > { %v6053_v14 = vpop.f32.mrf.mxu1  ;;  %v1278_v33 = vpop.f32.mrf.mxu0  ;;  %3969 = vmatmul.mubr.f32.gmra.mxu0 %v5916_v13 }
 0x1f0   : > { %3572 = vst [vmem:[%s5751_s18 + $0x2d0] sm:$0xff] %v3380_v6  ;;  %v3381_v38 = vadd.f32 %v5742_v7, %v1724_v34  ;;  %v1728_v36 = vadd.f32 %v6994_v45, %v1278_v33  ;;  %3971 = vmatprep.mubr.f32.mxu0 %v5936_v30  ;;  %v4254_v6 = vld [vmem:[%s4849_s11 + $0x380] sm:$0xff]  ;;  %v4255_v45 = vld [vmem:[%s4849_s11 + $0x378] sm:$0xff] }
 0x1f1   : > { %v6059_v19 = vpop.f32.mrf.mxu1  ;;  %2164 = vmatmul.mubr.f32.gmra.mxu1 %v4251_v32  ;;  %v1280_v25 = vpop.f32.mrf.mxu0  ;;  %v4257_v32 = vld [vmem:[%s4849_s11 + $0x398] sm:$0xff] }
 0x1f2   : > { %2168 = vmatprep.mubr.f32.mxu1 %v4252_v58  ;;  %3573 = vst [vmem:[%s5751_s18 + $0x2d8] sm:$0xff] %v3381_v38  ;;  %v3383_v13 = vadd.f32 %v5736_v12, %v1728_v36  ;;  %v1730_v43 = vadd.f32 %v6995_v49, %v1280_v25  ;;  %v4256_v36 = vld [vmem:[%s4849_s11 + $0x130] sm:$0xff] }
 0x1f3   : > { %v6067_v4 = vpop.f32.mrf.mxu1  ;;  %v1284_v41 = vpop.f32.mrf.mxu0  ;;  %3972 = vmatmul.mubr.f32.gmra.mxu0 %v5953_v17 }
 0x1f4   : > { %3575 = vst [vmem:[%s5751_s18 + $0x2e8] sm:$0xff] %v3383_v13  ;;  %v3384_v50 = vadd.f32 %v5742_v7, %v1730_v43  ;;  %v1734_v30 = vadd.f32 %v5739_v15, %v1284_v41  ;;  %3974 = vmatprep.mubr.f32.mxu0 %v5971_v23  ;;  %v4258_v13 = vld [vmem:[%s4849_s11 + $0x148] sm:$0xff] }
 0x1f5   : > { %v6073_v35 = vpop.f32.mrf.mxu1  ;;  %2169 = vmatmul.mubr.f32.gmra.mxu1 %v4253_v61  ;;  %v1286_v55 = vpop.f32.mrf.mxu0  ;;  %v4261_v61 = vld [vmem:[%s4849_s11 + $0x3b0] sm:$0xff] }
 0x1f6   : > { %2173 = vmatprep.mubr.f32.mxu1 %v4254_v6  ;;  %3576 = vst [vmem:[%s5751_s18 + $0x2f0] sm:$0xff] %v3384_v50  ;;  %v3386_v17 = vadd.f32 %v5736_v12, %v1734_v30  ;;  %v1736_v5 = vadd.f32 %v5749_v11, %v1286_v55  ;;  %v4259_v50 = vld [vmem:[%s4849_s11 + $0x390] sm:$0xff]  ;;  %v4260_v30 = vld [vmem:[%s4849_s11 + $0x160] sm:$0xff] }
 0x1f7   : > { %v6081_v34 = vpop.f32.mrf.mxu1  ;;  %v1290_v15 = vpop.f32.mrf.mxu0  ;;  %3975 = vmatmul.mubr.f32.gmra.mxu0 %v5991_v37 }
 0x1f8   : > { %3578 = vst [vmem:[%s5751_s18 + $0x300] sm:$0xff] %v3386_v17  ;;  %v3387_v23 = vadd.f32 %v5742_v7, %v1736_v5  ;;  %v1740_v33 = vadd.f32 %v5756_v2, %v1290_v15  ;;  %3977 = vmatprep.mubr.f32.mxu0 %v4256_v36  ;;  %v4262_v5 = vld [vmem:[%s4849_s11 + $0x178] sm:$0xff]  ;;  %v4264_v36 = vld [vmem:[%s4849_s11 + $0x190] sm:$0xff] }
 0x1f9   : > { %v6087_v38 = vpop.f32.mrf.mxu1  ;;  %2174 = vmatmul.mubr.f32.gmra.mxu1 %v4255_v45  ;;  %v1292_v11 = vpop.f32.mrf.mxu0  ;;  %v4263_v45 = vld [vmem:[%s4849_s11 + $0x3a8] sm:$0xff] }
 0x1fa   : > { %2178 = vmatprep.mubr.f32.mxu1 %v4257_v32  ;;  %3579 = vst [vmem:[%s5751_s18 + $0x308] sm:$0xff] %v3387_v23  ;;  %v3389_v37 = vadd.f32 %v5736_v12, %v1740_v33  ;;  %v1742_v25 = vadd.f32 %v5765_v28, %v1292_v11  ;;  %v4265_v11 = vld [vmem:[%s4849_s11 + $0x3c8] sm:$0xff] }
 0x1fb   : > { %v6095_v2 = vpop.f32.mrf.mxu1  ;;  %v1296_v58 = vpop.f32.mrf.mxu0  ;;  %3978 = vmatmul.mubr.f32.gmra.mxu0 %v4258_v13 }
 0x1fc   : > { %3581 = vst [vmem:[%s5751_s18 + $0x318] sm:$0xff] %v3389_v37  ;;  %v3390_v49 = vadd.f32 %v5742_v7, %v1742_v25  ;;  %v1746_v43 = vadd.f32 %v5770_v22, %v1296_v58  ;;  %3980 = vmatprep.mubr.f32.mxu0 %v4260_v30  ;;  %v4266_v58 = vld [vmem:[%s4849_s11 + $0x1a8] sm:$0xff]  ;;  %v4268_v30 = vld [vmem:[%s4849_s11 + $0x1c0] sm:$0xff] }
 0x1fd   : > { %v6101_v41 = vpop.f32.mrf.mxu1  ;;  %2179 = vmatmul.mubr.f32.gmra.mxu1 %v4259_v50  ;;  %v1298_v28 = vpop.f32.mrf.mxu0  ;;  %v4267_v50 = vld [vmem:[%s4849_s11 + $0x3c0] sm:$0xff] }
 0x1fe   : > { %2183 = vmatprep.mubr.f32.mxu1 %v4261_v61  ;;  %3582 = vst [vmem:[%s5751_s18 + $0x320] sm:$0xff] %v3390_v49  ;;  %v3392_v55 = vadd.f32 %v5736_v12, %v1746_v43  ;;  %v1748_v6 = vadd.f32 %v5778_v54, %v1298_v28  ;;  %v4269_v28 = vld [vmem:[%s4849_s11 + $0x3e0] sm:$0xff] }
 0x1ff   : > { %v6109_v22 = vpop.f32.mrf.mxu1  ;;  %v1302_v17 = vpop.f32.mrf.mxu0  ;;  %3981 = vmatmul.mubr.f32.gmra.mxu0 %v4262_v5 }
 0x200   : > { %3584 = vst [vmem:[%s5751_s18 + $0x330] sm:$0xff] %v3392_v55  ;;  %v3393_v15 = vadd.f32 %v5742_v7, %v1748_v6  ;;  %v1752_v23 = vadd.f32 %v5783_v47, %v1302_v17  ;;  %3983 = vmatprep.mubr.f32.mxu0 %v4264_v36  ;;  %v4270_v17 = vld [vmem:[%s4849_s11 + $0x1d8] sm:$0xff]  ;;  %v4272_v36 = vld [vmem:[%s4849_s11 + $0x1f0] sm:$0xff] }
 0x201   : > { %v6115_v33 = vpop.f32.mrf.mxu1  ;;  %2184 = vmatmul.mubr.f32.gmra.mxu1 %v4263_v45  ;;  %v1304_v54 = vpop.f32.mrf.mxu0  ;;  %v4271_v45 = vld [vmem:[%s4849_s11 + $0x3d8] sm:$0xff] }
 0x202   : > { %2188 = vmatprep.mubr.f32.mxu1 %v4265_v11  ;;  %3585 = vst [vmem:[%s5751_s18 + $0x338] sm:$0xff] %v3393_v15  ;;  %v3395_v32 = vadd.f32 %v5736_v12, %v1752_v23  ;;  %v1754_v37 = vadd.f32 %v5794_v60, %v1304_v54  ;;  %v4273_v54 = vld [vmem:[%s4849_s11 + $0x3f8] sm:$0xff] }
 0x203   : > { %v6123_v47 = vpop.f32.mrf.mxu1  ;;  %v1308_v25 = vpop.f32.mrf.mxu0  ;;  %3984 = vmatmul.mubr.f32.gmra.mxu0 %v4266_v58 }
 0x204   : > { %3587 = vst [vmem:[%s5751_s18 + $0x348] sm:$0xff] %v3395_v32  ;;  %v3396_v13 = vadd.f32 %v5742_v7, %v1754_v37  ;;  %v1758_v49 = vadd.f32 %v5801_v3, %v1308_v25  ;;  %3986 = vmatprep.mubr.f32.mxu0 %v4268_v30  ;;  %v4274_v25 = vld [vmem:[%s4849_s11 + $0x208] sm:$0xff]  ;;  %v4276_v30 = vld [vmem:[%s4849_s11 + $0x220] sm:$0xff] }
 0x205   : > { %v6129_v43 = vpop.f32.mrf.mxu1  ;;  %2189 = vmatmul.mubr.f32.gmra.mxu1 %v4267_v50  ;;  %v1310_v60 = vpop.f32.mrf.mxu0  ;;  %v4275_v50 = vld [vmem:[%s4849_s11 + $0x3f0] sm:$0xff] }
 0x206   : > { %2193 = vmatprep.mubr.f32.mxu1 %v4269_v28  ;;  %3588 = vst [vmem:[%s5751_s18 + $0x350] sm:$0xff] %v3396_v13  ;;  %v3398_v61 = vadd.f32 %v5736_v12, %v1758_v49  ;;  %v1760_v55 = vadd.f32 %v5813_v51, %v1310_v60  ;;  %v4277_v60 = vld [vmem:[%s4849_s11 + $0x410] sm:$0xff] }
 0x207   : > { %v6137_v3 = vpop.f32.mrf.mxu1  ;;  %v1314_v6 = vpop.f32.mrf.mxu0  ;;  %3987 = vmatmul.mubr.f32.gmra.mxu0 %v4270_v17 }
 0x208   : > { %3590 = vst [vmem:[%s5751_s18 + $0x360] sm:$0xff] %v3398_v61  ;;  %v3399_v5 = vadd.f32 %v5742_v7, %v1760_v55  ;;  %v1764_v15 = vadd.f32 %v5821_v1, %v1314_v6  ;;  %3989 = vmatprep.mubr.f32.mxu0 %v4272_v36  ;;  %v4278_v6 = vld [vmem:[%s4849_s11 + $0x238] sm:$0xff]  ;;  %v4280_v36 = vld [vmem:[%s4849_s11 + $0x250] sm:$0xff] }
 0x209   : > { %v6143_v23 = vpop.f32.mrf.mxu1  ;;  %2194 = vmatmul.mubr.f32.gmra.mxu1 %v4271_v45  ;;  %v1316_v51 = vpop.f32.mrf.mxu0  ;;  %v4279_v45 = vld [vmem:[%s4849_s11 + $0x408] sm:$0xff] }
 0x20a   : > { %2198 = vmatprep.mubr.f32.mxu1 %v4273_v54  ;;  %3591 = vst [vmem:[%s5751_s18 + $0x368] sm:$0xff] %v3399_v5  ;;  %v3401_v11 = vadd.f32 %v5736_v12, %v1764_v15  ;;  %v1766_v32 = vadd.f32 %v5832_v18, %v1316_v51  ;;  %v4281_v51 = vld [vmem:[%s4849_s11 + $0x428] sm:$0xff] }
 0x20b   : > { %v6151_v1 = vpop.f32.mrf.mxu1  ;;  %v1320_v37 = vpop.f32.mrf.mxu0  ;;  %3990 = vmatmul.mubr.f32.gmra.mxu0 %v4274_v25 }
 0x20c   : > { %3593 = vst [vmem:[%s5751_s18 + $0x378] sm:$0xff] %v3401_v11  ;;  %v3402_v58 = vadd.f32 %v5742_v7, %v1766_v32  ;;  %v1770_v13 = vadd.f32 %v5839_v27, %v1320_v37  ;;  %3992 = vmatprep.mubr.f32.mxu0 %v4276_v30  ;;  %v4282_v37 = vld [vmem:[%s4849_s11 + $0x268] sm:$0xff]  ;;  %v4284_v30 = vld [vmem:[%s4849_s11 + $0x280] sm:$0xff] }
 0x20d   : > { %v6157_v49 = vpop.f32.mrf.mxu1  ;;  %2199 = vmatmul.mubr.f32.gmra.mxu1 %v4275_v50  ;;  %v1322_v18 = vpop.f32.mrf.mxu0  ;;  %v4283_v50 = vld [vmem:[%s4849_s11 + $0x420] sm:$0xff] }
 0x20e   : > { %2203 = vmatprep.mubr.f32.mxu1 %v4277_v60  ;;  %3594 = vst [vmem:[%s5751_s18 + $0x380] sm:$0xff] %v3402_v58  ;;  %v3404_v28 = vadd.f32 %v5736_v12, %v1770_v13  ;;  %v1772_v61 = vadd.f32 %v5850_v44, %v1322_v18  ;;  %v4285_v18 = vld [vmem:[%s4849_s11 + $0x440] sm:$0xff] }
 0x20f   : > { %v6165_v27 = vpop.f32.mrf.mxu1  ;;  %v1326_v55 = vpop.f32.mrf.mxu0  ;;  %3993 = vmatmul.mubr.f32.gmra.mxu0 %v4278_v6 }
 0x210   : > { %3596 = vst [vmem:[%s5751_s18 + $0x390] sm:$0xff] %v3404_v28  ;;  %v3405_v17 = vadd.f32 %v5742_v7, %v1772_v61  ;;  %v1776_v5 = vadd.f32 %v5857_v29, %v1326_v55  ;;  %3995 = vmatprep.mubr.f32.mxu0 %v4280_v36  ;;  %v4286_v55 = vld [vmem:[%s4849_s11 + $0x298] sm:$0xff]  ;;  %v4288_v36 = vld [vmem:[%s4849_s11 + $0x2b0] sm:$0xff] }
 0x211   : > { %v6171_v15 = vpop.f32.mrf.mxu1  ;;  %2204 = vmatmul.mubr.f32.gmra.mxu1 %v4279_v45  ;;  %v1328_v44 = vpop.f32.mrf.mxu0  ;;  %v4287_v45 = vld [vmem:[%s4849_s11 + $0x438] sm:$0xff] }
 0x212   : > { %2208 = vmatprep.mubr.f32.mxu1 %v4281_v51  ;;  %3597 = vst [vmem:[%s5751_s18 + $0x398] sm:$0xff] %v3405_v17  ;;  %v3407_v54 = vadd.f32 %v5736_v12, %v1776_v5  ;;  %v1778_v11 = vadd.f32 %v5868_v26, %v1328_v44  ;;  %v4289_v44 = vld [vmem:[%s4849_s11 + $0x458] sm:$0xff] }
 0x213   : > { %v6179_v29 = vpop.f32.mrf.mxu1  ;;  %v1332_v32 = vpop.f32.mrf.mxu0  ;;  %3996 = vmatmul.mubr.f32.gmra.mxu0 %v4282_v37 }
 0x214   : > { %3599 = vst [vmem:[%s5751_s18 + $0x3a8] sm:$0xff] %v3407_v54  ;;  %v3408_v25 = vadd.f32 %v5742_v7, %v1778_v11  ;;  %v1782_v58 = vadd.f32 %v5876_v48, %v1332_v32  ;;  %3998 = vmatprep.mubr.f32.mxu0 %v4284_v30  ;;  %v4290_v32 = vld [vmem:[%s4849_s11 + $0x2c8] sm:$0xff]  ;;  %v4292_v30 = vld [vmem:[%s4849_s11 + $0x2e0] sm:$0xff] }
 0x215   : > { %v6185_v13 = vpop.f32.mrf.mxu1  ;;  %2209 = vmatmul.mubr.f32.gmra.mxu1 %v4283_v50  ;;  %v1334_v26 = vpop.f32.mrf.mxu0  ;;  %v4291_v50 = vld [vmem:[%s4849_s11 + $0x450] sm:$0xff] }
 0x216   : > { %2213 = vmatprep.mubr.f32.mxu1 %v4285_v18  ;;  %3600 = vst [vmem:[%s5751_s18 + $0x3b0] sm:$0xff] %v3408_v25  ;;  %v3410_v60 = vadd.f32 %v5736_v12, %v1782_v58  ;;  %v1784_v28 = vadd.f32 %v5887_v56, %v1334_v26  ;;  %v4293_v26 = vld [vmem:[%s4849_s11 + $0x470] sm:$0xff] }
 0x217   : > { %v6193_v48 = vpop.f32.mrf.mxu1  ;;  %v1338_v61 = vpop.f32.mrf.mxu0  ;;  %3999 = vmatmul.mubr.f32.gmra.mxu0 %v4286_v55 }
 0x218   : > { %3602 = vst [vmem:[%s5751_s18 + $0x3c0] sm:$0xff] %v3410_v60  ;;  %v3411_v6 = vadd.f32 %v5742_v7, %v1784_v28  ;;  %v1788_v17 = vadd.f32 %v5894_v9, %v1338_v61  ;;  %4001 = vmatprep.mubr.f32.mxu0 %v4288_v36  ;;  %v4294_v61 = vld [vmem:[%s4849_s11 + $0x2f8] sm:$0xff]  ;;  %v4296_v36 = vld [vmem:[%s4849_s11 + $0x310] sm:$0xff] }
 0x219   : > { %v6199_v5 = vpop.f32.mrf.mxu1  ;;  %2214 = vmatmul.mubr.f32.gmra.mxu1 %v4287_v45  ;;  %v1340_v56 = vpop.f32.mrf.mxu0  ;;  %v4295_v45 = vld [vmem:[%s4849_s11 + $0x468] sm:$0xff] }
 0x21a   : > { %2218 = vmatprep.mubr.f32.mxu1 %v4289_v44  ;;  %3603 = vst [vmem:[%s5751_s18 + $0x3c8] sm:$0xff] %v3411_v6  ;;  %v3413_v51 = vadd.f32 %v5736_v12, %v1788_v17  ;;  %v1790_v54 = vadd.f32 %v5905_v21, %v1340_v56  ;;  %v4297_v56 = vld [vmem:[%s4849_s11 + $0x488] sm:$0xff] }
 0x21b   : > { %v6207_v9 = vpop.f32.mrf.mxu1  ;;  %v1344_v11 = vpop.f32.mrf.mxu0  ;;  %4002 = vmatmul.mubr.f32.gmra.mxu0 %v4290_v32 }
 0x21c   : > { %3605 = vst [vmem:[%s5751_s18 + $0x3d8] sm:$0xff] %v3413_v51  ;;  %v3414_v37 = vadd.f32 %v5742_v7, %v1790_v54  ;;  %v1794_v25 = vadd.f32 %v5912_v8, %v1344_v11  ;;  %4004 = vmatprep.mubr.f32.mxu0 %v4292_v30  ;;  %v4298_v11 = vld [vmem:[%s4849_s11 + $0x328] sm:$0xff]  ;;  %v4300_v30 = vld [vmem:[%s4849_s11 + $0x340] sm:$0xff] }
 0x21d   : > { %v6213_v58 = vpop.f32.mrf.mxu1  ;;  %2219 = vmatmul.mubr.f32.gmra.mxu1 %v4291_v50  ;;  %v1346_v21 = vpop.f32.mrf.mxu0  ;;  %v4299_v50 = vld [vmem:[%s4849_s11 + $0x480] sm:$0xff] }
 0x21e   : > { %2223 = vmatprep.mubr.f32.mxu1 %v4293_v26  ;;  %3606 = vst [vmem:[%s5751_s18 + $0x3e0] sm:$0xff] %v3414_v37  ;;  %v3416_v18 = vadd.f32 %v5736_v12, %v1794_v25  ;;  %v1796_v60 = vadd.f32 %v5923_v52, %v1346_v21  ;;  %v4301_v21 = vld [vmem:[%s4849_s11 + $0x4a0] sm:$0xff] }
 0x21f   : > { %v6221_v8 = vpop.f32.mrf.mxu1  ;;  %v1350_v28 = vpop.f32.mrf.mxu0  ;;  %4005 = vmatmul.mubr.f32.gmra.mxu0 %v4294_v61 }
 0x220   : > { %3608 = vst [vmem:[%s5751_s18 + $0x3f0] sm:$0xff] %v3416_v18  ;;  %v3417_v55 = vadd.f32 %v5742_v7, %v1796_v60  ;;  %v1800_v6 = vadd.f32 %v5931_v42, %v1350_v28  ;;  %4007 = vmatprep.mubr.f32.mxu0 %v4296_v36  ;;  %v4302_v28 = vld [vmem:[%s4849_s11 + $0x358] sm:$0xff]  ;;  %v4304_v36 = vld [vmem:[%s4849_s11 + $0x370] sm:$0xff] }
 0x221   : > { %v6227_v17 = vpop.f32.mrf.mxu1  ;;  %2224 = vmatmul.mubr.f32.gmra.mxu1 %v4295_v45  ;;  %v1352_v52 = vpop.f32.mrf.mxu0  ;;  %v4303_v45 = vld [vmem:[%s4849_s11 + $0x498] sm:$0xff] }
 0x222   : > { %2228 = vmatprep.mubr.f32.mxu1 %v4297_v56  ;;  %3609 = vst [vmem:[%s5751_s18 + $0x3f8] sm:$0xff] %v3417_v55  ;;  %v3419_v44 = vadd.f32 %v5736_v12, %v1800_v6  ;;  %v1802_v51 = vadd.f32 %v5942_v0, %v1352_v52  ;;  %v4305_v52 = vld [vmem:[%s4849_s11 + $0x4b8] sm:$0xff] }
 0x223   : > { %v6235_v42 = vpop.f32.mrf.mxu1  ;;  %v1356_v54 = vpop.f32.mrf.mxu0  ;;  %4008 = vmatmul.mubr.f32.gmra.mxu0 %v4298_v11 }
 0x224   : > { %3611 = vst [vmem:[%s5751_s18 + $0x408] sm:$0xff] %v3419_v44  ;;  %v3420_v32 = vadd.f32 %v5742_v7, %v1802_v51  ;;  %v1806_v37 = vadd.f32 %v5949_v57, %v1356_v54  ;;  %4010 = vmatprep.mubr.f32.mxu0 %v4300_v30  ;;  %v4306_v54 = vld [vmem:[%s4849_s11 + $0x388] sm:$0xff]  ;;  %v4308_v30 = vld [vmem:[%s4849_s11 + $0x3a0] sm:$0xff] }
 0x225   : > { %v6241_v25 = vpop.f32.mrf.mxu1  ;;  %2229 = vmatmul.mubr.f32.gmra.mxu1 %v4299_v50  ;;  %v1358_v0 = vpop.f32.mrf.mxu0  ;;  %v4307_v50 = vld [vmem:[%s4849_s11 + $0x4b0] sm:$0xff] }
 0x226   : > { %2233 = vmatprep.mubr.f32.mxu1 %v4301_v21  ;;  %3612 = vst [vmem:[%s5751_s18 + $0x410] sm:$0xff] %v3420_v32  ;;  %v3422_v26 = vadd.f32 %v5736_v12, %v1806_v37  ;;  %v1808_v18 = vadd.f32 %v5960_v46, %v1358_v0  ;;  %v4309_v0 = vld [vmem:[%s4849_s11 + $0x4d0] sm:$0xff] }
 0x227   : > { %v1992_v57 = vpop.f32.mrf.mxu1  ;;  %v1362_v60 = vpop.f32.mrf.mxu0  ;;  %4011 = vmatmul.mubr.f32.gmra.mxu0 %v4302_v28 }
 0x228   : > { %3614 = vst [vmem:[%s5751_s18 + $0x420] sm:$0xff] %v3422_v26  ;;  %v3423_v61 = vadd.f32 %v5742_v7, %v1808_v18  ;;  %v1812_v55 = vadd.f32 %v5967_v63, %v1362_v60  ;;  %4013 = vmatprep.mubr.f32.mxu0 %v4304_v36  ;;  %v4310_v57 = vld [vmem:[%s4849_s11 + $0x3b8] sm:$0xff]  ;;  %v4313_v36 = vld [vmem:[%s4849_s11 + $0x4e8] sm:$0xff] }
 0x229   : > { %v6253_v6 = vpop.f32.mrf.mxu1  ;;  %2234 = vmatmul.mubr.f32.gmra.mxu1 %v4303_v45  ;;  %v1364_v46 = vpop.f32.mrf.mxu0  ;;  %v4312_v45 = vld [vmem:[%s4849_s11 + $0x3d0] sm:$0xff] }
 0x22a   : > { %2238 = vmatprep.mubr.f32.mxu1 %v4305_v52  ;;  %3615 = vst [vmem:[%s5751_s18 + $0x428] sm:$0xff] %v3423_v61  ;;  %v3425_v56 = vadd.f32 %v5736_v12, %v1812_v55  ;;  %v1814_v44 = vadd.f32 %v5978_v59, %v1364_v46  ;;  %v4311_v55 = vld [vmem:[%s4849_s11 + $0x4c8] sm:$0xff] }
 0x22b   : > { %v1997_v63 = vpop.f32.mrf.mxu1  ;;  %v1368_v51 = vpop.f32.mrf.mxu0  ;;  %4014 = vmatmul.mubr.f32.gmra.mxu0 %v4306_v54 }
 0x22c   : > { %3617 = vst [vmem:[%s5751_s18 + $0x438] sm:$0xff] %v3425_v56  ;;  %v3426_v11 = vadd.f32 %v5742_v7, %v1814_v44  ;;  %v1818_v32 = vadd.f32 %v5986_v10, %v1368_v51  ;;  %4016 = vmatprep.mubr.f32.mxu0 %v4308_v30  ;;  %v4314_v44 = vld [vmem:[%s4849_s11 + $0x3e8] sm:$0xff] }
 0x22d   : > { %v6265_v37 = vpop.f32.mrf.mxu1  ;;  %2239 = vmatmul.mubr.f32.gmra.mxu1 %v4307_v50  ;;  %v1370_v59 = vpop.f32.mrf.mxu0  ;;  %v4317_v50 = vld [vmem:[%s4849_s11 + $0x500] sm:$0xff] }
 0x22e   : > { %2243 = vmatprep.mubr.f32.mxu1 %v4309_v0  ;;  %3618 = vst [vmem:[%s5751_s18 + $0x440] sm:$0xff] %v3426_v11  ;;  %v3428_v21 = vadd.f32 %v5736_v12, %v1818_v32  ;;  %v1820_v26 = vadd.f32 %v5997_v16, %v1370_v59  ;;  %v4315_v11 = vld [vmem:[%s4849_s11 + $0x4e0] sm:$0xff] }
 0x22f   : > { %v2002_v10 = vpop.f32.mrf.mxu1  ;;  %v1374_v18 = vpop.f32.mrf.mxu0  ;;  %4017 = vmatmul.mubr.f32.gmra.mxu0 %v4310_v57  ;;  %v4316_v32 = vld [vmem:[%s4849_s11 + $0x400] sm:$0xff]  ;;  %v4319_v57 = vld [vmem:[%s4849_s11 + $0x4f8] sm:$0xff] }
 0x230   : > { %3620 = vst [vmem:[%s5751_s18 + $0x450] sm:$0xff] %v3428_v21  ;;  %v3429_v60 = vadd.f32 %v5742_v7, %v1820_v26  ;;  %v1824_v28 = vadd.f32 %v6003_v53, %v1374_v18  ;;  %4019 = vmatprep.mubr.f32.mxu0 %v4312_v45  ;;  %v4318_v21 = vld [vmem:[%s4849_s11 + $0x418] sm:$0xff] }
 0x231   : > { %v6277_v61 = vpop.f32.mrf.mxu1  ;;  %2244 = vmatmul.mubr.f32.gmra.mxu1 %v4311_v55  ;;  %v1376_v16 = vpop.f32.mrf.mxu0 }
 0x232   : > { %2248 = vmatprep.mubr.f32.mxu1 %v4313_v36  ;;  %3621 = vst [vmem:[%s5751_s18 + $0x458] sm:$0xff] %v3429_v60  ;;  %v3431_v46 = vadd.f32 %v5736_v12, %v1824_v28  ;;  %v1826_v52 = vadd.f32 %v6011_v20, %v1376_v16  ;;  %v4320_v60 = vld [vmem:[%s4849_s11 + $0x430] sm:$0xff]  ;;  %v4321_v28 = vld [vmem:[%s4849_s11 + $0x518] sm:$0xff]  ;;  %v4322_v36 = vld [vmem:[%s4849_s11 + $0x448] sm:$0xff] }
 0x233   : > { %v2007_v53 = vpop.f32.mrf.mxu1  ;;  %v1380_v56 = vpop.f32.mrf.mxu0  ;;  %4020 = vmatmul.mubr.f32.gmra.mxu0 %v4314_v44  ;;  %v4324_v44 = vld [vmem:[%s4849_s11 + $0x460] sm:$0xff] }
 0x234   : > { %3623 = vst [vmem:[%s5751_s18 + $0x468] sm:$0xff] %v3431_v46  ;;  %v3432_v63 = vadd.f32 %v5742_v7, %v1826_v52  ;;  %v1830_v51 = vadd.f32 %v6017_v62, %v1380_v56  ;;  %4022 = vmatprep.mubr.f32.mxu0 %v4316_v32  ;;  %v4323_v56 = vld [vmem:[%s4849_s11 + $0x510] sm:$0xff] }
 0x235   : > { %v6289_v54 = vpop.f32.mrf.mxu1  ;;  %2249 = vmatmul.mubr.f32.gmra.mxu1 %v4315_v11  ;;  %v1382_v20 = vpop.f32.mrf.mxu0 }
 0x236   : > { %2253 = vmatprep.mubr.f32.mxu1 %v4317_v50  ;;  %3624 = vst [vmem:[%s5751_s18 + $0x470] sm:$0xff] %v3432_v63  ;;  %v3434_v30 = vadd.f32 %v5736_v12, %v1830_v51  ;;  %v1832_v59 = vadd.f32 %v6025_v24, %v1382_v20  ;;  %v4325_v63 = vld [vmem:[%s4849_s11 + $0x530] sm:$0xff]  ;;  %v4326_v20 = vld [vmem:[%s4849_s11 + $0x478] sm:$0xff] }
 0x237   : > { %v2012_v62 = vpop.f32.mrf.mxu1  ;;  %v1386_v0 = vpop.f32.mrf.mxu0  ;;  %4023 = vmatmul.mubr.f32.gmra.mxu0 %v4318_v21  ;;  %v4329_v21 = vld [vmem:[%s4849_s11 + $0x548] sm:$0xff] }
 0x238   : > { %3626 = vst [vmem:[%s5751_s18 + $0x480] sm:$0xff] %v3434_v30  ;;  %v3435_v26 = vadd.f32 %v5742_v7, %v1832_v59  ;;  %v1836_v10 = vadd.f32 %v6031_v39, %v1386_v0  ;;  %4025 = vmatprep.mubr.f32.mxu0 %v4320_v60  ;;  %v4327_v62 = vld [vmem:[%s4849_s11 + $0x528] sm:$0xff]  ;;  %v4328_v0 = vld [vmem:[%s4849_s11 + $0x490] sm:$0xff] }
 0x239   : > { %v6301_v18 = vpop.f32.mrf.mxu1  ;;  %2254 = vmatmul.mubr.f32.gmra.mxu1 %v4319_v57  ;;  %v1388_v24 = vpop.f32.mrf.mxu0  ;;  %v4330_v60 = vld [vmem:[%s4849_s11 + $0x4a8] sm:$0xff] }
 0x23a   : > { %2258 = vmatprep.mubr.f32.mxu1 %v4321_v28  ;;  %3627 = vst [vmem:[%s5751_s18 + $0x488] sm:$0xff] %v3435_v26  ;;  %v3437_v55 = vadd.f32 %v5736_v12, %v1836_v10  ;;  %v1838_v45 = vadd.f32 %v6039_v31, %v1388_v24 }
 0x23b   : > { %v2017_v39 = vpop.f32.mrf.mxu1  ;;  %v1392_v16 = vpop.f32.mrf.mxu0  ;;  %4026 = vmatmul.mubr.f32.gmra.mxu0 %v4322_v36 }
 0x23c   : > { %3629 = vst [vmem:[%s5751_s18 + $0x498] sm:$0xff] %v3437_v55  ;;  %v3438_v46 = vadd.f32 %v5742_v7, %v1838_v45  ;;  %v1842_v52 = vadd.f32 %v6045_v40, %v1392_v16  ;;  %4028 = vmatprep.mubr.f32.mxu0 %v4324_v44  ;;  %v4331_v45 = vld [vmem:[%s4849_s11 + $0x540] sm:$0xff] }
 0x23d   : > { %v6313_v53 = vpop.f32.mrf.mxu1  ;;  %2259 = vmatmul.mubr.f32.gmra.mxu1 %v4323_v56  ;;  %v1394_v31 = vpop.f32.mrf.mxu0  ;;  %v4332_v39 = vld [vmem:[%s4849_s11 + $0x4c0] sm:$0xff]  ;;  %v4334_v56 = vld [vmem:[%s4849_s11 + $0x4d8] sm:$0xff] }
 0x23e   : > { %2263 = vmatprep.mubr.f32.mxu1 %v4325_v63  ;;  %3630 = vst [vmem:[%s5751_s18 + $0x4a0] sm:$0xff] %v3438_v46  ;;  %v3440_v51 = vadd.f32 %v5736_v12, %v1842_v52  ;;  %v1844_v11 = vadd.f32 %v6053_v14, %v1394_v31  ;;  %v4333_v16 = vld [vmem:[%s4849_s11 + $0x560] sm:$0xff] }
 0x23f   : > { %v2022_v40 = vpop.f32.mrf.mxu1  ;;  %v1398_v32 = vpop.f32.mrf.mxu0  ;;  %4029 = vmatmul.mubr.f32.gmra.mxu0 %v4326_v20 }
 0x240   : > { %3632 = vst [vmem:[%s5751_s18 + $0x4b0] sm:$0xff] %v3440_v51  ;;  %v3441_v50 = vadd.f32 %v5742_v7, %v1844_v11  ;;  %v1848_v30 = vadd.f32 %v6059_v19, %v1398_v32  ;;  %4031 = vmatprep.mubr.f32.mxu0 %v4328_v0  ;;  %v4335_v51 = vld [vmem:[%s4849_s11 + $0x558] sm:$0xff]  ;;  %v4336_v11 = vld [vmem:[%s4849_s11 + $0x4f0] sm:$0xff] }
 0x241   : > { %v6325_v59 = vpop.f32.mrf.mxu1  ;;  %2264 = vmatmul.mubr.f32.gmra.mxu1 %v4327_v62  ;;  %v1400_v14 = vpop.f32.mrf.mxu0  ;;  %v4337_v40 = vld [vmem:[%s4849_s11 + $0x578] sm:$0xff] }
 0x242   : > { %2268 = vmatprep.mubr.f32.mxu1 %v4329_v21  ;;  %3633 = vst [vmem:[%s5751_s18 + $0x4b8] sm:$0xff] %v3441_v50  ;;  %v3443_v26 = vadd.f32 %v5736_v12, %v1848_v30  ;;  %v1850_v10 = vadd.f32 %v6067_v4, %v1400_v14  ;;  %v4338_v30 = vld [vmem:[%s4849_s11 + $0x508] sm:$0xff]  ;;  %v4339_v21 = vld [vmem:[%s4849_s11 + $0x570] sm:$0xff] }
 0x243   : > { %v2027_v19 = vpop.f32.mrf.mxu1  ;;  %v1404_v57 = vpop.f32.mrf.mxu0  ;;  %4032 = vmatmul.mubr.f32.gmra.mxu0 %v4330_v60 }
 0x244   : > { %3635 = vst [vmem:[%s5751_s18 + $0x4c8] sm:$0xff] %v3443_v26  ;;  %v3444_v24 = vadd.f32 %v5742_v7, %v1850_v10  ;;  %v1854_v28 = vadd.f32 %v6073_v35, %v1404_v57  ;;  %4034 = vmatprep.mubr.f32.mxu0 %v4332_v39  ;;  %v4340_v26 = vld [vmem:[%s4849_s11 + $0x520] sm:$0xff]  ;;  %v4341_v10 = vld [vmem:[%s4849_s11 + $0x590] sm:$0xff] }
 0x245   : > { %v6337_v55 = vpop.f32.mrf.mxu1  ;;  %2269 = vmatmul.mubr.f32.gmra.mxu1 %v4331_v45  ;;  %v1406_v4 = vpop.f32.mrf.mxu0 }
 0x246   : > { %2273 = vmatprep.mubr.f32.mxu1 %v4333_v16  ;;  %3636 = vst [vmem:[%s5751_s18 + $0x4d0] sm:$0xff] %v3444_v24  ;;  %v3446_v36 = vadd.f32 %v5736_v12, %v1854_v28  ;;  %v1856_v46 = vadd.f32 %v6081_v34, %v1406_v4  ;;  %v4342_v24 = vld [vmem:[%s4849_s11 + $0x538] sm:$0xff]  ;;  %v4343_v4 = vld [vmem:[%s4849_s11 + $0x588] sm:$0xff]  ;;  %v4344_v16 = vld [vmem:[%s4849_s11 + $0x550] sm:$0xff] }
 0x247   : > { %v2032_v35 = vpop.f32.mrf.mxu1  ;;  %v1410_v52 = vpop.f32.mrf.mxu0  ;;  %4035 = vmatmul.mubr.f32.gmra.mxu0 %v4334_v56  ;;  %v4346_v56 = vld [vmem:[%s4849_s11 + $0x568] sm:$0xff] }
 0x248   : > { %3638 = vst [vmem:[%s5751_s18 + $0x4e0] sm:$0xff] %v3446_v36  ;;  %v3447_v44 = vadd.f32 %v5742_v7, %v1856_v46  ;;  %v1860_v31 = vadd.f32 %v6087_v38, %v1410_v52  ;;  %4037 = vmatprep.mubr.f32.mxu0 %v4336_v11  ;;  %v4345_v36 = vld [vmem:[%s4849_s11 + $0x5a8] sm:$0xff]  ;;  %v4347_v11 = vld [vmem:[%s4849_s11 + $0x5a0] sm:$0xff] }
 0x249   : > { %v6349_v63 = vpop.f32.mrf.mxu1  ;;  %2274 = vmatmul.mubr.f32.gmra.mxu1 %v4335_v51  ;;  %v1412_v34 = vpop.f32.mrf.mxu0 }
 0x24a   : > { %2278 = vmatprep.mubr.f32.mxu1 %v4337_v40  ;;  %3639 = vst [vmem:[%s5751_s18 + $0x4e8] sm:$0xff] %v3447_v44  ;;  %v3449_v32 = vadd.f32 %v5736_v12, %v1860_v31  ;;  %v1862_v20 = vadd.f32 %v6095_v2, %v1412_v34  ;;  %v4348_v34 = vld [vmem:[%s4849_s11 + $0x580] sm:$0xff] }
 0x24b   : > { %v2037_v38 = vpop.f32.mrf.mxu1  ;;  %v1416_v50 = vpop.f32.mrf.mxu0  ;;  %4038 = vmatmul.mubr.f32.gmra.mxu0 %v4338_v30  ;;  %v4349_v40 = vld [vmem:[%s4849_s11 + $0x5c0] sm:$0xff] }
 0x24c   : > { %3641 = vst [vmem:[%s5751_s18 + $0x4f8] sm:$0xff] %v3449_v32  ;;  %v3450_v62 = vadd.f32 %v5742_v7, %v1862_v20  ;;  %v1866_v0 = vadd.f32 %v6101_v41, %v1416_v50  ;;  %4040 = vmatprep.mubr.f32.mxu0 %v4340_v26  ;;  %v4350_v50 = vld [vmem:[%s4849_s11 + $0x598] sm:$0xff]  ;;  %v4352_v26 = vld [vmem:[%s4849_s11 + $0x5b0] sm:$0xff] }
 0x24d   : > { %v6361_v14 = vpop.f32.mrf.mxu1  ;;  %2279 = vmatmul.mubr.f32.gmra.mxu1 %v4339_v21  ;;  %v1418_v2 = vpop.f32.mrf.mxu0  ;;  %v4351_v21 = vld [vmem:[%s4849_s11 + $0x5b8] sm:$0xff] }
 0x24e   : > { %2283 = vmatprep.mubr.f32.mxu1 %v4341_v10  ;;  %3642 = vst [vmem:[%s5751_s18 + $0x500] sm:$0xff] %v3450_v62  ;;  %v3452_v19 = vadd.f32 %v5736_v12, %v1866_v0  ;;  %v1868_v57 = vadd.f32 %v6109_v22, %v1418_v2  ;;  %v4353_v2 = vld [vmem:[%s4849_s11 + $0x5d8] sm:$0xff] }
 0x24f   : > { %v2042_v41 = vpop.f32.mrf.mxu1  ;;  %v1422_v60 = vpop.f32.mrf.mxu0  ;;  %4041 = vmatmul.mubr.f32.gmra.mxu0 %v4342_v24 }
 0x250   : > { %3644 = vst [vmem:[%s5751_s18 + $0x510] sm:$0xff] %v3452_v19  ;;  %v3453_v28 = vadd.f32 %v5742_v7, %v1868_v57  ;;  %v1872_v45 = vadd.f32 %v6115_v33, %v1422_v60  ;;  %4043 = vmatprep.mubr.f32.mxu0 %v4344_v16  ;;  %v4354_v41 = vld [vmem:[%s4849_s11 + $0x5c8] sm:$0xff]  ;;  %v4357_v16 = vld [vmem:[%s4849_s11 + $0x5f0] sm:$0xff] }
 0x251   : > { %v6373_v39 = vpop.f32.mrf.mxu1  ;;  %2284 = vmatmul.mubr.f32.gmra.mxu1 %v4343_v4  ;;  %v1424_v22 = vpop.f32.mrf.mxu0  ;;  %v4356_v4 = vld [vmem:[%s4849_s11 + $0x5e0] sm:$0xff] }
 0x252   : > { %2288 = vmatprep.mubr.f32.mxu1 %v4345_v36  ;;  %3645 = vst [vmem:[%s5751_s18 + $0x518] sm:$0xff] %v3453_v28  ;;  %v3455_v46 = vadd.f32 %v5736_v12, %v1872_v45  ;;  %v1874_v35 = vadd.f32 %v6123_v47, %v1424_v22  ;;  %v4355_v45 = vld [vmem:[%s4849_s11 + $0x5d0] sm:$0xff] }
 0x253   : > { %v2047_v33 = vpop.f32.mrf.mxu1  ;;  %v1428_v52 = vpop.f32.mrf.mxu0  ;;  %4044 = vmatmul.mubr.f32.gmra.mxu0 %v4346_v56 }
 0x254   : > { %3647 = vst [vmem:[%s5751_s18 + $0x528] sm:$0xff] %v3455_v46  ;;  %v3456_v44 = vadd.f32 %v5742_v7, %v1874_v35  ;;  %v1878_v31 = vadd.f32 %v6129_v43, %v1428_v52  ;;  %4046 = vmatprep.mubr.f32.mxu0 %v4348_v34  ;;  %v4358_v35 = vld [vmem:[%s4849_s11 + $0x5f8] sm:$0xff] }
 0x255   : > { %v6385_v51 = vpop.f32.mrf.mxu1  ;;  %2289 = vmatmul.mubr.f32.gmra.mxu1 %v4347_v11  ;;  %v1430_v47 = vpop.f32.mrf.mxu0 }
 0x256   : > { %2293 = vmatprep.mubr.f32.mxu1 %v4349_v40  ;;  %3648 = vst [vmem:[%s5751_s18 + $0x530] sm:$0xff] %v3456_v44  ;;  %v3458_v32 = vadd.f32 %v5736_v12, %v1878_v31  ;;  %v1880_v20 = vadd.f32 %v6137_v3, %v1430_v47  ;;  %v4359_v44 = vld [vmem:[%s4849_s11 + $0x5e8] sm:$0xff]  ;;  %s7023_s11 = sld [smem:[#allocation68_spill]] }
 0x257   : > { %v2052_v43 = vpop.f32.mrf.mxu1  ;;  %v1434_v38 = vpop.f32.mrf.mxu0  ;;  %4047 = vmatmul.mubr.f32.gmra.mxu0 %v4350_v50 }
 0x258   : > { %3650 = vst [vmem:[%s5751_s18 + $0x540] sm:$0xff] %v3458_v32  ;;  %v3459_v30 = vadd.f32 %v5742_v7, %v1880_v20  ;;  %v1884_v62 = vadd.f32 %v6143_v23, %v1434_v38  ;;  %4049 = vmatprep.mubr.f32.mxu0 %v4352_v26 }
 0x259   : > { %v6397_v0 = vpop.f32.mrf.mxu1  ;;  %2294 = vmatmul.mubr.f32.gmra.mxu1 %v4351_v21  ;;  %v1436_v3 = vpop.f32.mrf.mxu0 }
 0x25a   : > { %2298 = vmatprep.mubr.f32.mxu1 %v4353_v2  ;;  %3651 = vst [vmem:[%s5751_s18 + $0x548] sm:$0xff] %v3459_v30  ;;  %v3461_v10 = vadd.f32 %v5736_v12, %v1884_v62  ;;  %v1886_v19 = vadd.f32 %v6151_v1, %v1436_v3 }
 0x25b   : > { %v2057_v23 = vpop.f32.mrf.mxu1  ;;  %v1440_v57 = vpop.f32.mrf.mxu0  ;;  %4050 = vmatmul.mubr.f32.gmra.mxu0 %v4354_v41 }
 0x25c   : > { %3653 = vst [vmem:[%s5751_s18 + $0x558] sm:$0xff] %v3461_v10  ;;  %v3462_v60 = vadd.f32 %v5742_v7, %v1886_v19  ;;  %v1890_v24 = vadd.f32 %v6157_v49, %v1440_v57  ;;  %4052 = vmatprep.mubr.f32.mxu0 %v4356_v4  ;;  %s6785_s0 = scalar_lea.hbm %s7023_s11, %s3842_s20 }
 0x25d   : > { %v6409_v28 = vpop.f32.mrf.mxu1  ;;  %2299 = vmatmul.mubr.f32.gmra.mxu1 %v4355_v45  ;;  %v1442_v1 = vpop.f32.mrf.mxu0 }
 0x25e   : > { %2303 = vmatprep.mubr.f32.mxu1 %v4357_v16  ;;  %3654 = vst [vmem:[%s5751_s18 + $0x560] sm:$0xff] %v3462_v60  ;;  %v3464_v22 = vadd.f32 %v5736_v12, %v1890_v24  ;;  %v1892_v36 = vadd.f32 %v6165_v27, %v1442_v1 }
 0x25f   : > { %v2062_v46 = vpop.f32.mrf.mxu1  ;;  %v1446_v49 = vpop.f32.mrf.mxu0  ;;  %4053 = vmatmul.mubr.f32.gmra.mxu0 %v4358_v35 }
 0x260   : > { %3656 = vst [vmem:[%s5751_s18 + $0x570] sm:$0xff] %v3464_v22  ;;  %v3465_v33 = vadd.f32 %v5742_v7, %v1892_v36  ;;  %v1896_v52 = vadd.f32 %v6171_v15, %v1446_v49  ;;  %v6996_v46 = vld [vmem:[#allocation36_spill] sm:$0xff] }
 0x261   : > { %v6421_v56 = vpop.f32.mrf.mxu1  ;;  %2304 = vmatmul.mubr.f32.gmra.mxu1 %v4359_v44  ;;  %v1448_v31 = vpop.f32.mrf.mxu0 }
 0x262   : > { %3657 = vst [vmem:[%s5751_s18 + $0x578] sm:$0xff] %v3465_v33  ;;  %v3467_v27 = vadd.f32 %v5736_v12, %v1896_v52  ;;  %v1898_v11 = vadd.f32 %v6179_v29, %v1448_v31  ;;  %v6997_v52 = vld [vmem:[#allocation37_spill] sm:$0xff] }
 0x263   : > { %v2067_v34 = vpop.f32.mrf.mxu1  ;;  %v1452_v47 = vpop.f32.mrf.mxu0 }
 0x264   : > { %3659 = vst [vmem:[%s5751_s18 + $0x588] sm:$0xff] %v3467_v27  ;;  %v3468_v40 = vadd.f32 %v5742_v7, %v1898_v11  ;;  %v1902_v32 = vadd.f32 %v6185_v13, %v1452_v47  ;;  %v6998_v11 = vld [vmem:[#allocation38_spill] sm:$0xff] }
 0x265   : > { %v6430_v15 = vpop.f32.mrf.mxu1  ;;  %v1454_v20 = vpop.f32.mrf.mxu0 }
 0x266   : > { %3660 = vst [vmem:[%s5751_s18 + $0x590] sm:$0xff] %v3468_v40  ;;  %v3470_v43 = vadd.f32 %v5736_v12, %v1902_v32  ;;  %v1904_v38 = vadd.f32 %v6193_v48, %v1454_v20  ;;  %v6999_v20 = vld [vmem:[#allocation39_spill] sm:$0xff] }
 0x267   : > { %v2072_v50 = vpop.f32.mrf.mxu1  ;;  %v1458_v30 = vpop.f32.mrf.mxu0 }
 0x268   : > { %3662 = vst [vmem:[%s5751_s18 + $0x5a0] sm:$0xff] %v3470_v43  ;;  %v3471_v29 = vadd.f32 %v5742_v7, %v1904_v38  ;;  %v1908_v62 = vadd.f32 %v6199_v5, %v1458_v30 }
 0x269   : > { %v6438_v21 = vpop.f32.mrf.mxu1  ;;  %v1460_v13 = vpop.f32.mrf.mxu0 }
 0x26a   : > { %3663 = vst [vmem:[%s5751_s18 + $0x5a8] sm:$0xff] %v3471_v29  ;;  %v3473_v26 = vadd.f32 %v5736_v12, %v1908_v62  ;;  %v1910_v3 = vadd.f32 %v6207_v9, %v1460_v13  ;;  %v7000_v29 = vld [vmem:[#allocation40_spill] sm:$0xff] }
 0x26b   : > { %v2077_v2 = vpop.f32.mrf.mxu1  ;;  %v1464_v10 = vpop.f32.mrf.mxu0 }
 0x26c   : > { %3665 = vst [vmem:[%s5751_s18 + $0x5b8] sm:$0xff] %v3473_v26  ;;  %v3474_v48 = vadd.f32 %v5742_v7, %v1910_v3  ;;  %v1914_v19 = vadd.f32 %v6213_v58, %v1464_v10  ;;  %v7001_v2 = vld [vmem:[#allocation41_spill] sm:$0xff] }
 0x26d   : > { %v6446_v23 = vpop.f32.mrf.mxu1  ;;  %v1466_v5 = vpop.f32.mrf.mxu0 }
 0x26e   : > { %3666 = vst [vmem:[%s5751_s18 + $0x5c0] sm:$0xff] %v3474_v48  ;;  %v3476_v57 = vadd.f32 %v5736_v12, %v1914_v19  ;;  %v1916_v41 = vadd.f32 %v6221_v8, %v1466_v5 }
 0x26f   : > { %v2082_v60 = vpop.f32.mrf.mxu1  ;;  %v1470_v24 = vpop.f32.mrf.mxu0 }
 0x270   : > { %3668 = vst [vmem:[%s5751_s18 + $0x5d0] sm:$0xff] %v3476_v57  ;;  %v3477_v9 = vadd.f32 %v5742_v7, %v1916_v41  ;;  %v1920_v45 = vadd.f32 %v6227_v17, %v1470_v24  ;;  %v7002_v57 = vld [vmem:[#allocation42_spill] sm:$0xff] }
 0x271   : > { %v6454_v4 = vpop.f32.mrf.mxu1  ;;  %v1472_v58 = vpop.f32.mrf.mxu0 }
 0x272   : > { %3669 = vst [vmem:[%s5751_s18 + $0x5d8] sm:$0xff] %v3477_v9  ;;  %v3479_v1 = vadd.f32 %v5736_v12, %v1920_v45  ;;  %v1922_v16 = vadd.f32 %v6235_v42, %v1472_v58  ;;  %v7003_v45 = vld [vmem:[#allocation43_spill] sm:$0xff] }
 0x273   : > { %v2087_v22 = vpop.f32.mrf.mxu1  ;;  %v1541_v36 = vpop.f32.mrf.mxu0 }
 0x274   : > { %3671 = vst [vmem:[%s5751_s18 + $0x5e8] sm:$0xff] %v3479_v1  ;;  %v3480_v8 = vadd.f32 %v5742_v7, %v1922_v16  ;;  %v1542_v49 = vadd.f32 %v1541_v36, %v6996_v46  ;;  %v7004_v36 = vld [vmem:[#allocation44_spill] sm:$0xff] }
 0x275   : > { %v6462_v35 = vpop.f32.mrf.mxu1  ;;  %v1543_v17 = vpop.f32.mrf.mxu0 }
 0x276   : > { %3672 = vst [vmem:[%s5751_s18 + $0x5f0] sm:$0xff] %v3480_v8  ;;  %v3290_v33 = vadd.f32 %v5736_v12, %v1542_v49  ;;  %v1544_v44 = vadd.f32 %v1543_v17, %v6997_v52 }
 0x277   : > { %v2092_v31 = vpop.f32.mrf.mxu1  ;;  %v1547_v27 = vpop.f32.mrf.mxu0 }
 0x278   : > { %3482 = vst [vmem:[%s5751_s18] sm:$0xff] %v3290_v33  ;;  %v3291_v42 = vadd.f32 %v5742_v7, %v1544_v44  ;;  %v1548_v34 = vadd.f32 %v1547_v27, %v6998_v11  ;;  %v7005_v33 = vld [vmem:[#allocation45_spill] sm:$0xff] }
 0x279   : > { %v6470_v47 = vpop.f32.mrf.mxu1  ;;  %v1549_v40 = vpop.f32.mrf.mxu0 }
 0x27a   : > { %3483 = vst [vmem:[%s5751_s18 + $0x8] sm:$0xff] %v3291_v42  ;;  %v3293_v32 = vadd.f32 %v5736_v12, %v1548_v34  ;;  %v1550_v43 = vadd.f32 %v1549_v40, %v6999_v20  ;;  %v7006_v42 = vld [vmem:[#allocation46_spill] sm:$0xff]  ;;  %v7007_v20 = vld [vmem:[#allocation47_spill] sm:$0xff] }
 0x27b   : > { %v2097_v38 = vpop.f32.mrf.mxu1  ;;  %v1553_v50 = vpop.f32.mrf.mxu0 }
 0x27c   : > { %3485 = vst [vmem:[%s5751_s18 + $0x18] sm:$0xff] %v3293_v32  ;;  %v3294_v30 = vadd.f32 %v5742_v7, %v1550_v43  ;;  %v1554_v62 = vadd.f32 %v1553_v50, %v7000_v29  ;;  %v7008_v29 = vld [vmem:[#allocation48_spill] sm:$0xff] }
 0x27d   : > { %v6478_v13 = vpop.f32.mrf.mxu1  ;;  %v1555_v26 = vpop.f32.mrf.mxu0 }
 0x27e   : > { %3486 = vst [vmem:[%s5751_s18 + $0x20] sm:$0xff] %v3294_v30  ;;  %v3296_v3 = vadd.f32 %v5736_v12, %v1554_v62  ;;  %v1556_v10 = vadd.f32 %v1555_v26, %v7001_v2 }
 0x27f   : > { %v2102_v48 = vpop.f32.mrf.mxu1  ;;  %v1559_v19 = vpop.f32.mrf.mxu0 }
 0x280   : > { %3488 = vst [vmem:[%s5751_s18 + $0x30] sm:$0xff] %v3296_v3  ;;  %v3297_v5 = vadd.f32 %v5742_v7, %v1556_v10  ;;  %v1560_v41 = vadd.f32 %v1559_v19, %v7002_v57  ;;  %v7009_v10 = vld [vmem:[#allocation49_spill] sm:$0xff] }
 0x281   : > { %v6486_v60 = vpop.f32.mrf.mxu1  ;;  %v1561_v24 = vpop.f32.mrf.mxu0 }
 0x282   : > { %3489 = vst [vmem:[%s5751_s18 + $0x38] sm:$0xff] %v3297_v5  ;;  %v3299_v9 = vadd.f32 %v5736_v12, %v1560_v41  ;;  %v1562_v58 = vadd.f32 %v1561_v24, %v7003_v45  ;;  %v7010_v41 = vld [vmem:[#allocation50_spill] sm:$0xff] }
 0x283   : > { %v2107_v1 = vpop.f32.mrf.mxu1  ;;  %v1565_v16 = vpop.f32.mrf.mxu0 }
 0x284   : > { %3491 = vst [vmem:[%s5751_s18 + $0x48] sm:$0xff] %v3299_v9  ;;  %v3300_v22 = vadd.f32 %v5742_v7, %v1562_v58  ;;  %v1566_v8 = vadd.f32 %v1565_v16, %v7004_v36  ;;  %v7011_v1 = vld [vmem:[#allocation51_spill] sm:$0xff] }
 0x285   : > { %v6494_v46 = vpop.f32.mrf.mxu1  ;;  %v1567_v49 = vpop.f32.mrf.mxu0 }
 0x286   : > { %3492 = vst [vmem:[%s5751_s18 + $0x50] sm:$0xff] %v3300_v22  ;;  %v3302_v17 = vadd.f32 %v5736_v12, %v1566_v8  ;;  %v1568_v52 = vadd.f32 %v1567_v49, %v7005_v33  ;;  %v7012_v49 = vld [vmem:[#allocation53_spill] sm:$0xff] }
 0x287   : > { %v2112_v44 = vpop.f32.mrf.mxu1  ;;  %v1571_v31 = vpop.f32.mrf.mxu0 }
 0x288   : > { %3494 = vst [vmem:[%s5751_s18 + $0x60] sm:$0xff] %v3302_v17  ;;  %v3303_v27 = vadd.f32 %v5742_v7, %v1568_v52  ;;  %v1572_v11 = vadd.f32 %v1571_v31, %v7006_v42  ;;  %v7013_v31 = vld [vmem:[#allocation54_spill] sm:$0xff] }
 0x289   : > { %v6502_v34 = vpop.f32.mrf.mxu1  ;;  %v1573_v40 = vpop.f32.mrf.mxu0 }
 0x28a   : > { %3495 = vst [vmem:[%s5751_s18 + $0x68] sm:$0xff] %v3303_v27  ;;  %v3305_v32 = vadd.f32 %v5736_v12, %v1572_v11  ;;  %v1574_v43 = vadd.f32 %v1573_v40, %v7007_v20 }
 0x28b   : > { %v2117_v38 = vpop.f32.mrf.mxu1  ;;  %v1577_v50 = vpop.f32.mrf.mxu0 }
 0x28c   : > { %3497 = vst [vmem:[%s5751_s18 + $0x78] sm:$0xff] %v3305_v32  ;;  %v3306_v30 = vadd.f32 %v5742_v7, %v1574_v43  ;;  %v1578_v62 = vadd.f32 %v1577_v50, %v7008_v29  ;;  %v7014_v32 = vld [vmem:[#allocation55_spill] sm:$0xff] }
 0x28d   : > { %v6510_v26 = vpop.f32.mrf.mxu1  ;;  %v1579_v3 = vpop.f32.mrf.mxu0 }
 0x28e   : > { %3498 = vst [vmem:[%s5751_s18 + $0x80] sm:$0xff] %v3306_v30  ;;  %v3308_v2 = vadd.f32 %v5736_v12, %v1578_v62  ;;  %v1580_v48 = vadd.f32 %v1579_v3, %v7009_v10  ;;  %v7015_v30 = vld [vmem:[#allocation56_spill] sm:$0xff]  ;;  %v7016_v10 = vld [vmem:[#allocation58_spill] sm:$0xff] }
 0x28f   : > { %v2122_v19 = vpop.f32.mrf.mxu1  ;;  %v1583_v5 = vpop.f32.mrf.mxu0 }
 0x290   : > { %3500 = vst [vmem:[%s5751_s18 + $0x90] sm:$0xff] %v3308_v2  ;;  %v3309_v57 = vadd.f32 %v5742_v7, %v1580_v48  ;;  %v1584_v24 = vadd.f32 %v1583_v5, %v7010_v41  ;;  %v7017_v41 = vld [vmem:[#allocation60_spill] sm:$0xff] }
 0x291   : > { %v6518_v9 = vpop.f32.mrf.mxu1  ;;  %v1585_v45 = vpop.f32.mrf.mxu0 }
 0x292   : > { %3501 = vst [vmem:[%s5751_s18 + $0x98] sm:$0xff] %v3309_v57  ;;  %v3311_v58 = vadd.f32 %v5736_v12, %v1584_v24  ;;  %v1586_v16 = vadd.f32 %v1585_v45, %v7011_v1 }
 0x293   : > { %v2127_v22 = vpop.f32.mrf.mxu1  ;;  %v1589_v36 = vpop.f32.mrf.mxu0 }
 0x294   : > { %3503 = vst [vmem:[%s5751_s18 + $0xa8] sm:$0xff] %v3311_v58  ;;  %v3312_v8 = vadd.f32 %v5742_v7, %v1586_v16  ;;  %v1590_v17 = vadd.f32 %v1589_v36, %v7012_v49  ;;  %v7018_v58 = vld [vmem:[#allocation57_spill] sm:$0xff]  ;;  %v7019_v36 = vld [vmem:[#allocation62_spill] sm:$0xff] }
 0x295   : > { %v6526_v33 = vpop.f32.mrf.mxu1  ;;  %v1591_v52 = vpop.f32.mrf.mxu0  ;;  %v3285_v1 = vsub.s32 2, %v7018_v58 }
 0x296   : > { %3504 = vst [vmem:[%s5751_s18 + $0xb0] sm:$0xff] %v3312_v8  ;;  %v3314_v44 = vadd.f32 %v5736_v12, %v1590_v17  ;;  %v1592_v27 = vadd.f32 %v1591_v52, %v7013_v31 }
 0x297   : > { %v2132_v42 = vpop.f32.mrf.mxu1  ;;  %v1595_v11 = vpop.f32.mrf.mxu0 }
 0x298   : > { %3506 = vst [vmem:[%s5751_s18 + $0xc0] sm:$0xff] %v3314_v44  ;;  %v3315_v40 = vadd.f32 %v5742_v7, %v1592_v27  ;;  %v1596_v20 = vadd.f32 %v1595_v11, %v7014_v32  ;;  %v7020_v44 = vld [vmem:[#allocation64_spill] sm:$0xff]  ;;  %v4360_v42 = vld [vmem:[%s262_s3] sm:$0x7] }
 0x299   : > { %v6534_v43 = vpop.f32.mrf.mxu1  ;;  %v1597_v38 = vpop.f32.mrf.mxu0  ;;  %v6558_v11 = vrot.slane %v4360_v42, %v3285_v1 }
 0x29a   : > { %3507 = vst [vmem:[%s5751_s18 + $0xc8] sm:$0xff] %v3315_v40  ;;  %v3317_v50 = vadd.f32 %v5736_v12, %v1596_v20  ;;  %v1598_v29 = vadd.f32 %v1597_v38, %v7015_v30 }
 0x29b   : > { %v2137_v62 = vpop.f32.mrf.mxu1  ;;  %v1601_v3 = vpop.f32.mrf.mxu0 }
 0x29c   : > { %3509 = vst [vmem:[%s5751_s18 + $0xd8] sm:$0xff] %v3317_v50  ;;  %v3318_v2 = vadd.f32 %v5742_v7, %v1598_v29  ;;  %v1602_v48 = vadd.f32 %v1601_v3, %v7016_v10 }
 0x29d   : > { %v6542_v19 = vpop.f32.mrf.mxu1  ;;  %v1603_v5 = vpop.f32.mrf.mxu0 }
 0x29e   : > { %3510 = vst [vmem:[%s5751_s18 + $0xe0] sm:$0xff] %v3318_v2  ;;  %v3320_v57 = vadd.f32 %v5736_v12, %v1602_v48  ;;  %v1604_v24 = vadd.f32 %v1603_v5, %v7017_v41 }
 0x29f   : > { %v2142_v45 = vpop.f32.mrf.mxu1  ;;  %v1607_v16 = vpop.f32.mrf.mxu0 }
 0x2a0   : > { %3512 = vst [vmem:[%s5751_s18 + $0xf0] sm:$0xff] %v3320_v57  ;;  %v3321_v22 = vadd.f32 %v5742_v7, %v1604_v24  ;;  %v1608_v8 = vadd.f32 %v1607_v16, %v7019_v36 }
 0x2a1   : > { %v6551_v49 = vpop.f32.mrf.mxu1  ;;  %v1609_v17 = vpop.f32.mrf.mxu0 }
 0x2a2   : > { %3513 = vst [vmem:[%s5751_s18 + $0xf8] sm:$0xff] %v3321_v22  ;;  %v3323_v52 = vadd.f32 %v5736_v12, %v1608_v8  ;;  %v1610_v31 = vadd.f32 %v1609_v17, %v7020_v44 }
 0x2a3   : > { %v2147_v27 = vpop.f32.mrf.mxu1  ;;  %v3961_v40 = vpop.f32.mrf.mxu0 }
 0x2a4   : > { %3515 = vst [vmem:[%s5751_s18 + $0x108] sm:$0xff] %v3323_v52  ;;  %v3324_v32 = vadd.f32 %v5742_v7, %v1610_v31  ;;  %v2381_v20 = vadd.f32 %v3961_v40, %v6253_v6 }
 0x2a5   : > { %v6563_v38 = vpop.f32.mrf.mxu1  ;;  %v2375_v50 = vpop.f32.mrf.mxu0 }
 0x2a6   : > { %3516 = vst [vmem:[%s5751_s18 + $0x110] sm:$0xff] %v3324_v32  ;;  %v3295_v12 = vadd.f32 %v6558_v11, %v2381_v20  ;;  %v2376_v30 = vadd.f32 %v2375_v50, %v6241_v25 }
 0x2a7   : > { %v2152_v29 = vpop.f32.mrf.mxu1  ;;  %v3964_v62 = vpop.f32.mrf.mxu0 }
 0x2a8   : > { %3487 = vst [vmem:[%s5751_s18 + $0x28] sm:$0xff] %v3295_v12  ;;  %v3292_v3 = vadd.f32 %v6558_v11, %v2376_v30  ;;  %v2391_v2 = vadd.f32 %v3964_v62, %v6277_v61 }
 0x2a9   : > { %v6571_v7 = vpop.f32.mrf.mxu1  ;;  %v2385_v6 = vpop.f32.mrf.mxu0 }
 0x2aa   : > { %3484 = vst [vmem:[%s5751_s18 + $0x10] sm:$0xff] %v3292_v3  ;;  %v3301_v10 = vadd.f32 %v6558_v11, %v2391_v2  ;;  %v2386_v48 = vadd.f32 %v2385_v6, %v6265_v37 }
 0x2ab   : > { %v2157_v5 = vpop.f32.mrf.mxu1  ;;  %v3967_v57 = vpop.f32.mrf.mxu0 }
 0x2ac   : > { %3493 = vst [vmem:[%s5751_s18 + $0x58] sm:$0xff] %v3301_v10  ;;  %v3298_v25 = vadd.f32 %v6558_v11, %v2386_v48  ;;  %v2401_v41 = vadd.f32 %v3967_v57, %v6301_v18 }
 0x2ad   : > { %v6579_v24 = vpop.f32.mrf.mxu1  ;;  %v2395_v61 = vpop.f32.mrf.mxu0 }
 0x2ae   : > { %3490 = vst [vmem:[%s5751_s18 + $0x40] sm:$0xff] %v3298_v25  ;;  %v3307_v45 = vadd.f32 %v6558_v11, %v2401_v41  ;;  %v2396_v58 = vadd.f32 %v2395_v61, %v6289_v54 }
 0x2af   : > { %v2162_v1 = vpop.f32.mrf.mxu1  ;;  %v3970_v16 = vpop.f32.mrf.mxu0 }
 0x2b0   : > { %3499 = vst [vmem:[%s5751_s18 + $0x88] sm:$0xff] %v3307_v45  ;;  %v3304_v37 = vadd.f32 %v6558_v11, %v2396_v58  ;;  %v2411_v22 = vadd.f32 %v3970_v16, %v6325_v59 }
 0x2b1   : > { %v6587_v36 = vpop.f32.mrf.mxu1  ;;  %v2405_v18 = vpop.f32.mrf.mxu0 }
 0x2b2   : > { %3496 = vst [vmem:[%s5751_s18 + $0x70] sm:$0xff] %v3304_v37  ;;  %v3313_v8 = vadd.f32 %v6558_v11, %v2411_v22  ;;  %v2406_v17 = vadd.f32 %v2405_v18, %v6313_v53 }
 0x2b3   : > { %v2167_v52 = vpop.f32.mrf.mxu1  ;;  %v3973_v44 = vpop.f32.mrf.mxu0 }
 0x2b4   : > { %3505 = vst [vmem:[%s5751_s18 + $0xb8] sm:$0xff] %v3313_v8  ;;  %v3310_v54 = vadd.f32 %v6558_v11, %v2406_v17  ;;  %v2421_v31 = vadd.f32 %v3973_v44, %v6349_v63 }
 0x2b5   : > { %v6595_v27 = vpop.f32.mrf.mxu1  ;;  %v2415_v59 = vpop.f32.mrf.mxu0 }
 0x2b6   : > { %3502 = vst [vmem:[%s5751_s18 + $0xa0] sm:$0xff] %v3310_v54  ;;  %v3319_v42 = vadd.f32 %v6558_v11, %v2421_v31  ;;  %v2416_v40 = vadd.f32 %v2415_v59, %v6337_v55 }
 0x2b7   : > { %v2172_v32 = vpop.f32.mrf.mxu1  ;;  %v3976_v20 = vpop.f32.mrf.mxu0 }
 0x2b8   : > { %3511 = vst [vmem:[%s5751_s18 + $0xe8] sm:$0xff] %v3319_v42  ;;  %v3316_v53 = vadd.f32 %v6558_v11, %v2416_v40  ;;  %v2431_v50 = vadd.f32 %v3976_v20, %v6373_v39 }
 0x2b9   : > { %v6603_v12 = vpop.f32.mrf.mxu1  ;;  %v2425_v63 = vpop.f32.mrf.mxu0 }
 0x2ba   : > { %3508 = vst [vmem:[%s5751_s18 + $0xd0] sm:$0xff] %v3316_v53  ;;  %v3325_v30 = vadd.f32 %v6558_v11, %v2431_v50  ;;  %v2426_v29 = vadd.f32 %v2425_v63, %v6361_v14 }
 0x2bb   : > { %v2177_v62 = vpop.f32.mrf.mxu1  ;;  %v3979_v3 = vpop.f32.mrf.mxu0 }
 0x2bc   : > { %3517 = vst [vmem:[%s5751_s18 + $0x118] sm:$0xff] %v3325_v30  ;;  %v3322_v55 = vadd.f32 %v6558_v11, %v2426_v29  ;;  %v2441_v2 = vadd.f32 %v3979_v3, %v6397_v0 }
 0x2bd   : > { %v6611_v6 = vpop.f32.mrf.mxu1  ;;  %v2435_v39 = vpop.f32.mrf.mxu0 }
 0x2be   : > { %3514 = vst [vmem:[%s5751_s18 + $0x100] sm:$0xff] %v3322_v55  ;;  %v3331_v10 = vadd.f32 %v6558_v11, %v2441_v2  ;;  %v2436_v48 = vadd.f32 %v2435_v39, %v6385_v51 }
 0x2bf   : > { %v2182_v5 = vpop.f32.mrf.mxu1  ;;  %v3982_v57 = vpop.f32.mrf.mxu0 }
 0x2c0   : > { %3523 = vst [vmem:[%s5751_s18 + $0x148] sm:$0xff] %v3331_v10  ;;  %v3328_v14 = vadd.f32 %v6558_v11, %v2436_v48  ;;  %v2451_v25 = vadd.f32 %v3982_v57, %v6421_v56 }
 0x2c1   : > { %v6619_v41 = vpop.f32.mrf.mxu1  ;;  %v2445_v0 = vpop.f32.mrf.mxu0 }
 0x2c2   : > { %3520 = vst [vmem:[%s5751_s18 + $0x130] sm:$0xff] %v3328_v14  ;;  %v3337_v61 = vadd.f32 %v6558_v11, %v2451_v25  ;;  %v2446_v45 = vadd.f32 %v2445_v0, %v6409_v28 }
 0x2c3   : > { %v2187_v58 = vpop.f32.mrf.mxu1  ;;  %v3985_v1 = vpop.f32.mrf.mxu0 }
 0x2c4   : > { %3529 = vst [vmem:[%s5751_s18 + $0x178] sm:$0xff] %v3337_v61  ;;  %v3334_v51 = vadd.f32 %v6558_v11, %v2446_v45  ;;  %v2461_v16 = vadd.f32 %v3985_v1, %v6438_v21 }
 0x2c5   : > { %v6627_v37 = vpop.f32.mrf.mxu1  ;;  %v2455_v56 = vpop.f32.mrf.mxu0 }
 0x2c6   : > { %3526 = vst [vmem:[%s5751_s18 + $0x160] sm:$0xff] %v3334_v51  ;;  %v3343_v22 = vadd.f32 %v6558_v11, %v2461_v16  ;;  %v2456_v18 = vadd.f32 %v2455_v56, %v6430_v15 }
 0x2c7   : > { %v2192_v8 = vpop.f32.mrf.mxu1  ;;  %v3988_v17 = vpop.f32.mrf.mxu0 }
 0x2c8   : > { %3535 = vst [vmem:[%s5751_s18 + $0x1a8] sm:$0xff] %v3343_v22  ;;  %v3340_v28 = vadd.f32 %v6558_v11, %v2456_v18  ;;  %v2471_v52 = vadd.f32 %v3988_v17, %v6454_v4 }
 0x2c9   : > { %v6635_v44 = vpop.f32.mrf.mxu1  ;;  %v2465_v21 = vpop.f32.mrf.mxu0 }
 0x2ca   : > { %3532 = vst [vmem:[%s5751_s18 + $0x190] sm:$0xff] %v3340_v28  ;;  %v3349_v54 = vadd.f32 %v6558_v11, %v2471_v52  ;;  %v2466_v31 = vadd.f32 %v2465_v21, %v6446_v23 }
 0x2cb   : > { %v2197_v59 = vpop.f32.mrf.mxu1  ;;  %v3991_v42 = vpop.f32.mrf.mxu0 }
 0x2cc   : > { %3541 = vst [vmem:[%s5751_s18 + $0x1d8] sm:$0xff] %v3349_v54  ;;  %v3346_v15 = vadd.f32 %v6558_v11, %v2466_v31  ;;  %v2481_v40 = vadd.f32 %v3991_v42, %v6470_v47 }
 0x2cd   : > { %v6643_v32 = vpop.f32.mrf.mxu1  ;;  %v2475_v4 = vpop.f32.mrf.mxu0 }
 0x2ce   : > { %3538 = vst [vmem:[%s5751_s18 + $0x1c0] sm:$0xff] %v3346_v15  ;;  %v3355_v20 = vadd.f32 %v6558_v11, %v2481_v40  ;;  %v2476_v53 = vadd.f32 %v2475_v4, %v6462_v35 }
 0x2cf   : > { %v2202_v50 = vpop.f32.mrf.mxu1  ;;  %v3994_v63 = vpop.f32.mrf.mxu0 }
 0x2d0   : > { %3547 = vst [vmem:[%s5751_s18 + $0x208] sm:$0xff] %v3355_v20  ;;  %v3352_v23 = vadd.f32 %v6558_v11, %v2476_v53  ;;  %v2491_v30 = vadd.f32 %v3994_v63, %v6486_v60 }
 0x2d1   : > { %v6651_v29 = vpop.f32.mrf.mxu1  ;;  %v2485_v47 = vpop.f32.mrf.mxu0 }
 0x2d2   : > { %3544 = vst [vmem:[%s5751_s18 + $0x1f0] sm:$0xff] %v3352_v23  ;;  %v3361_v62 = vadd.f32 %v6558_v11, %v2491_v30  ;;  %v2486_v3 = vadd.f32 %v2485_v47, %v6478_v13 }
 0x2d3   : > { %v2207_v55 = vpop.f32.mrf.mxu1  ;;  %v3997_v2 = vpop.f32.mrf.mxu0 }
 0x2d4   : > { %3553 = vst [vmem:[%s5751_s18 + $0x238] sm:$0xff] %v3361_v62  ;;  %v3358_v35 = vadd.f32 %v6558_v11, %v2486_v3  ;;  %v2501_v39 = vadd.f32 %v3997_v2, %v6502_v34 }
 0x2d5   : > { %v6659_v10 = vpop.f32.mrf.mxu1  ;;  %v2495_v60 = vpop.f32.mrf.mxu0 }
 0x2d6   : > { %3550 = vst [vmem:[%s5751_s18 + $0x220] sm:$0xff] %v3358_v35  ;;  %v3367_v48 = vadd.f32 %v6558_v11, %v2501_v39  ;;  %v2496_v5 = vadd.f32 %v2495_v60, %v6494_v46 }
 0x2d7   : > { %v2212_v57 = vpop.f32.mrf.mxu1  ;;  %v4000_v14 = vpop.f32.mrf.mxu0 }
 0x2d8   : > { %3559 = vst [vmem:[%s5751_s18 + $0x268] sm:$0xff] %v3367_v48  ;;  %v3364_v13 = vadd.f32 %v6558_v11, %v2496_v5  ;;  %v2511_v25 = vadd.f32 %v4000_v14, %v6518_v9 }
 0x2d9   : > { %v6667_v0 = vpop.f32.mrf.mxu1  ;;  %v2505_v34 = vpop.f32.mrf.mxu0 }
 0x2da   : > { %3556 = vst [vmem:[%s5751_s18 + $0x250] sm:$0xff] %v3364_v13  ;;  %v3373_v61 = vadd.f32 %v6558_v11, %v2511_v25  ;;  %v2506_v45 = vadd.f32 %v2505_v34, %v6510_v26 }
 0x2db   : > { %v2217_v58 = vpop.f32.mrf.mxu1  ;;  %v4003_v1 = vpop.f32.mrf.mxu0 }
 0x2dc   : > { %3565 = vst [vmem:[%s5751_s18 + $0x298] sm:$0xff] %v3373_v61  ;;  %v3370_v46 = vadd.f32 %v6558_v11, %v2506_v45  ;;  %v2521_v51 = vadd.f32 %v4003_v1, %v6534_v43 }
 0x2dd   : > { %v6675_v16 = vpop.f32.mrf.mxu1  ;;  %v2515_v9 = vpop.f32.mrf.mxu0 }
 0x2de   : > { %3562 = vst [vmem:[%s5751_s18 + $0x280] sm:$0xff] %v3370_v46  ;;  %v3379_v56 = vadd.f32 %v6558_v11, %v2521_v51  ;;  %v2516_v22 = vadd.f32 %v2515_v9, %v6526_v33 }
 0x2df   : > { %v2222_v18 = vpop.f32.mrf.mxu1  ;;  %v4006_v8 = vpop.f32.mrf.mxu0 }
 0x2e0   : > { %3571 = vst [vmem:[%s5751_s18 + $0x2c8] sm:$0xff] %v3379_v56  ;;  %v3376_v26 = vadd.f32 %v6558_v11, %v2516_v22  ;;  %v2531_v17 = vadd.f32 %v4006_v8, %v6551_v49 }
 0x2e1   : > { %v6683_v28 = vpop.f32.mrf.mxu1  ;;  %v2525_v43 = vpop.f32.mrf.mxu0 }
 0x2e2   : > { %3568 = vst [vmem:[%s5751_s18 + $0x2b0] sm:$0xff] %v3376_v26  ;;  %v3385_v52 = vadd.f32 %v6558_v11, %v2531_v17  ;;  %v2526_v21 = vadd.f32 %v2525_v43, %v6542_v19 }
 0x2e3   : > { %v2227_v54 = vpop.f32.mrf.mxu1  ;;  %v4009_v31 = vpop.f32.mrf.mxu0 }
 0x2e4   : > { %3577 = vst [vmem:[%s5751_s18 + $0x2f8] sm:$0xff] %v3385_v52  ;;  %v3382_v33 = vadd.f32 %v6558_v11, %v2526_v21  ;;  %v2541_v59 = vadd.f32 %v4009_v31, %v6571_v7 }
 0x2e5   : > { %v6691_v42 = vpop.f32.mrf.mxu1  ;;  %v2535_v49 = vpop.f32.mrf.mxu0 }
 0x2e6   : > { %3574 = vst [vmem:[%s5751_s18 + $0x2e0] sm:$0xff] %v3382_v33  ;;  %v3391_v15 = vadd.f32 %v6558_v11, %v2541_v59  ;;  %v2536_v40 = vadd.f32 %v2535_v49, %v6563_v38 }
 0x2e7   : > { %v2232_v4 = vpop.f32.mrf.mxu1  ;;  %v4012_v20 = vpop.f32.mrf.mxu0 }
 0x2e8   : > { %3583 = vst [vmem:[%s5751_s18 + $0x328] sm:$0xff] %v3391_v15  ;;  %v3388_v19 = vadd.f32 %v6558_v11, %v2536_v40  ;;  %v2551_v53 = vadd.f32 %v4012_v20, %v6587_v36 }
 0x2e9   : > { %v6699_v50 = vpop.f32.mrf.mxu1  ;;  %v2545_v7 = vpop.f32.mrf.mxu0 }
 0x2ea   : > { %3580 = vst [vmem:[%s5751_s18 + $0x310] sm:$0xff] %v3388_v19  ;;  %v3397_v63 = vadd.f32 %v6558_v11, %v2551_v53  ;;  %v2546_v23 = vadd.f32 %v2545_v7, %v6579_v24 }
 0x2eb   : > { %v2237_v30 = vpop.f32.mrf.mxu1  ;;  %v4015_v47 = vpop.f32.mrf.mxu0 }
 0x2ec   : > { %3589 = vst [vmem:[%s5751_s18 + $0x358] sm:$0xff] %v3397_v63  ;;  %v3394_v38 = vadd.f32 %v6558_v11, %v2546_v23  ;;  %v2561_v62 = vadd.f32 %v4015_v47, %v6603_v12 }
 0x2ed   : > { %v6707_v3 = vpop.f32.mrf.mxu1  ;;  %v2555_v36 = vpop.f32.mrf.mxu0 }
 0x2ee   : > { %3586 = vst [vmem:[%s5751_s18 + $0x340] sm:$0xff] %v3394_v38  ;;  %v3403_v55 = vadd.f32 %v6558_v11, %v2561_v62  ;;  %v2556_v2 = vadd.f32 %v2555_v36, %v6595_v27 }
 0x2ef   : > { %v2242_v35 = vpop.f32.mrf.mxu1  ;;  %v4018_v39 = vpop.f32.mrf.mxu0 }
 0x2f0   : > { %3595 = vst [vmem:[%s5751_s18 + $0x388] sm:$0xff] %v3403_v55  ;;  %v3400_v24 = vadd.f32 %v6558_v11, %v2556_v2  ;;  %v2571_v60 = vadd.f32 %v4018_v39, %v6619_v41 }
 0x2f1   : > { %v2245_v48 = vpop.f32.mrf.mxu1  ;;  %v2565_v5 = vpop.f32.mrf.mxu0 }
 0x2f2   : > { %3592 = vst [vmem:[%s5751_s18 + $0x370] sm:$0xff] %v3400_v24  ;;  %v3409_v12 = vadd.f32 %v6558_v11, %v2571_v60  ;;  %v2566_v57 = vadd.f32 %v2565_v5, %v6611_v6 }
 0x2f3   : > { %v2247_v14 = vpop.f32.mrf.mxu1  ;;  %v4021_v13 = vpop.f32.mrf.mxu0 }
 0x2f4   : > { %3601 = vst [vmem:[%s5751_s18 + $0x3b8] sm:$0xff] %v3409_v12  ;;  %v3406_v27 = vadd.f32 %v6558_v11, %v2566_v57  ;;  %v2581_v25 = vadd.f32 %v4021_v13, %v6635_v44 }
 0x2f5   : > { %v6721_v34 = vpop.f32.mrf.mxu1  ;;  %v2575_v61 = vpop.f32.mrf.mxu0 }
 0x2f6   : > { %3598 = vst [vmem:[%s5751_s18 + $0x3a0] sm:$0xff] %v3406_v27  ;;  %v3415_v41 = vadd.f32 %v6558_v11, %v2581_v25  ;;  %v2576_v45 = vadd.f32 %v2575_v61, %v6627_v37 }
 0x2f7   : > { %v2252_v58 = vpop.f32.mrf.mxu1  ;;  %v4024_v1 = vpop.f32.mrf.mxu0 }
 0x2f8   : > { %3607 = vst [vmem:[%s5751_s18 + $0x3e8] sm:$0xff] %v3415_v41  ;;  %v3412_v6 = vadd.f32 %v6558_v11, %v2576_v45  ;;  %v2591_v46 = vadd.f32 %v4024_v1, %v6651_v29 }
 0x2f9   : > { %v2255_v51 = vpop.f32.mrf.mxu1  ;;  %v2585_v9 = vpop.f32.mrf.mxu0 }
 0x2fa   : > { %3604 = vst [vmem:[%s5751_s18 + $0x3d0] sm:$0xff] %v3412_v6  ;;  %v3421_v44 = vadd.f32 %v6558_v11, %v2591_v46  ;;  %v2586_v56 = vadd.f32 %v2585_v9, %v6643_v32 }
 0x2fb   : > { %v2257_v22 = vpop.f32.mrf.mxu1  ;;  %v4027_v18 = vpop.f32.mrf.mxu0 }
 0x2fc   : > { %3613 = vst [vmem:[%s5751_s18 + $0x418] sm:$0xff] %v3421_v44  ;;  %v3418_v37 = vadd.f32 %v6558_v11, %v2586_v56  ;;  %v2601_v8 = vadd.f32 %v4027_v18, %v6667_v0 }
 0x2fd   : > { %v2260_v26 = vpop.f32.mrf.mxu1  ;;  %v2595_v17 = vpop.f32.mrf.mxu0 }
 0x2fe   : > { %3610 = vst [vmem:[%s5751_s18 + $0x400] sm:$0xff] %v3418_v37  ;;  %v3427_v29 = vadd.f32 %v6558_v11, %v2601_v8  ;;  %v2596_v43 = vadd.f32 %v2595_v17, %v6659_v10 }
 0x2ff   : > { %v2262_v52 = vpop.f32.mrf.mxu1  ;;  %v4030_v21 = vpop.f32.mrf.mxu0 }
 0x300   : > { %3619 = vst [vmem:[%s5751_s18 + $0x448] sm:$0xff] %v3427_v29  ;;  %v3424_v32 = vadd.f32 %v6558_v11, %v2596_v43  ;;  %v2611_v54 = vadd.f32 %v4030_v21, %v6683_v28 }
 0x301   : > { %v2265_v31 = vpop.f32.mrf.mxu1  ;;  %v2605_v33 = vpop.f32.mrf.mxu0 }
 0x302   : > { %3616 = vst [vmem:[%s5751_s18 + $0x430] sm:$0xff] %v3424_v32  ;;  %v3433_v0 = vadd.f32 %v6558_v11, %v2611_v54  ;;  %v2606_v59 = vadd.f32 %v2605_v33, %v6675_v16 }
 0x303   : > { %v2267_v49 = vpop.f32.mrf.mxu1  ;;  %v4033_v15 = vpop.f32.mrf.mxu0 }
 0x304   : > { %3625 = vst [vmem:[%s5751_s18 + $0x478] sm:$0xff] %v3433_v0  ;;  %v3430_v10 = vadd.f32 %v6558_v11, %v2606_v59  ;;  %v2621_v40 = vadd.f32 %v4033_v15, %v6699_v50 }
 0x305   : > { %v2270_v4 = vpop.f32.mrf.mxu1  ;;  %v2615_v20 = vpop.f32.mrf.mxu0 }
 0x306   : > { %3622 = vst [vmem:[%s5751_s18 + $0x460] sm:$0xff] %v3430_v10  ;;  %v3439_v28 = vadd.f32 %v6558_v11, %v2621_v40  ;;  %v2616_v19 = vadd.f32 %v2615_v20, %v6691_v42 }
 0x307   : > { %v2272_v53 = vpop.f32.mrf.mxu1  ;;  %v4036_v7 = vpop.f32.mrf.mxu0 }
 0x308   : > { %3631 = vst [vmem:[%s5751_s18 + $0x4a8] sm:$0xff] %v3439_v28  ;;  %v3436_v16 = vadd.f32 %v6558_v11, %v2616_v19  ;;  %v2631_v63 = vadd.f32 %v4036_v7, %v2245_v48 }
 0x309   : > { %v2275_v23 = vpop.f32.mrf.mxu1  ;;  %v2625_v30 = vpop.f32.mrf.mxu0 }
 0x30a   : > { %3628 = vst [vmem:[%s5751_s18 + $0x490] sm:$0xff] %v3436_v16  ;;  %v3445_v50 = vadd.f32 %v6558_v11, %v2631_v63  ;;  %v2626_v47 = vadd.f32 %v2625_v30, %v6707_v3 }
 0x30b   : > { %v2277_v38 = vpop.f32.mrf.mxu1  ;;  %v4039_v62 = vpop.f32.mrf.mxu0 }
 0x30c   : > { %3637 = vst [vmem:[%s5751_s18 + $0x4d8] sm:$0xff] %v3445_v50  ;;  %v3442_v42 = vadd.f32 %v6558_v11, %v2626_v47  ;;  %v2641_v36 = vadd.f32 %v4039_v62, %v2255_v51 }
 0x30d   : > { %v2280_v55 = vpop.f32.mrf.mxu1  ;;  %v2635_v2 = vpop.f32.mrf.mxu0 }
 0x30e   : > { %3634 = vst [vmem:[%s5751_s18 + $0x4c0] sm:$0xff] %v3442_v42  ;;  %v3451_v35 = vadd.f32 %v6558_v11, %v2641_v36  ;;  %v2636_v39 = vadd.f32 %v2635_v2, %v6721_v34 }
 0x30f   : > { %v2282_v24 = vpop.f32.mrf.mxu1  ;;  %v4042_v60 = vpop.f32.mrf.mxu0 }
 0x310   : > { %3643 = vst [vmem:[%s5751_s18 + $0x508] sm:$0xff] %v3451_v35  ;;  %v3448_v3 = vadd.f32 %v6558_v11, %v2636_v39  ;;  %v2651_v48 = vadd.f32 %v4042_v60, %v2265_v31 }
 0x311   : > { %v2285_v5 = vpop.f32.mrf.mxu1  ;;  %v2645_v12 = vpop.f32.mrf.mxu0 }
 0x312   : > { %3640 = vst [vmem:[%s5751_s18 + $0x4f0] sm:$0xff] %v3448_v3  ;;  %v3457_v57 = vadd.f32 %v6558_v11, %v2651_v48  ;;  %v2646_v14 = vadd.f32 %v2645_v12, %v2260_v26 }
 0x313   : > { %v2287_v13 = vpop.f32.mrf.mxu1  ;;  %v4045_v27 = vpop.f32.mrf.mxu0 }
 0x314   : > { %3649 = vst [vmem:[%s5751_s18 + $0x538] sm:$0xff] %v3457_v57  ;;  %v3454_v25 = vadd.f32 %v6558_v11, %v2646_v14  ;;  %v2661_v34 = vadd.f32 %v4045_v27, %v2275_v23 }
 0x315   : > { %v2290_v61 = vpop.f32.mrf.mxu1  ;;  %v2655_v41 = vpop.f32.mrf.mxu0 }
 0x316   : > { %3646 = vst [vmem:[%s5751_s18 + $0x520] sm:$0xff] %v3454_v25  ;;  %v3463_v45 = vadd.f32 %v6558_v11, %v2661_v34  ;;  %v2656_v58 = vadd.f32 %v2655_v41, %v2270_v4 }
 0x317   : > { %v2292_v1 = vpop.f32.mrf.mxu1  ;;  %v4048_v6 = vpop.f32.mrf.mxu0 }
 0x318   : > { %3655 = vst [vmem:[%s5751_s18 + $0x568] sm:$0xff] %v3463_v45  ;;  %v3460_v46 = vadd.f32 %v6558_v11, %v2656_v58  ;;  %v2671_v51 = vadd.f32 %v4048_v6, %v2285_v5 }
 0x319   : > { %v2295_v9 = vpop.f32.mrf.mxu1  ;;  %v2665_v44 = vpop.f32.mrf.mxu0 }
 0x31a   : > { %3652 = vst [vmem:[%s5751_s18 + $0x550] sm:$0xff] %v3460_v46  ;;  %v3469_v56 = vadd.f32 %v6558_v11, %v2671_v51  ;;  %v2666_v22 = vadd.f32 %v2665_v44, %v2280_v55 }
 0x31b   : > { %v2297_v18 = vpop.f32.mrf.mxu1  ;;  %v4051_v37 = vpop.f32.mrf.mxu0 }
 0x31c   : > { %3661 = vst [vmem:[%s5751_s18 + $0x598] sm:$0xff] %v3469_v56  ;;  %v3466_v8 = vadd.f32 %v6558_v11, %v2666_v22  ;;  %v2681_v26 = vadd.f32 %v4051_v37, %v2295_v9 }
 0x31d   : > { %v2300_v17 = vpop.f32.mrf.mxu1  ;;  %v2675_v29 = vpop.f32.mrf.mxu0 }
 0x31e   : > { %3658 = vst [vmem:[%s5751_s18 + $0x580] sm:$0xff] %v3466_v8  ;;  %v3475_v43 = vadd.f32 %v6558_v11, %v2681_v26  ;;  %v2676_v52 = vadd.f32 %v2675_v29, %v2290_v61 }
 0x31f   : > { %v2302_v21 = vpop.f32.mrf.mxu1  ;;  %v4054_v32 = vpop.f32.mrf.mxu0 }
 0x320   : > { %3667 = vst [vmem:[%s5751_s18 + $0x5c8] sm:$0xff] %v3475_v43  ;;  %v3472_v54 = vadd.f32 %v6558_v11, %v2676_v52 }
 0x321   : > { %v2305_v31 = vpop.f32.mrf.mxu1  ;;  %v2685_v0 = vpop.f32.mrf.mxu0 }
 0x322   : > { %v2691_v33 = vadd.f32 %v4054_v32, %v2305_v31  ;;  %3664 = vst [vmem:[%s5751_s18 + $0x5b0] sm:$0xff] %v3472_v54  ;;  %v2686_v59 = vadd.f32 %v2685_v0, %v2300_v17 }
 0x323   : > { %v2307_v49 = vpop.f32.mrf.mxu1 }
 0x324   : > { %v3481_v15 = vadd.f32 %v6558_v11, %v2691_v33  ;;  %v3478_v10 = vadd.f32 %v6558_v11, %v2686_v59 }
 0x326   : > { %3673 = vst [vmem:[%s5751_s18 + $0x5f8] sm:$0xff] %v3481_v15  ;;  %3670 = vst [vmem:[%s5751_s18 + $0x5e0] sm:$0xff] %v3478_v10 }
 0x327   : > { %4458 = shalt.err (!%p4455_p8)
}
 0x328   : > { %s4459_s29 = scalar_lea.hbm %s6785_s0, 24576  ;;  %s4463_s6 = scalar_lea.hbm %s7023_s11, 147456 }
 0x329   : > { %p4460_p7 = scmp.ne.s32.totalorder %s6785_s0, %s4459_s29  ;;  %p4464_p12 = scmp.lt.s32.totalorder %s6785_s0, %s7023_s11 }
 0x32a   : > { %p4465_p2 = scmp.lt.s32.totalorder %s4463_s6, %s4459_s29 }
 0x32b   : > { %p4461_p11 = pnand %p4460_p7, %p4804_p3 }
 0x32c   : > { %p4466_p13 = por %p4465_p2, %p4464_p12 }
 0x32d   : > { %p4462_p0 = pneg %p4461_p11 }
 0x32f   : > { %p4467_p6 = pnand %p4466_p13, %p4462_p0 }
 0x331   : > { %4470 = shalt.err (!%p4467_p6)
}
 0x332   : > { %s4603_s24 = smov 384   ;;  %s4604_s22 = smov 1152  }
 0x333   : > { %s4605_s7 = smov 24  }
 0x334   : > { %4102 = dma.vmem_to_hbm [thread:$0]  (%p4804_p3), %s6788_s4, 24576, %s6785_s0, %s6795_s14, %s4603_s24, %s4604_s22, %s4605_s7  }
 0x335 PF: > { %p4119_p10 = scmp.ge.s32.totalorder %s4593_s25, 2  ;;  %s3706_s8 = sand.u32 1, %s4541_s12  }
 0x336   : > { %p7024_p1 = scmp.ne.s32.totalorder %s6927_s10, 0  ;;  %s3707_s20 = scalar_lea.sflag [#allocation5], %s3706_s8 }
 0x338   : > { %p4115_p9 = pnand %p4119_p10, %p7024_p1 }
 0x33a   : > { %p4116_p5 = pneg %p4115_p9 }
 0x33c   : > { %4536 = dma.done.wait (%p4116_p5), %s3707_s20, 24576  }
 0x33d   : > { %4538 = vsyncadd (%p4116_p5), %s3707_s20, 4294942720  ;;  %s22_s25 = sadd.s32 1, %s4593_s25   ;;  %s7026_s15 = sld [smem:[#allocation13_spill]] }
 0x33e   : > { %p6823_p4 = scmp.ge.s32.totalorder %s22_s25, 8   ;;  %s7027_s14 = sld [smem:[#allocation23_spill]] }
 0x33f   : > { %s7028_s4 = sld [smem:[#allocation21_spill]]  ;;  %s7034_s12 = smov %s4545_s13 }
 0x340   : > { %s7029_s1 = sld [smem:[#allocation14_spill]]  ;;  %s7039_s18 = smov %s4569_s19 }
 0x341   : > { %s7030_s20 = sld [smem:[#allocation22_spill]]  ;;  %s7041_s21 = smov %s4585_s23 }
 0x342   : > { %s7031_s22 = sld [smem:[#allocation17_spill]] }
 0x343   : > { %s7032_s10 = sld [smem:[#allocation18_spill]]  ;;  %s7035_s13 = smov %s7026_s15 }
 0x344   : > { %s7033_s24 = sld [smem:[#allocation19_spill]]  ;;  %s7036_s15 = smov %s4557_s16 }
 0x345   : > { %s7037_s16 = smov %s4561_s17  ;;  %s7038_s17 = smov %s7028_s4 }
 0x346   : > { %s7040_s19 = smov %s7029_s1  ;;  %21 = sbr.rel (!%p6823_p4) target bundleno = 16 (0x10), region = 109 }
 0x349   : > { %s7042_s23 = smov %s7032_s10 }
 0x34b   :  { %3712 = vsyncpa [#allocation4], 1 }
 0x34c   :  { %3714 = vsyncpa [#allocation4 + $0x1], 1 }
 0x34d   :  { %3715 = vsyncpa [#allocation7], 1 }
 0x34e   :  { %3717 = vsyncpa [#allocation7 + $0x1], 1 }
 0x34f   :  { %3718 = vsyncpa [#allocation5], 1 }
 0x350   :  { %3720 = vsyncpa [#allocation5 + $0x1], 1 }

</bundles_post_ra>
